<compile_context>
chip_gen: v7x
topology: tpu7x:2x2x1
jax: 0.10.0
libtpu: 0.0.40
codegen_flags: <defaults>
</compile_context>

<pallas_src>
import numpy as np

import jax
import jax.numpy as jnp
from jax.experimental import pallas as pl
from jax.experimental.pallas import tpu as pltpu

THRESHOLD = 0.5      # braincog IFNode default threshold
TRACE_DECAY = 0.99   # braincog STDP trace decay

# state-row segment indices (each segment is `lanes` lanes wide)
SEG_X, SEG_XDA, SEG_VIS, SEG_KC, SEG_MBON, SEG_APL, SEG_DA, _SEG_PAD = range(8)
NUM_SEG = 8


def _round_up(n, m):
    return ((n + m - 1) // m) * m


class DroDMTestNetPallas:
    """Pallas/TPU re-implementation of droDMTestNet: T forward() steps per call."""

    def __init__(self, weights):
        assert len(weights) == 10
        w = [np.asarray(wi, np.float32) for wi in weights]

        # population sizes derived from the CustomLinear weight shapes [in, out]
        self.n_in = w[0].shape[0]
        self.n_vis = w[0].shape[1]
        self.n_kc = w[1].shape[1]
        self.n_mbon = w[2].shape[1]
        self.n_apl = w[4].shape[1]
        self.n_da_in = w[8].shape[0]
        self.n_da = w[7].shape[1]
        assert w[1].shape[0] == self.n_vis and w[5].shape == (self.n_apl, self.n_kc)
        assert w[3].shape == (self.n_mbon, self.n_mbon)
        assert w[4].shape[0] == self.n_kc and w[6].shape == (self.n_da, self.n_apl)
        assert w[7].shape == (self.n_apl, self.n_da) and w[9].shape == (self.n_da, self.n_mbon)

        dims = (self.n_in, self.n_da_in, self.n_vis, self.n_kc,
                self.n_mbon, self.n_apl, self.n_da)
        self.lanes = _round_up(max(dims), 128)   # lane width of every segment
        lanes = self.lanes
        S = NUM_SEG * lanes                      # flattened state-row length
        self.S = S
        self.r_apl = _round_up(self.n_apl, 8)    # sublane-aligned dw row counts
        self.r_kc = _round_up(self.n_kc, 8)

        # ---- pack the 10 connection matrices into 4 segment-aligned slabs ----
        def put(dst, seg, mat, col0):
            dst[seg * lanes: seg * lanes + mat.shape[0], col0: col0 + mat.shape[1]] = mat

        wv = np.zeros((S, lanes), np.float32)          # -> vis
        put(wv, SEG_X, w[0], 0)
        wk = np.zeros((S, lanes), np.float32)          # -> KC
        put(wk, SEG_VIS, w[1], 0)
        put(wk, SEG_APL, w[5], 0)
        wma = np.zeros((S, 2 * lanes), np.float32)     # -> [MBON | APL]
        put(wma, SEG_KC, w[2], 0)
        put(wma, SEG_KC, w[4], lanes)
        put(wma, SEG_MBON, w[3], 0)
        put(wma, SEG_DA, w[9], 0)
        put(wma, SEG_DA, w[6], lanes)
        wda = np.zeros((S, lanes), np.float32)         # -> DA
        put(wda, SEG_APL, w[7], 0)
        put(wda, SEG_XDA, w[8], 0)

        self.wv = jnp.asarray(wv)
        self.wk = jnp.asarray(wk)
        self.wma = jnp.asarray(wma)
        self.wda = jnp.asarray(wda)

        self._run = jax.jit(self._build())

    # ------------------------------------------------------------------ kernel
    def _build(self):
        f32 = jnp.float32
        lanes, S = self.lanes, self.S
        n_in, n_vis, n_kc = self.n_in, self.n_vis, self.n_kc
        n_mbon, n_apl = self.n_mbon, self.n_apl
        n_da_in, n_da = self.n_da_in, self.n_da
        r_apl, r_kc = self.r_apl, self.r_kc
        dw_rows = r_apl + r_kc

        def kernel(in_ref, wv_ref, wk_ref, wma_ref, wda_ref,
                   st_ref, dw_ref, state, mem, tr):
            t = pl.program_id(0)

            @pl.when(t == 0)
            def _():  # fresh module state (reset())
                state[...] = jnp.zeros_like(state)
                mem[...] = jnp.zeros_like(mem)
                tr[...] = jnp.zeros_like(tr)

            # inject this step's external currents (segments 0: x, 1: x_da)
            state[0:1, 0:2 * lanes] = in_ref[0]

            def mm(w):
                # whole flattened state row vs segment-aligned weight slab
                return jnp.dot(state[...], w, preferred_element_type=f32)

            def fire(off, width, cur):
                # braincog IFNode: integrate, spike at mem > 0.5, hard reset
                m = mem[0:1, off:off + width] + cur
                s = (m > THRESHOLD).astype(f32)
                mem[0:1, off:off + width] = m * (1.0 - s)
                return s

            def outer(pre_row, post_row):
                # (1, r) x (1, lanes) -> (r, lanes) outer product (K=1 matmul)
                return jax.lax.dot_general(
                    pre_row, post_row, (((0,), (0,)), ((), ())),
                    preferred_element_type=f32)

            # node[0]: compound eye -> vis                         (connection 0)
            vis = fire(SEG_VIS * lanes, lanes, mm(wv_ref[...]))
            state[0:1, SEG_VIS * lanes:(SEG_VIS + 1) * lanes] = vis

            # learning_rule[1]: (vis, APL_prev) -> KC              (connections 1, 5)
            kc = fire(SEG_KC * lanes, lanes, mm(wk_ref[...]))

            # dw_kc[1]: pre-trace of APL_prev (read before it is overwritten)
            apl_prev = state[0:1, SEG_APL * lanes:(SEG_APL + 1) * lanes]
            tr_apl = TRACE_DECAY * tr[0:1, :] + apl_prev
            tr[0:1, :] = tr_apl
            dw_ref[0, 0:r_apl, :] = outer(tr_apl[:, 0:r_apl], kc)

            state[0:1, SEG_KC * lanes:(SEG_KC + 1) * lanes] = kc

            # learning_rule[2]+[3]: (KC, MBON_prev, DA_prev) -> MBON and
            # (KC, DA_prev) -> APL, fused into one block matmul (conn 2,3,9 | 4,6)
            ma = fire(SEG_MBON * lanes, 2 * lanes, mm(wma_ref[...]))
            state[0:1, SEG_MBON * lanes:(SEG_MBON + 2) * lanes] = ma
            mbon = ma[:, 0:lanes]
            apl = ma[:, lanes:2 * lanes]

            # dw_apl[0]: pre-trace of this step's KC
            tr_kc = TRACE_DECAY * tr[1:2, :] + kc
            tr[1:2, :] = tr_kc
            dw_ref[0, r_apl:r_apl + r_kc, :] = outer(tr_kc[:, 0:r_kc], apl)

            # learning_rule[4]: (APL, input_da) -> DA              (connections 7, 8)
            da = fire(SEG_DA * lanes, lanes, mm(wda_ref[...]))
            state[0:1, SEG_DA * lanes:(SEG_DA + 1) * lanes] = da

            # lane-dense per-step spike outputs (full-lane single-row stores)
            st_ref[0, 0:1, :] = vis
            st_ref[0, 1:2, :] = kc
            st_ref[0, 2:3, :] = mbon
            st_ref[0, 3:4, :] = apl
            st_ref[0, 4:5, :] = da
            st_ref[0, 5:8, :] = jnp.zeros((3, lanes), f32)

        # constant index_map -> weight slabs DMA'd once, resident across all steps
        def w_spec(cols):
            return pl.BlockSpec((S, cols), lambda t: (0, 0))

        def make_call(T):
            flops = T * (2 * S * 5 * lanes + 2 * dw_rows * lanes)
            bytes_accessed = (4 * S * 5 * lanes
                              + T * 4 * (2 * lanes + 8 * lanes + dw_rows * lanes))
            return pl.pallas_call(
                kernel,
                out_shape=(jax.ShapeDtypeStruct((T, 8, lanes), f32),
                           jax.ShapeDtypeStruct((T, dw_rows, lanes), f32)),
                grid_spec=pltpu.PrefetchScalarGridSpec(
                    num_scalar_prefetch=0,
                    grid=(T,),
                    in_specs=[
                        pl.BlockSpec((1, 1, 2 * lanes), lambda t: (t, 0, 0)),
                        w_spec(lanes), w_spec(lanes), w_spec(2 * lanes), w_spec(lanes),
                    ],
                    out_specs=[
                        pl.BlockSpec((1, 8, lanes), lambda t: (t, 0, 0)),
                        pl.BlockSpec((1, dw_rows, lanes), lambda t: (t, 0, 0)),
                    ],
                    scratch_shapes=[
                        pltpu.VMEM((1, S), f32),       # spike state row (segments)
                        pltpu.VMEM((1, S), f32),       # IFNode membrane potentials
                        pltpu.VMEM((2, lanes), f32),   # STDP traces: APL, KC
                    ]),
                compiler_params=pltpu.CompilerParams(
                    # the time axis carries state -> must stay sequential
                    dimension_semantics=("arbitrary",)),
                cost_estimate=pl.CostEstimate(flops=flops, transcendentals=0,
                                              bytes_accessed=bytes_accessed),
            )

        def run(wv, wk, wma, wda, x_seq, xda_seq):
            T = x_seq.shape[0]
            xp = jnp.pad(x_seq.astype(f32), ((0, 0), (0, lanes - n_in)))
            dp = jnp.pad(xda_seq.astype(f32), ((0, 0), (0, lanes - n_da_in)))
            in_slab = jnp.concatenate([xp, dp], axis=1)[:, None, :]   # (T, 1, 2*lanes)

            st, dw = make_call(T)(in_slab, wv, wk, wma, wda)

            vis = st[:, 0, :n_vis]
            kc = st[:, 1, :n_kc]
            mbon = st[:, 2, :n_mbon]
            apl = st[:, 3, :n_apl]
            da = st[:, 4, :n_da]
            dw_kc1 = dw[:, 0:n_apl, :n_kc]                 # grad for connection[5]
            dw_apl0 = dw[:, r_apl:r_apl + n_kc, :n_apl]    # grad for connection[4]
            # module forward() return values (per step) + module state side effects
            return (mbon, dw_kc1, dw_apl0), (vis, kc, mbon, apl, da)

        return run

    def __call__(self, x_seq, xda_seq):
        x_seq = jnp.atleast_2d(jnp.asarray(x_seq, jnp.float32))
        xda_seq = jnp.atleast_2d(jnp.asarray(xda_seq, jnp.float32))
        return self._run(self.wv, self.wk, self.wma, self.wda, x_seq, xda_seq)


# ---------------------------------------------------------------- reference ----
def _ref_run(x_seq, xda_seq, weights):
    """Plain-JAX reference: reset() followed by T calls of droDMTestNet.forward."""
    f32 = jnp.float32
    w = [jnp.asarray(wi, f32) for wi in weights]
    n_vis, n_kc = w[1].shape
    n_mbon, n_apl, n_da = w[2].shape[1], w[4].shape[1], w[7].shape[1]

    def fire(mem, cur):
        m = mem + cur
        s = (m > THRESHOLD).astype(f32)
        return s, m * (1.0 - s)

    mem = [jnp.zeros((n,), f32) for n in (n_vis, n_kc, n_mbon, n_apl, n_da)]
    apl = jnp.zeros((n_apl,), f32)
    mbon = jnp.zeros((n_mbon,), f32)
    da = jnp.zeros((n_da,), f32)
    tr_apl = jnp.zeros((n_apl,), f32)
    tr_kc = jnp.zeros((n_kc,), f32)

    out = []
    for t in range(x_seq.shape[0]):
        x, xda = x_seq[t].astype(f32), xda_seq[t].astype(f32)
        vis, mem[0] = fire(mem[0], x @ w[0])
        kc, mem[1] = fire(mem[1], vis @ w[1] + apl @ w[5])
        tr_apl = TRACE_DECAY * tr_apl + apl
        dw_kc1 = jnp.outer(tr_apl, kc)
        mbon_new, mem[2] = fire(mem[2], kc @ w[2] + mbon @ w[3] + da @ w[9])
        apl_new, mem[3] = fire(mem[3], kc @ w[4] + da @ w[6])
        tr_kc = TRACE_DECAY * tr_kc + kc
        dw_apl0 = jnp.outer(tr_kc, apl_new)
        mbon, apl = mbon_new, apl_new
        da, mem[4] = fire(mem[4], apl @ w[7] + xda @ w[8])
        out.append((vis, kc, mbon, apl, da, dw_kc1, dw_apl0))

    return tuple(jnp.stack([o[i] for o in out]) for i in range(7))


if __name__ == "__main__":
    # small, deterministic sizes for the drosophila MB sub-populations
    N_IN, N_VIS, N_KC, N_MBON, N_APL, N_DA_IN, N_DA = 16, 8, 32, 8, 8, 8, 8
    T = 6

    key = jax.random.PRNGKey(0)
    keys = jax.random.split(key, 12)

    # CustomLinear weights, shape [in, out]
    w_shapes = [
        (N_IN, N_VIS),      # 0: eye   -> vis
        (N_VIS, N_KC),      # 1: vis   -> KC
        (N_KC, N_MBON),     # 2: KC    -> MBON
        (N_MBON, N_MBON),   # 3: MBON  -> MBON
        (N_KC, N_APL),      # 4: KC    -> APL
        (N_APL, N_KC),      # 5: APL   -> KC
        (N_DA, N_APL),      # 6: DA    -> APL
        (N_APL, N_DA),      # 7: APL   -> DA
        (N_DA_IN, N_DA),    # 8: da-in -> DA
        (N_DA, N_MBON),     # 9: DA    -> MBON
    ]
    weights = [
        jax.random.uniform(keys[k], w_shapes[k], dtype=jnp.float32, maxval=0.3)
        for k in range(10)
    ]

    x_seq = jax.random.uniform(keys[10], (T, N_IN), dtype=jnp.float32)
    xda_seq = jax.random.uniform(keys[11], (T, N_DA_IN), dtype=jnp.float32)

    net = DroDMTestNetPallas(weights)
    (mbon, dw_kc1, dw_apl0), (vis, kc, mbon_s, apl, da) = net(x_seq, xda_seq)
    jax.block_until_ready((mbon, dw_kc1, dw_apl0, vis, kc, apl, da))

    e_vis, e_kc, e_mbon, e_apl, e_da, e_dwkc1, e_dwapl0 = _ref_run(
        x_seq, xda_seq, weights)

    assert mbon.shape == (T, N_MBON)
    assert dw_kc1.shape == (T, N_APL, N_KC)
    assert dw_apl0.shape == (T, N_KC, N_APL)

    def ok(a, b):
        return bool(jnp.allclose(a, b, atol=1e-5, rtol=1e-5))

    assert ok(vis, e_vis)
    assert ok(kc, e_kc)
    assert ok(mbon, e_mbon)
    assert ok(apl, e_apl)
    assert ok(da, e_da)
    assert ok(dw_kc1, e_dwkc1)
    assert ok(dw_apl0, e_dwapl0)
    assert float(jnp.sum(kc)) > 0.0   # the network actually spikes

    print("KERNEL_OK")
</pallas_src>

<mosaic_0001>
module attributes {stable_mosaic.version = 11 : i64} {
  func.func @kernel(%arg0: i32, %arg1: memref<1x1x256xf32, #tpu.memory_space<vmem>>, %arg2: memref<1024x128xf32, #tpu.memory_space<vmem>>, %arg3: memref<1024x128xf32, #tpu.memory_space<vmem>>, %arg4: memref<1024x256xf32, #tpu.memory_space<vmem>>, %arg5: memref<1024x128xf32, #tpu.memory_space<vmem>>, %arg6: memref<1x8x128xf32, #tpu.memory_space<vmem>>, %arg7: memref<1x40x128xf32, #tpu.memory_space<vmem>>, %arg8: memref<1x1024xf32, #tpu.memory_space<vmem>>, %arg9: memref<1x1024xf32, #tpu.memory_space<vmem>>, %arg10: memref<2x128xf32, #tpu.memory_space<vmem>>) attributes {dimension_semantics = [#tpu.dimension_semantics<arbitrary>], iteration_bounds = array<i64: 6>, scalar_prefetch = 0 : i64, scratch_operands = 3 : i64, tpu.core_type = #tpu.core_type<tc>, window_params = [{transform_indices = @transform_0, window_bounds = array<i64: 1, 1, 256>}, {pipeline_mode = #tpu.pipeline_mode<synchronous>, transform_indices = @transform_1, window_bounds = array<i64: 1024, 128>}, {pipeline_mode = #tpu.pipeline_mode<synchronous>, transform_indices = @transform_2, window_bounds = array<i64: 1024, 128>}, {pipeline_mode = #tpu.pipeline_mode<synchronous>, transform_indices = @transform_3, window_bounds = array<i64: 1024, 256>}, {pipeline_mode = #tpu.pipeline_mode<synchronous>, transform_indices = @transform_4, window_bounds = array<i64: 1024, 128>}, {transform_indices = @transform_5, window_bounds = array<i64: 1, 8, 128>}, {transform_indices = @transform_6, window_bounds = array<i64: 1, 40, 128>}]} {
    %c0_i32 = arith.constant 0 : i32
    %0 = arith.cmpi eq, %arg0, %c0_i32 : i32
    %1 = arith.extui %0 : i1 to i32
    %c0_i32_0 = arith.constant 0 : i32
    %2 = arith.cmpi ne, %1, %c0_i32_0 : i32
    scf.if %2 {
      %cst_84 = arith.constant 0.000000e+00 : f32
      %104 = vector.broadcast %cst_84 : f32 to vector<1x1024xf32>
      %c0_85 = arith.constant 0 : index
      %c0_86 = arith.constant 0 : index
      %105 = vector.load %arg8[%c0_85, %c0_86] : memref<1x1024xf32, #tpu.memory_space<vmem>>, vector<1x1024xf32>
      tpu.vector_store %arg8[%c0_85, %c0_86], %104 {strides = array<i32>} : memref<1x1024xf32, #tpu.memory_space<vmem>>, vector<1x1024xf32>,
      %cst_87 = arith.constant 0.000000e+00 : f32
      %106 = vector.broadcast %cst_87 : f32 to vector<1x1024xf32>
      %c0_88 = arith.constant 0 : index
      %c0_89 = arith.constant 0 : index
      %107 = vector.load %arg9[%c0_88, %c0_89] : memref<1x1024xf32, #tpu.memory_space<vmem>>, vector<1x1024xf32>
      tpu.vector_store %arg9[%c0_88, %c0_89], %106 {strides = array<i32>} : memref<1x1024xf32, #tpu.memory_space<vmem>>, vector<1x1024xf32>,
      %cst_90 = arith.constant 0.000000e+00 : f32
      %108 = vector.broadcast %cst_90 : f32 to vector<2x128xf32>
      %c0_91 = arith.constant 0 : index
      %c0_92 = arith.constant 0 : index
      %109 = vector.load %arg10[%c0_91, %c0_92] : memref<2x128xf32, #tpu.memory_space<vmem>>, vector<2x128xf32>
      tpu.vector_store %arg10[%c0_91, %c0_92], %108 {strides = array<i32>} : memref<2x128xf32, #tpu.memory_space<vmem>>, vector<2x128xf32>,
    } else {
    }
    %c0 = arith.constant 0 : index
    %c0_1 = arith.constant 0 : index
    %c0_2 = arith.constant 0 : index
    %3 = vector.load %arg1[%c0, %c0_1, %c0_2] : memref<1x1x256xf32, #tpu.memory_space<vmem>>, vector<1x1x256xf32>
    %4 = vector.shape_cast %3 : vector<1x1x256xf32> to vector<1x256xf32>
    %c0_3 = arith.constant 0 : index
    %c0_4 = arith.constant 0 : index
    %5 = vector.load %arg8[%c0_3, %c0_4] : memref<1x1024xf32, #tpu.memory_space<vmem>>, vector<1x256xf32>
    tpu.vector_store %arg8[%c0_3, %c0_4], %4 {strides = array<i32>} : memref<1x1024xf32, #tpu.memory_space<vmem>>, vector<1x256xf32>,
    %c0_5 = arith.constant 0 : index
    %c0_6 = arith.constant 0 : index
    %6 = vector.load %arg2[%c0_5, %c0_6] : memref<1024x128xf32, #tpu.memory_space<vmem>>, vector<1024x128xf32>
    %c0_7 = arith.constant 0 : index
    %c0_8 = arith.constant 0 : index
    %7 = vector.load %arg8[%c0_7, %c0_8] : memref<1x1024xf32, #tpu.memory_space<vmem>>, vector<1x1024xf32>
    %cst = arith.constant dense<0.000000e+00> : vector<1x128xf32>
    %8 = tpu.matmul %7, %6, %cst {dimension_numbers = #tpu.dot_dimension_numbers<[1], [0], [0], [1], [0, 0, 1, 1], [], []>} : vector<1x1024xf32>, vector<1024x128xf32>, vector<1x128xf32> -> vector<1x128xf32>
    %c0_9 = arith.constant 0 : index
    %c256 = arith.constant 256 : index
    %9 = vector.load %arg9[%c0_9, %c256] : memref<1x1024xf32, #tpu.memory_space<vmem>>, vector<1x128xf32>
    %10 = arith.addf %9, %8 : vector<1x128xf32>
    %cst_10 = arith.constant 5.000000e-01 : f32
    %11 = vector.broadcast %cst_10 : f32 to vector<1x128xf32>
    %12 = arith.cmpf ogt, %10, %11 : vector<1x128xf32>
    %13 = arith.extui %12 : vector<1x128xi1> to vector<1x128xi32>
    %14 = arith.sitofp %13 : vector<1x128xi32> to vector<1x128xf32>
    %cst_11 = arith.constant 1.000000e+00 : f32
    %15 = vector.broadcast %cst_11 : f32 to vector<1x128xf32>
    %16 = arith.subf %15, %14 : vector<1x128xf32>
    %17 = arith.mulf %10, %16 : vector<1x128xf32>
    %c0_12 = arith.constant 0 : index
    %c256_13 = arith.constant 256 : index
    %18 = vector.load %arg9[%c0_12, %c256_13] : memref<1x1024xf32, #tpu.memory_space<vmem>>, vector<1x128xf32>
    tpu.vector_store %arg9[%c0_12, %c256_13], %17 {strides = array<i32>} : memref<1x1024xf32, #tpu.memory_space<vmem>>, vector<1x128xf32>,
    %c0_14 = arith.constant 0 : index
    %c256_15 = arith.constant 256 : index
    %19 = vector.load %arg8[%c0_14, %c256_15] : memref<1x1024xf32, #tpu.memory_space<vmem>>, vector<1x128xf32>
    tpu.vector_store %arg8[%c0_14, %c256_15], %14 {strides = array<i32>} : memref<1x1024xf32, #tpu.memory_space<vmem>>, vector<1x128xf32>,
    %c0_16 = arith.constant 0 : index
    %c0_17 = arith.constant 0 : index
    %20 = vector.load %arg3[%c0_16, %c0_17] : memref<1024x128xf32, #tpu.memory_space<vmem>>, vector<1024x128xf32>
    %c0_18 = arith.constant 0 : index
    %c0_19 = arith.constant 0 : index
    %21 = vector.load %arg8[%c0_18, %c0_19] : memref<1x1024xf32, #tpu.memory_space<vmem>>, vector<1x1024xf32>
    %cst_20 = arith.constant dense<0.000000e+00> : vector<1x128xf32>
    %22 = tpu.matmul %21, %20, %cst_20 {dimension_numbers = #tpu.dot_dimension_numbers<[1], [0], [0], [1], [0, 0, 1, 1], [], []>} : vector<1x1024xf32>, vector<1024x128xf32>, vector<1x128xf32> -> vector<1x128xf32>
    %c0_21 = arith.constant 0 : index
    %c384 = arith.constant 384 : index
    %23 = vector.load %arg9[%c0_21, %c384] : memref<1x1024xf32, #tpu.memory_space<vmem>>, vector<1x128xf32>
    %24 = arith.addf %23, %22 : vector<1x128xf32>
    %cst_22 = arith.constant 5.000000e-01 : f32
    %25 = vector.broadcast %cst_22 : f32 to vector<1x128xf32>
    %26 = arith.cmpf ogt, %24, %25 : vector<1x128xf32>
    %27 = arith.extui %26 : vector<1x128xi1> to vector<1x128xi32>
    %28 = arith.sitofp %27 : vector<1x128xi32> to vector<1x128xf32>
    %cst_23 = arith.constant 1.000000e+00 : f32
    %29 = vector.broadcast %cst_23 : f32 to vector<1x128xf32>
    %30 = arith.subf %29, %28 : vector<1x128xf32>
    %31 = arith.mulf %24, %30 : vector<1x128xf32>
    %c0_24 = arith.constant 0 : index
    %c384_25 = arith.constant 384 : index
    %32 = vector.load %arg9[%c0_24, %c384_25] : memref<1x1024xf32, #tpu.memory_space<vmem>>, vector<1x128xf32>
    tpu.vector_store %arg9[%c0_24, %c384_25], %31 {strides = array<i32>} : memref<1x1024xf32, #tpu.memory_space<vmem>>, vector<1x128xf32>,
    %c0_26 = arith.constant 0 : index
    %c640 = arith.constant 640 : index
    %33 = vector.load %arg8[%c0_26, %c640] : memref<1x1024xf32, #tpu.memory_space<vmem>>, vector<1x128xf32>
    %c0_27 = arith.constant 0 : index
    %c0_28 = arith.constant 0 : index
    %34 = vector.load %arg10[%c0_27, %c0_28] : memref<2x128xf32, #tpu.memory_space<vmem>>, vector<1x128xf32>
    %cst_29 = arith.constant 9.900000e-01 : f32
    %35 = vector.broadcast %cst_29 : f32 to vector<1x128xf32>
    %36 = arith.mulf %35, %34 : vector<1x128xf32>
    %37 = arith.addf %36, %33 : vector<1x128xf32>
    %c0_30 = arith.constant 0 : index
    %c0_31 = arith.constant 0 : index
    %38 = vector.load %arg10[%c0_30, %c0_31] : memref<2x128xf32, #tpu.memory_space<vmem>>, vector<1x128xf32>
    tpu.vector_store %arg10[%c0_30, %c0_31], %37 {strides = array<i32>} : memref<2x128xf32, #tpu.memory_space<vmem>>, vector<1x128xf32>,
    %39 = vector.extract_strided_slice %37 {offsets = [0, 0], sizes = [1, 8], strides = [1, 1]} : vector<1x128xf32> to vector<1x8xf32>
    %cst_32 = arith.constant dense<0.000000e+00> : vector<8x128xf32>
    %40 = tpu.matmul %39, %28, %cst_32 {dimension_numbers = #tpu.dot_dimension_numbers<[0], [0], [1], [1], [0, 1, 1, 1], [], []>} : vector<1x8xf32>, vector<1x128xf32>, vector<8x128xf32> -> vector<8x128xf32>
    %c0_33 = arith.constant 0 : index
    %c0_34 = arith.constant 0 : index
    %c0_35 = arith.constant 0 : index
    %41 = vector.load %arg7[%c0_33, %c0_34, %c0_35] : memref<1x40x128xf32, #tpu.memory_space<vmem>>, vector<1x8x128xf32>
    %42 = vector.shape_cast %41 : vector<1x8x128xf32> to vector<8x128xf32>
    %43 = vector.shape_cast %40 : vector<8x128xf32> to vector<1x8x128xf32>
    tpu.vector_store %arg7[%c0_33, %c0_34, %c0_35], %43 {strides = array<i32>} : memref<1x40x128xf32, #tpu.memory_space<vmem>>, vector<1x8x128xf32>,
    %c0_36 = arith.constant 0 : index
    %c384_37 = arith.constant 384 : index
    %44 = vector.load %arg8[%c0_36, %c384_37] : memref<1x1024xf32, #tpu.memory_space<vmem>>, vector<1x128xf32>
    tpu.vector_store %arg8[%c0_36, %c384_37], %28 {strides = array<i32>} : memref<1x1024xf32, #tpu.memory_space<vmem>>, vector<1x128xf32>,
    %c0_38 = arith.constant 0 : index
    %c0_39 = arith.constant 0 : index
    %45 = vector.load %arg4[%c0_38, %c0_39] : memref<1024x256xf32, #tpu.memory_space<vmem>>, vector<1024x256xf32>
    %c0_40 = arith.constant 0 : index
    %c0_41 = arith.constant 0 : index
    %46 = vector.load %arg8[%c0_40, %c0_41] : memref<1x1024xf32, #tpu.memory_space<vmem>>, vector<1x1024xf32>
    %cst_42 = arith.constant dense<0.000000e+00> : vector<1x256xf32>
    %47 = tpu.matmul %46, %45, %cst_42 {dimension_numbers = #tpu.dot_dimension_numbers<[1], [0], [0], [1], [0, 0, 1, 1], [], []>} : vector<1x1024xf32>, vector<1024x256xf32>, vector<1x256xf32> -> vector<1x256xf32>
    %c0_43 = arith.constant 0 : index
    %c512 = arith.constant 512 : index
    %48 = vector.load %arg9[%c0_43, %c512] : memref<1x1024xf32, #tpu.memory_space<vmem>>, vector<1x256xf32>
    %49 = arith.addf %48, %47 : vector<1x256xf32>
    %cst_44 = arith.constant 5.000000e-01 : f32
    %50 = vector.broadcast %cst_44 : f32 to vector<1x256xf32>
    %51 = arith.cmpf ogt, %49, %50 : vector<1x256xf32>
    %52 = arith.extui %51 : vector<1x256xi1> to vector<1x256xi32>
    %53 = arith.sitofp %52 : vector<1x256xi32> to vector<1x256xf32>
    %cst_45 = arith.constant 1.000000e+00 : f32
    %54 = vector.broadcast %cst_45 : f32 to vector<1x256xf32>
    %55 = arith.subf %54, %53 : vector<1x256xf32>
    %56 = arith.mulf %49, %55 : vector<1x256xf32>
    %c0_46 = arith.constant 0 : index
    %c512_47 = arith.constant 512 : index
    %57 = vector.load %arg9[%c0_46, %c512_47] : memref<1x1024xf32, #tpu.memory_space<vmem>>, vector<1x256xf32>
    tpu.vector_store %arg9[%c0_46, %c512_47], %56 {strides = array<i32>} : memref<1x1024xf32, #tpu.memory_space<vmem>>, vector<1x256xf32>,
    %c0_48 = arith.constant 0 : index
    %c512_49 = arith.constant 512 : index
    %58 = vector.load %arg8[%c0_48, %c512_49] : memref<1x1024xf32, #tpu.memory_space<vmem>>, vector<1x256xf32>
    tpu.vector_store %arg8[%c0_48, %c512_49], %53 {strides = array<i32>} : memref<1x1024xf32, #tpu.memory_space<vmem>>, vector<1x256xf32>,
    %59 = vector.extract_strided_slice %53 {offsets = [0, 0], sizes = [1, 128], strides = [1, 1]} : vector<1x256xf32> to vector<1x128xf32>
    %60 = vector.extract_strided_slice %53 {offsets = [0, 128], sizes = [1, 128], strides = [1, 1]} : vector<1x256xf32> to vector<1x128xf32>
    %c1 = arith.constant 1 : index
    %c0_50 = arith.constant 0 : index
    %61 = vector.load %arg10[%c1, %c0_50] : memref<2x128xf32, #tpu.memory_space<vmem>>, vector<1x128xf32>
    %cst_51 = arith.constant 9.900000e-01 : f32
    %62 = vector.broadcast %cst_51 : f32 to vector<1x128xf32>
    %63 = arith.mulf %62, %61 : vector<1x128xf32>
    %64 = arith.addf %63, %28 : vector<1x128xf32>
    %c1_52 = arith.constant 1 : index
    %c0_53 = arith.constant 0 : index
    %65 = vector.load %arg10[%c1_52, %c0_53] : memref<2x128xf32, #tpu.memory_space<vmem>>, vector<1x128xf32>
    tpu.vector_store %arg10[%c1_52, %c0_53], %64 {strides = array<i32>} : memref<2x128xf32, #tpu.memory_space<vmem>>, vector<1x128xf32>,
    %66 = vector.extract_strided_slice %64 {offsets = [0, 0], sizes = [1, 32], strides = [1, 1]} : vector<1x128xf32> to vector<1x32xf32>
    %cst_54 = arith.constant dense<0.000000e+00> : vector<32x128xf32>
    %67 = tpu.matmul %66, %60, %cst_54 {dimension_numbers = #tpu.dot_dimension_numbers<[0], [0], [1], [1], [0, 1, 1, 1], [], []>} : vector<1x32xf32>, vector<1x128xf32>, vector<32x128xf32> -> vector<32x128xf32>
    %c0_55 = arith.constant 0 : index
    %c8 = arith.constant 8 : index
    %c0_56 = arith.constant 0 : index
    %68 = vector.load %arg7[%c0_55, %c8, %c0_56] : memref<1x40x128xf32, #tpu.memory_space<vmem>>, vector<1x32x128xf32>
    %69 = vector.shape_cast %68 : vector<1x32x128xf32> to vector<32x128xf32>
    %70 = vector.shape_cast %67 : vector<32x128xf32> to vector<1x32x128xf32>
    tpu.vector_store %arg7[%c0_55, %c8, %c0_56], %70 {strides = array<i32>} : memref<1x40x128xf32, #tpu.memory_space<vmem>>, vector<1x32x128xf32>,
    %c0_57 = arith.constant 0 : index
    %c0_58 = arith.constant 0 : index
    %71 = vector.load %arg5[%c0_57, %c0_58] : memref<1024x128xf32, #tpu.memory_space<vmem>>, vector<1024x128xf32>
    %c0_59 = arith.constant 0 : index
    %c0_60 = arith.constant 0 : index
    %72 = vector.load %arg8[%c0_59, %c0_60] : memref<1x1024xf32, #tpu.memory_space<vmem>>, vector<1x1024xf32>
    %cst_61 = arith.constant dense<0.000000e+00> : vector<1x128xf32>
    %73 = tpu.matmul %72, %71, %cst_61 {dimension_numbers = #tpu.dot_dimension_numbers<[1], [0], [0], [1], [0, 0, 1, 1], [], []>} : vector<1x1024xf32>, vector<1024x128xf32>, vector<1x128xf32> -> vector<1x128xf32>
    %c0_62 = arith.constant 0 : index
    %c768 = arith.constant 768 : index
    %74 = vector.load %arg9[%c0_62, %c768] : memref<1x1024xf32, #tpu.memory_space<vmem>>, vector<1x128xf32>
    %75 = arith.addf %74, %73 : vector<1x128xf32>
    %cst_63 = arith.constant 5.000000e-01 : f32
    %76 = vector.broadcast %cst_63 : f32 to vector<1x128xf32>
    %77 = arith.cmpf ogt, %75, %76 : vector<1x128xf32>
    %78 = arith.extui %77 : vector<1x128xi1> to vector<1x128xi32>
    %79 = arith.sitofp %78 : vector<1x128xi32> to vector<1x128xf32>
    %cst_64 = arith.constant 1.000000e+00 : f32
    %80 = vector.broadcast %cst_64 : f32 to vector<1x128xf32>
    %81 = arith.subf %80, %79 : vector<1x128xf32>
    %82 = arith.mulf %75, %81 : vector<1x128xf32>
    %c0_65 = arith.constant 0 : index
    %c768_66 = arith.constant 768 : index
    %83 = vector.load %arg9[%c0_65, %c768_66] : memref<1x1024xf32, #tpu.memory_space<vmem>>, vector<1x128xf32>
    tpu.vector_store %arg9[%c0_65, %c768_66], %82 {strides = array<i32>} : memref<1x1024xf32, #tpu.memory_space<vmem>>, vector<1x128xf32>,
    %c0_67 = arith.constant 0 : index
    %c768_68 = arith.constant 768 : index
    %84 = vector.load %arg8[%c0_67, %c768_68] : memref<1x1024xf32, #tpu.memory_space<vmem>>, vector<1x128xf32>
    tpu.vector_store %arg8[%c0_67, %c768_68], %79 {strides = array<i32>} : memref<1x1024xf32, #tpu.memory_space<vmem>>, vector<1x128xf32>,
    %c0_69 = arith.constant 0 : index
    %c0_70 = arith.constant 0 : index
    %c0_71 = arith.constant 0 : index
    %85 = vector.load %arg6[%c0_69, %c0_70, %c0_71] : memref<1x8x128xf32, #tpu.memory_space<vmem>>, vector<1x1x128xf32>
    %86 = vector.shape_cast %85 : vector<1x1x128xf32> to vector<1x128xf32>
    %87 = vector.shape_cast %14 : vector<1x128xf32> to vector<1x1x128xf32>
    tpu.vector_store %arg6[%c0_69, %c0_70, %c0_71], %87 {strides = array<i32>} : memref<1x8x128xf32, #tpu.memory_space<vmem>>, vector<1x1x128xf32>,
    %c0_72 = arith.constant 0 : index
    %c1_73 = arith.constant 1 : index
    %c0_74 = arith.constant 0 : index
    %88 = vector.load %arg6[%c0_72, %c1_73, %c0_74] : memref<1x8x128xf32, #tpu.memory_space<vmem>>, vector<1x1x128xf32>
    %89 = vector.shape_cast %88 : vector<1x1x128xf32> to vector<1x128xf32>
    %90 = vector.shape_cast %28 : vector<1x128xf32> to vector<1x1x128xf32>
    tpu.vector_store %arg6[%c0_72, %c1_73, %c0_74], %90 {strides = array<i32>} : memref<1x8x128xf32, #tpu.memory_space<vmem>>, vector<1x1x128xf32>,
    %c0_75 = arith.constant 0 : index
    %c2 = arith.constant 2 : index
    %c0_76 = arith.constant 0 : index
    %91 = vector.load %arg6[%c0_75, %c2, %c0_76] : memref<1x8x128xf32, #tpu.memory_space<vmem>>, vector<1x1x128xf32>
    %92 = vector.shape_cast %91 : vector<1x1x128xf32> to vector<1x128xf32>
    %93 = vector.shape_cast %59 : vector<1x128xf32> to vector<1x1x128xf32>
    tpu.vector_store %arg6[%c0_75, %c2, %c0_76], %93 {strides = array<i32>} : memref<1x8x128xf32, #tpu.memory_space<vmem>>, vector<1x1x128xf32>,
    %c0_77 = arith.constant 0 : index
    %c3 = arith.constant 3 : index
    %c0_78 = arith.constant 0 : index
    %94 = vector.load %arg6[%c0_77, %c3, %c0_78] : memref<1x8x128xf32, #tpu.memory_space<vmem>>, vector<1x1x128xf32>
    %95 = vector.shape_cast %94 : vector<1x1x128xf32> to vector<1x128xf32>
    %96 = vector.shape_cast %60 : vector<1x128xf32> to vector<1x1x128xf32>
    tpu.vector_store %arg6[%c0_77, %c3, %c0_78], %96 {strides = array<i32>} : memref<1x8x128xf32, #tpu.memory_space<vmem>>, vector<1x1x128xf32>,
    %c0_79 = arith.constant 0 : index
    %c4 = arith.constant 4 : index
    %c0_80 = arith.constant 0 : index
    %97 = vector.load %arg6[%c0_79, %c4, %c0_80] : memref<1x8x128xf32, #tpu.memory_space<vmem>>, vector<1x1x128xf32>
    %98 = vector.shape_cast %97 : vector<1x1x128xf32> to vector<1x128xf32>
    %99 = vector.shape_cast %79 : vector<1x128xf32> to vector<1x1x128xf32>
    tpu.vector_store %arg6[%c0_79, %c4, %c0_80], %99 {strides = array<i32>} : memref<1x8x128xf32, #tpu.memory_space<vmem>>, vector<1x1x128xf32>,
    %cst_81 = arith.constant 0.000000e+00 : f32
    %100 = vector.broadcast %cst_81 : f32 to vector<3x128xf32>
    %c0_82 = arith.constant 0 : index
    %c5 = arith.constant 5 : index
    %c0_83 = arith.constant 0 : index
    %101 = vector.load %arg6[%c0_82, %c5, %c0_83] : memref<1x8x128xf32, #tpu.memory_space<vmem>>, vector<1x3x128xf32>
    %102 = vector.shape_cast %101 : vector<1x3x128xf32> to vector<3x128xf32>
    %103 = vector.shape_cast %100 : vector<3x128xf32> to vector<1x3x128xf32>
    tpu.vector_store %arg6[%c0_82, %c5, %c0_83], %103 {strides = array<i32>} : memref<1x8x128xf32, #tpu.memory_space<vmem>>, vector<1x3x128xf32>,
    return
  }
  func.func @transform_0(%arg0: i32) -> (i32, i32, i32) {
    %c0_i32 = arith.constant 0 : i32
    %c0_i32_0 = arith.constant 0 : i32
    %c0_i32_1 = arith.constant 0 : i32
    return %arg0, %c0_i32, %c0_i32_0 : i32, i32, i32
  }
  func.func @transform_1(%arg0: i32) -> (i32, i32) {
    %c0_i32 = arith.constant 0 : i32
    %c0_i32_0 = arith.constant 0 : i32
    %c0_i32_1 = arith.constant 0 : i32
    return %c0_i32, %c0_i32_0 : i32, i32
  }
  func.func @transform_2(%arg0: i32) -> (i32, i32) {
    %c0_i32 = arith.constant 0 : i32
    %c0_i32_0 = arith.constant 0 : i32
    %c0_i32_1 = arith.constant 0 : i32
    return %c0_i32, %c0_i32_0 : i32, i32
  }
  func.func @transform_3(%arg0: i32) -> (i32, i32) {
    %c0_i32 = arith.constant 0 : i32
    %c0_i32_0 = arith.constant 0 : i32
    %c0_i32_1 = arith.constant 0 : i32
    return %c0_i32, %c0_i32_0 : i32, i32
  }
  func.func @transform_4(%arg0: i32) -> (i32, i32) {
    %c0_i32 = arith.constant 0 : i32
    %c0_i32_0 = arith.constant 0 : i32
    %c0_i32_1 = arith.constant 0 : i32
    return %c0_i32, %c0_i32_0 : i32, i32
  }
  func.func @transform_5(%arg0: i32) -> (i32, i32, i32) {
    %c0_i32 = arith.constant 0 : i32
    %c0_i32_0 = arith.constant 0 : i32
    %c0_i32_1 = arith.constant 0 : i32
    return %arg0, %c0_i32, %c0_i32_0 : i32, i32, i32
  }
  func.func @transform_6(%arg0: i32) -> (i32, i32, i32) {
    %c0_i32 = arith.constant 0 : i32
    %c0_i32_0 = arith.constant 0 : i32
    %c0_i32_1 = arith.constant 0 : i32
    return %arg0, %c0_i32, %c0_i32_0 : i32, i32, i32
  }
}

</mosaic_0001>

<bundles_post_ra>
// kernel: run.1
= control target key start
LH: loop header
LB: loop body
LE: loop exit
PB: predicated region body
PF: predicated region fallthrough
CT: control target
= control target key end

     0   :  { %12 = vsyncpa [#allocation6], 0  ;;  %s4392_s0 = inlined_call_operand.vmem [shape: f32[6,1,256], index: 0, kind: input, shape index: {}]   ;;  %s4393_s1 = inlined_call_operand.hbm [shape: f32[1024,128], index: 1, kind: input, shape index: {}]   ;;  %s4394_s2 = inlined_call_operand.hbm [shape: f32[1024,128], index: 2, kind: input, shape index: {}]   ;;  %s4395_s3 = inlined_call_operand.hbm [shape: f32[1024,256], index: 3, kind: input, shape index: {}]   ;;  %s4396_s4 = inlined_call_operand.hbm [shape: f32[1024,128], index: 4, kind: input, shape index: {}]   ;;  %s4397_s5 = inlined_call_operand.vmem [shape: f32[6,8,128], index: 5, kind: output, shape index: {0}]   ;;  %s4398_s6 = inlined_call_operand.vmem [shape: f32[6,40,128], index: 6, kind: output, shape index: {1}]  }
   0x1   :  { %13 = vsyncpa [#allocation8], 0 }
   0x2   :  { %14 = vsyncpa [#allocation11], 0  ;;  %s4068_s21 = smov 0  }
   0x3 LB: > { %s4074_s22 = sadd.s32 4294967295, %s4019_s21   ;;  %p2717_p0 = scmp.ge.s32.totalorder %s4019_s21, 1  ;;  %s4019_s21 = sphi %s4068_s21, %s20_s21  }
   0x4   : > { %p187_p1 = scmp.lt.s32.totalorder %s4019_s21, 7  ;;  %p4399_p3 = scmp.eq.s32.totalorder %s4074_s22, 0 }
   0x5   : > { %s4021_s24 = smov [#allocation7]   ;;  %s4022_s26 = smov [#allocation5]  }
   0x6   : > { %p4080_p4 = pnand %p2717_p0, %p187_p1  ;;  %s212_s25 = sshll.u32 %s4021_s24, 4  ;;  %s4084_s25 = int_to_ptr.vmem [resolvable:$true] %s212_s25 }
   0x7   : > { %s199_s27 = sshll.u32 %s4022_s26, 4  ;;  %s4023_s29 = smov [#allocation9]   ;;  %s4088_s27 = int_to_ptr.vmem [resolvable:$true] %s199_s27 }
   0x8   : > { %s4401_s23 = scalar_select %p4080_p4, 1, 0 }
   0x9   : > { %p3848_p5 = pneg %p4080_p4  ;;  %s225_s30 = sshll.u32 %s4023_s29, 4  ;;  %s4096_s30 = int_to_ptr.vmem [resolvable:$true] %s225_s30 }
   0xa   : > { %s3889_s9 = scalar_lea.hbm %s4394_s2, 16384 }
   0xb   : > { %p4092_p6 = pnand %p4399_p3, %p3848_p5  ;;  %p3890_p7 = scmp.ne.s32.totalorder %s4394_s2, %s3889_s9 }
   0xc   : > { %p3896_p11 = scmp.lt.u32.totalorder %s3889_s9, %s4394_s2 }
   0xd   : > { %p4106_p8 = pneg %p4092_p6 }
   0xf   : > { %p3892_p9 = pnand %p4106_p8, %p3890_p7 }
  0x11   : > { %p3893_p10 = pneg %p3892_p9 }
  0x13   : > { %p3898_p12 = pnand %p3896_p11, %p3893_p10 }
  0x15   : > { %3901 = shalt.err (!%p3898_p12)
}
  0x16   : > { %s3902_s15 = scalar_lea.vmem %s4084_s25, 16384  ;;  %p3910_p5 = scmp.lt.s32.totalorder %s4084_s25, %s4084_s25 }
  0x17   : > { %p3903_p13 = scmp.ne.s32.totalorder %s4084_s25, %s3902_s15  ;;  %p3911_p2 = scmp.lt.s32.totalorder %s3902_s15, %s3902_s15 }
  0x19   : > { %p3905_p0 = pnand %p3903_p13, %p4106_p8  ;;  %p3912_p7 = por %p3911_p2, %p3910_p5 }
  0x1b   : > { %p3906_p1 = pneg %p3905_p0 }
  0x1d   : > { %p3913_p9 = pnand %p3912_p7, %p3906_p1 }
  0x1f   : > { %3916 = shalt.err (!%p3913_p9)
}
  0x20   : > { %s4024_s16 = smov 128   ;;  %s4025_s17 = smov 8  }
  0x21   : > { %3854 = dma.hbm_to_vmem [thread:$0]  (!%p4092_p6), %s4394_s2, 16384, %s4084_s25, [#allocation8], %s4024_s16, %s4024_s16, %s4025_s17  }
  0x22   : > { %s3917_s26 = scalar_lea.hbm %s4393_s1, 16384 }
  0x23   : > { %p3918_p2 = scmp.ne.s32.totalorder %s4393_s1, %s3917_s26  ;;  %p3924_p12 = scmp.lt.u32.totalorder %s3917_s26, %s4393_s1 }
  0x25   : > { %p3920_p10 = pnand %p3918_p2, %p4106_p8 }
  0x27   : > { %p3921_p11 = pneg %p3920_p10 }
  0x29   : > { %p3926_p13 = pnand %p3924_p12, %p3921_p11 }
  0x2b   : > { %3929 = shalt.err (!%p3926_p13)
}
  0x2c   : > { %s3930_s25 = scalar_lea.vmem %s4088_s27, 16384  ;;  %p3938_p7 = scmp.lt.s32.totalorder %s4088_s27, %s4088_s27 }
  0x2d   : > { %p3931_p0 = scmp.ne.s32.totalorder %s4088_s27, %s3930_s25  ;;  %p3939_p9 = scmp.lt.s32.totalorder %s3930_s25, %s3930_s25 }
  0x2f   : > { %p3933_p1 = pnand %p3931_p0, %p4106_p8  ;;  %p3940_p2 = por %p3939_p9, %p3938_p7 }
  0x31   : > { %p3934_p5 = pneg %p3933_p1 }
  0x33   : > { %p3941_p10 = pnand %p3940_p2, %p3934_p5 }
  0x35   : > { %3944 = shalt.err (!%p3941_p10)
}
  0x36   : > { %3851 = dma.hbm_to_vmem [thread:$0]  (!%p4092_p6), %s4393_s1, 16384, %s4088_s27, [#allocation6], %s4024_s16, %s4024_s16, %s4025_s17  }
  0x37   : > { %s3945_s15 = scalar_lea.hbm %s4395_s3, 32768 }
  0x38   : > { %p3946_p11 = scmp.ne.s32.totalorder %s4395_s3, %s3945_s15  ;;  %p3952_p0 = scmp.lt.u32.totalorder %s3945_s15, %s4395_s3 }
  0x3a   : > { %p3948_p12 = pnand %p3946_p11, %p4106_p8 }
  0x3c   : > { %p3949_p13 = pneg %p3948_p12 }
  0x3e   : > { %p3954_p1 = pnand %p3952_p0, %p3949_p13 }
  0x40   : > { %3957 = shalt.err (!%p3954_p1)
}
  0x41   : > { %s3958_s27 = scalar_lea.vmem %s4096_s30, 32768  ;;  %p3966_p2 = scmp.lt.s32.totalorder %s4096_s30, %s4096_s30 }
  0x42   : > { %p3959_p5 = scmp.ne.s32.totalorder %s4096_s30, %s3958_s27  ;;  %p3967_p10 = scmp.lt.s32.totalorder %s3958_s27, %s3958_s27 }
  0x44   : > { %p3961_p7 = pnand %p3959_p5, %p4106_p8  ;;  %p3968_p11 = por %p3967_p10, %p3966_p2 }
  0x46   : > { %p3962_p9 = pneg %p3961_p7 }
  0x48   : > { %p3969_p12 = pnand %p3968_p11, %p3962_p9 }
  0x4a   : > { %3972 = shalt.err (!%p3969_p12)
}
  0x4b   : > { %s4026_s26 = smov 256   ;;  %s4027_s29 = smov 16  }
  0x4c   : > { %3857 = dma.hbm_to_vmem [thread:$0]  (!%p4092_p6), %s4395_s3, 32768, %s4096_s30, [#allocation8], %s4026_s26, %s4026_s26, %s4027_s29  }
  0x4d   : > { %s4028_s9 = smov [#allocation10]   ;;  %s3973_s13 = scalar_lea.hbm %s4396_s4, 16384 }
  0x4e   : > { %s238_s25 = sshll.u32 %s4028_s9, 4  ;;  %p3974_p13 = scmp.ne.s32.totalorder %s4396_s4, %s3973_s13  ;;  %s239_s25 = int_to_ptr.vmem [resolvable:$true] %s238_s25 }
  0x4f   : > { %p3980_p5 = scmp.lt.u32.totalorder %s3973_s13, %s4396_s4 }
  0x50   : > { %p3976_p0 = pnand %p3974_p13, %p4106_p8 }
  0x52   : > { %p3977_p1 = pneg %p3976_p0 }
  0x54   : > { %p3982_p7 = pnand %p3980_p5, %p3977_p1 }
  0x56   : > { %3985 = shalt.err (!%p3982_p7)
}
  0x57   : > { %s3986_s30 = scalar_lea.vmem %s239_s25, 16384  ;;  %p3994_p11 = scmp.lt.s32.totalorder %s239_s25, %s239_s25 }
  0x58   : > { %p3987_p9 = scmp.ne.s32.totalorder %s239_s25, %s3986_s30  ;;  %p3995_p12 = scmp.lt.s32.totalorder %s3986_s30, %s3986_s30 }
  0x5a   : > { %p3989_p2 = pnand %p3987_p9, %p4106_p8  ;;  %p3996_p3 = por %p3995_p12, %p3994_p11 }
  0x5c   : > { %p3990_p10 = pneg %p3989_p2 }
  0x5e   : > { %p3997_p4 = pnand %p3996_p3, %p3990_p10 }
  0x60   : > { %4000 = shalt.err (!%p3997_p4)
}
  0x61   : > { %3860 = dma.hbm_to_vmem [thread:$0]  (!%p4092_p6), %s4396_s4, 16384, %s239_s25, [#allocation11], %s4024_s16, %s4024_s16, %s4025_s17  }
  0x62   : > { %p4404_p13 = scmp.ne.s32.totalorder %s4401_s23, 0 }
  0x63   : > { %p4405_p8 = scmp.eq.s32.totalorder (!%p4404_p13), %s4074_s22, 0 }
  0x64   : > { %261 = sbr.rel (%p4404_p13) target bundleno = 1458 (0x5b2), region = 40 }
  0x6b   : > { %4006 = dma.done.wait (%p4405_p8), [#allocation6], 16384   ;;  %p4406_p0 = pmov %p4405_p8 }
  0x6d   : > { %4008 = vsyncadd (%p4406_p0), [#allocation6], 4294950912  ;;  %p4407_p3 = pmov %p4406_p0 }
  0x6e   : > { %p4408_p4 = pmov %p4406_p0 }
  0x6f   : > { %4010 = dma.done.wait (%p4407_p3), [#allocation8], 49152  }
  0x70   : > { %4012 = vsyncadd (%p4408_p4), [#allocation8], 4294918144  ;;  %p4409_p1 = pmov %p4406_p0 }
  0x71   : > { %p4410_p6 = pmov %p4406_p0 }
  0x72   : > { %4014 = dma.done.wait (%p4409_p1), [#allocation11], 16384  }
  0x73   : > { %4016 = vsyncadd (%p4410_p6), [#allocation11], 4294950912  ;;  %p306_p5 = scmp.lt.s32.totalorder %s4074_s22, 5  ;;  %p4411_p7 = scmp.ne.s32.totalorder %s4074_s22, 0 }
  0x74   : > { %v4029_v0 = vmov (!%p4411_p7), 0.0  }
  0x75   : > { %s307_s23 = scalar_select %p306_p5, %s4074_s22, 5 }
  0x76   : > { %322 = sbr.rel (%p4411_p7) target bundleno = 125 (0x7d), region = 60  ;;  %323 = vst [vmem:[#allocation2] sm:$0xff] (!%p4411_p7), %v4029_v0  ;;  %324 = vst [vmem:[#allocation3] sm:$0xff] (!%p4411_p7), %v4029_v0 }
  0x77   : > { %s2728_s28 = sshll.u32 %s307_s23, 1  ;;  %s2729_s12 = sshll.u32 %s307_s23, 3  ;;  %325 = vst [vmem:[#allocation4] sm:$0x3] (!%p4411_p7), %v4029_v0 }
  0x78   : > { %s4219_s27 = scalar_lea.vmem %s4392_s0, %s2728_s28  ;;  %s4224_s7 = scalar_lea.vmem %s4397_s5, %s2729_s12 }
  0x79   : > { %s3831_s8 = smul.u32 40, %s307_s23 }
  0x7b   : > { %s4229_s10 = scalar_lea.vmem %s4398_s6, %s3831_s8 }
  0x7d PF: > { %v348_v1 = vld [vmem:[#allocation5 + $0x80] sm:$0xff]  ;;  %v349_v2 = vld [vmem:[#allocation5 + $0x88] sm:$0xff]  ;;  %v350_v12 = vld [vmem:[#allocation5 + $0x90] sm:$0xff]  ;;  %v327_v63 = vlaneseq  ;;  %vm4031_vm3 = vmmov 0   ;;  %vm1292_vm4 = vcmask 1040384   ;;  %vm1288_vm6 = vcmask 7168  }
  0x7e   : > { %v380_v3 = vld [vmem:[#allocation5 + $0x180] sm:$0xff]  ;;  %v3185_v4 = vpack.c.bf16 %v349_v2, %v348_v1  ;;  %v381_v5 = vld [vmem:[#allocation5 + $0x188] sm:$0xff]  ;;  %v351_v14 = vld [vmem:[#allocation5 + $0x98] sm:$0xff] }
  0x7f   : > { %v332_v6 = vld [vmem:[#allocation5] sm:$0xff]  ;;  %v333_v7 = vld [vmem:[#allocation5 + $0x8] sm:$0xff]  ;;  %v3217_v8 = vpack.c.bf16 %v381_v5, %v380_v3  ;;  %v382_v15 = vld [vmem:[#allocation5 + $0x190] sm:$0xff]  ;;  %v3189_v17 = vpack.c.bf16 %v351_v14, %v350_v12  ;;  %vm4234_vm0 = vcmp.lt.s32.totalorder %v327_v63, 256  ;;  %vm4289_vm1 = vcmp.lt.s32.totalorder %v327_v63, 128 }
  0x80   : > { %v3187_v9 = vpack.c.bf16 %v333_v7, %v332_v6  ;;  %v364_v10 = vld [vmem:[#allocation5 + $0x100] sm:$0xff]  ;;  %v365_v11 = vld [vmem:[#allocation5 + $0x108] sm:$0xff]  ;;  %3186 = vmatprep.subr.bf16.mxu0 %v3185_v4  ;;  %v383_v16 = vld [vmem:[#allocation5 + $0x198] sm:$0xff] }
  0x81   : > { %v3219_v13 = vpack.c.bf16 %v365_v11, %v364_v10  ;;  %3218 = vmatprep.subr.bf16.mxu1 %v3217_v8  ;;  %v3221_v18 = vpack.c.bf16 %v383_v16, %v382_v15  ;;  %v334_v19 = vld [vmem:[#allocation5 + $0x10] sm:$0xff]  ;;  %v335_v20 = vld [vmem:[#allocation5 + $0x18] sm:$0xff]  ;;  %v352_v24 = vld [vmem:[#allocation5 + $0xa0] sm:$0xff] }
  0x82   : > { %3188 = vmatpush3.bf16.msra.mxu0 %v3187_v9  ;;  %v366_v21 = vld [vmem:[#allocation5 + $0x110] sm:$0xff]  ;;  %v3191_v22 = vpack.c.bf16 %v335_v20, %v334_v19  ;;  %v367_v23 = vld [vmem:[#allocation5 + $0x118] sm:$0xff]  ;;  %v353_v25 = vld [vmem:[#allocation5 + $0xa8] sm:$0xff] }
  0x83   : > { %3220 = vmatpush3.bf16.msra.mxu1 %v3219_v13  ;;  %3190 = vmatprep.subr.bf16.mxu0 %v3189_v17  ;;  %v3223_v26 = vpack.c.bf16 %v367_v23, %v366_v21  ;;  %v3193_v27 = vpack.c.bf16 %v353_v25, %v352_v24  ;;  %v384_v28 = vld [vmem:[#allocation5 + $0x1a0] sm:$0xff]  ;;  %v385_v29 = vld [vmem:[#allocation5 + $0x1a8] sm:$0xff]  ;;  %v354_v36 = vld [vmem:[#allocation5 + $0xb0] sm:$0xff]  ;;  %v4242_v24 = vshrl.u32 %v327_v63, 7 }
  0x84   : > { %3222 = vmatprep.subr.bf16.mxu1 %v3221_v18  ;;  %v336_v30 = vld [vmem:[#allocation5 + $0x20] sm:$0xff]  ;;  %v3225_v31 = vpack.c.bf16 %v385_v29, %v384_v28  ;;  %v337_v32 = vld [vmem:[#allocation5 + $0x28] sm:$0xff]  ;;  %v355_v37 = vld [vmem:[#allocation5 + $0xb8] sm:$0xff] }
  0x85   : > { %v368_v33 = vld [vmem:[#allocation5 + $0x120] sm:$0xff]  ;;  %v369_v34 = vld [vmem:[#allocation5 + $0x128] sm:$0xff]  ;;  %v3195_v35 = vpack.c.bf16 %v337_v32, %v336_v30  ;;  %v386_v38 = vld [vmem:[#allocation5 + $0x1b0] sm:$0xff]  ;;  %v3197_v40 = vpack.c.bf16 %v355_v37, %v354_v36  ;;  %v4248_v36 = vsub.s32 3, %v4242_v24 }
  0x86   : > { %3192 = vmatpush3.bf16.msra.mxu0 %v3191_v22  ;;  %v3227_v39 = vpack.c.bf16 %v369_v34, %v368_v33  ;;  %v387_v41 = vld [vmem:[#allocation5 + $0x1b8] sm:$0xff]  ;;  %v338_v42 = vld [vmem:[#allocation5 + $0x30] sm:$0xff]  ;;  %v356_v47 = vld [vmem:[#allocation5 + $0xc0] sm:$0xff] }
  0x87   : > { %3224 = vmatpush3.bf16.msra.mxu1 %v3223_v26  ;;  %3194 = vmatprep.subr.bf16.mxu0 %v3193_v27  ;;  %v339_v43 = vld [vmem:[#allocation5 + $0x38] sm:$0xff]  ;;  %v3229_v44 = vpack.c.bf16 %v387_v41, %v386_v38  ;;  %v370_v45 = vld [vmem:[#allocation5 + $0x130] sm:$0xff]  ;;  %v357_v48 = vld [vmem:[#allocation5 + $0xc8] sm:$0xff]  ;;  %v4251_v38 = vsub.s32 0, %v4242_v24 }
  0x88   : > { %3226 = vmatprep.subr.bf16.mxu1 %v3225_v31  ;;  %v371_v46 = vld [vmem:[#allocation5 + $0x138] sm:$0xff]  ;;  %v388_v49 = vld [vmem:[#allocation5 + $0x1c0] sm:$0xff]  ;;  %v389_v50 = vld [vmem:[#allocation5 + $0x1c8] sm:$0xff]  ;;  %v3199_v51 = vpack.c.bf16 %v339_v43, %v338_v42  ;;  %v3201_v53 = vpack.c.bf16 %v357_v48, %v356_v47  ;;  %v4254_v43 = vsub.s32 2, %v4242_v24 }
  0x89   : > { %v3231_v52 = vpack.c.bf16 %v371_v46, %v370_v45  ;;  %v340_v54 = vld [vmem:[#allocation5 + $0x40] sm:$0xff]  ;;  %v341_v55 = vld [vmem:[#allocation5 + $0x48] sm:$0xff]  ;;  %v3233_v57 = vpack.c.bf16 %v389_v50, %v388_v49  ;;  %v358_v59 = vld [vmem:[#allocation5 + $0xd0] sm:$0xff]  ;;  %v4259_v49 = vsub.s32 5, %v4242_v24 }
  0x8a   : > { %3196 = vmatpush3.bf16.msra.mxu0 %v3195_v35  ;;  %v372_v56 = vld [vmem:[#allocation5 + $0x140] sm:$0xff]  ;;  %v373_v58 = vld [vmem:[#allocation5 + $0x148] sm:$0xff]  ;;  %v359_v60 = vld [vmem:[#allocation5 + $0xd8] sm:$0xff]  ;;  %v3203_v0 = vpack.c.bf16 %v341_v55, %v340_v54  ;;  %v4245_v35 = vsub.s32 1, %v4242_v24 }
  0x8b   : > { %3228 = vmatpush3.bf16.msra.mxu1 %v3227_v39  ;;  %3198 = vmatprep.subr.bf16.mxu0 %v3197_v40  ;;  %v390_v61 = vld [vmem:[#allocation5 + $0x1d0] sm:$0xff]  ;;  %v391_v62 = vld [vmem:[#allocation5 + $0x1d8] sm:$0xff]  ;;  %v3235_v1 = vpack.c.bf16 %v373_v58, %v372_v56  ;;  %v3205_v2 = vpack.c.bf16 %v359_v60, %v358_v59  ;;  %v360_v8 = vld [vmem:[#allocation5 + $0xe0] sm:$0xff]  ;;  %v4268_v60 = vsub.s32 7, %v4242_v24 }
  0x8c   : > { %3230 = vmatprep.subr.bf16.mxu1 %v3229_v44  ;;  %v342_v3 = vld [vmem:[#allocation5 + $0x50] sm:$0xff]  ;;  %v343_v4 = vld [vmem:[#allocation5 + $0x58] sm:$0xff]  ;;  %v3237_v6 = vpack.c.bf16 %v391_v62, %v390_v61  ;;  %v361_v9 = vld [vmem:[#allocation5 + $0xe8] sm:$0xff] }
  0x8d   : > { %v374_v5 = vld [vmem:[#allocation5 + $0x150] sm:$0xff]  ;;  %v375_v7 = vld [vmem:[#allocation5 + $0x158] sm:$0xff]  ;;  %v392_v10 = vld [vmem:[#allocation5 + $0x1e0] sm:$0xff]  ;;  %v3207_v13 = vpack.c.bf16 %v343_v4, %v342_v3  ;;  %v3209_v16 = vpack.c.bf16 %v361_v9, %v360_v8 }
  0x8e   : > { %3200 = vmatpush3.bf16.msra.mxu0 %v3199_v51  ;;  %v393_v11 = vld [vmem:[#allocation5 + $0x1e8] sm:$0xff]  ;;  %v344_v14 = vld [vmem:[#allocation5 + $0x60] sm:$0xff]  ;;  %v3239_v15 = vpack.c.bf16 %v375_v7, %v374_v5  ;;  %v362_v22 = vld [vmem:[#allocation5 + $0xf0] sm:$0xff] }
  0x8f   : > { %3232 = vmatpush3.bf16.msra.mxu1 %v3231_v52  ;;  %3202 = vmatprep.subr.bf16.mxu0 %v3201_v53  ;;  %v345_v17 = vld [vmem:[#allocation5 + $0x68] sm:$0xff]  ;;  %v376_v18 = vld [vmem:[#allocation5 + $0x160] sm:$0xff]  ;;  %v3241_v20 = vpack.c.bf16 %v393_v11, %v392_v10  ;;  %v363_v23 = vld [vmem:[#allocation5 + $0xf8] sm:$0xff] }
  0x90   : > { %3234 = vmatprep.subr.bf16.mxu1 %v3233_v57  ;;  %v326_v19 = vld [vmem:[%s4219_s27] sm:$0x3]  ;;  %v394_v25 = vld [vmem:[#allocation5 + $0x1f0] sm:$0xff]  ;;  %v395_v26 = vld [vmem:[#allocation5 + $0x1f8] sm:$0xff]  ;;  %v3211_v27 = vpack.c.bf16 %v345_v17, %v344_v14  ;;  %v3213_v29 = vpack.c.bf16 %v363_v23, %v362_v22 }
  0x91   : > { %v377_v21 = vld [vmem:[#allocation5 + $0x168] sm:$0xff]  ;;  %331 = vst.msk [vmem:[#allocation2] sm:$0x3] %vm4234_vm0, %v326_v19  ;;  %v346_v30 = vld [vmem:[#allocation5 + $0x70] sm:$0xff]  ;;  %v347_v31 = vld [vmem:[#allocation5 + $0x78] sm:$0xff]  ;;  %v3245_v32 = vpack.c.bf16 %v395_v26, %v394_v25 }
  0x92   : > { %3204 = vmatpush3.bf16.msra.mxu0 %v3203_v0  ;;  %v3243_v28 = vpack.c.bf16 %v377_v21, %v376_v18  ;;  %v378_v33 = vld [vmem:[#allocation5 + $0x170] sm:$0xff]  ;;  %v379_v34 = vld [vmem:[#allocation5 + $0x178] sm:$0xff]  ;;  %v412_v37 = vld [vmem:[#allocation5 + $0x280] sm:$0xff]  ;;  %v3215_v42 = vpack.c.bf16 %v347_v31, %v346_v30 }
  0x93   : > { %3236 = vmatpush3.bf16.msra.mxu1 %v3235_v1  ;;  %3206 = vmatprep.subr.bf16.mxu0 %v3205_v2  ;;  %v413_v39 = vld [vmem:[#allocation5 + $0x288] sm:$0xff]  ;;  %v444_v40 = vld [vmem:[#allocation5 + $0x380] sm:$0xff]  ;;  %v3247_v45 = vpack.c.bf16 %v379_v34, %v378_v33  ;;  %v414_v55 = vld [vmem:[#allocation5 + $0x290] sm:$0xff] }
  0x94   : > { %3238 = vmatprep.subr.bf16.mxu1 %v3237_v6  ;;  %v445_v41 = vld [vmem:[#allocation5 + $0x388] sm:$0xff]  ;;  %v396_v44 = vld [vmem:[#allocation5 + $0x200] sm:$0xff]  ;;  %v3249_v52 = vpack.c.bf16 %v413_v39, %v412_v37  ;;  %v415_v56 = vld [vmem:[#allocation5 + $0x298] sm:$0xff] }
  0x95   : > { %v397_v47 = vld [vmem:[#allocation5 + $0x208] sm:$0xff]  ;;  %v428_v48 = vld [vmem:[#allocation5 + $0x300] sm:$0xff]  ;;  %v3281_v53 = vpack.c.bf16 %v445_v41, %v444_v40  ;;  %v446_v58 = vld [vmem:[#allocation5 + $0x390] sm:$0xff]  ;;  %v3253_v1 = vpack.c.bf16 %v415_v56, %v414_v55 }
  0x96   : > { %3208 = vmatpush3.bf16.msra.mxu0 %v3207_v13  ;;  %v429_v54 = vld [vmem:[#allocation5 + $0x308] sm:$0xff]  ;;  %v447_v59 = vld [vmem:[#allocation5 + $0x398] sm:$0xff]  ;;  %v3251_v62 = vpack.c.bf16 %v397_v47, %v396_v44  ;;  %v398_v2 = vld [vmem:[#allocation5 + $0x210] sm:$0xff] }
  0x97   : > { %3240 = vmatpush3.bf16.msra.mxu1 %v3239_v15  ;;  %3210 = vmatprep.subr.bf16.mxu0 %v3209_v16  ;;  %v3283_v0 = vpack.c.bf16 %v429_v54, %v428_v48  ;;  %v399_v3 = vld [vmem:[#allocation5 + $0x218] sm:$0xff]  ;;  %v430_v4 = vld [vmem:[#allocation5 + $0x310] sm:$0xff]  ;;  %v3285_v5 = vpack.c.bf16 %v447_v59, %v446_v58  ;;  %v416_v7 = vld [vmem:[#allocation5 + $0x2a0] sm:$0xff] }
  0x98   : > { %3242 = vmatprep.subr.bf16.mxu1 %v3241_v20  ;;  %v4256_v46 = vld [vmem:[#allocation2] sm:$0xff]  ;;  %v431_v6 = vld [vmem:[#allocation5 + $0x318] sm:$0xff]  ;;  %v448_v10 = vld [vmem:[#allocation5 + $0x3a0] sm:$0xff]  ;;  %v3255_v14 = vpack.c.bf16 %v399_v3, %v398_v2 }
  0x99   : > { %v469_v50 = vrot.slane %v4256_v46, %v4245_v35  ;;  %v477_v51 = vrot.slane %v4256_v46, %v4248_v36  ;;  %v465_v57 = vrot.slane %v4256_v46, %v4251_v38  ;;  %v473_v61 = vrot.slane %v4256_v46, %v4254_v43  ;;  %v417_v8 = vld [vmem:[#allocation5 + $0x2a8] sm:$0xff]  ;;  %v400_v17 = vld [vmem:[#allocation5 + $0x220] sm:$0xff]  ;;  %v418_v22 = vld [vmem:[#allocation5 + $0x2b0] sm:$0xff] }
  0x9a   : > { %3212 = vmatpush3.bf16.msra.mxu0 %v3211_v27  ;;  %v485_v9 = vrot.slane %v4256_v46, %v4259_v49  ;;  %v449_v11 = vld [vmem:[#allocation5 + $0x3a8] sm:$0xff]  ;;  %v493_v13 = vrot.slane %v4256_v46, %v4268_v60  ;;  %v3287_v15 = vpack.c.bf16 %v431_v6, %v430_v4  ;;  %v3257_v16 = vpack.c.bf16 %v417_v8, %v416_v7  ;;  %v432_v19 = vld [vmem:[#allocation5 + $0x320] sm:$0xff]  ;;  %v419_v23 = vld [vmem:[#allocation5 + $0x2b8] sm:$0xff] }
  0x9b   : > { %3244 = vmatpush3.bf16.msra.mxu1 %v3243_v28  ;;  %3214 = vmatprep.subr.bf16.mxu0 %v3213_v29  ;;  %v401_v18 = vld [vmem:[#allocation5 + $0x228] sm:$0xff]  ;;  %v3289_v20 = vpack.c.bf16 %v449_v11, %v448_v10  ;;  %v450_v25 = vld [vmem:[#allocation5 + $0x3b0] sm:$0xff]  ;;  %v451_v26 = vld [vmem:[#allocation5 + $0x3b8] sm:$0xff]  ;;  %v3261_v29 = vpack.c.bf16 %v419_v23, %v418_v22 }
  0x9c   : > { %3246 = vmatprep.subr.bf16.mxu1 %v3245_v32  ;;  %566 = vmatprep.mubr.f32.mxu0 %v469_v50  ;;  %v433_v21 = vld [vmem:[#allocation5 + $0x328] sm:$0xff]  ;;  %v3259_v27 = vpack.c.bf16 %v401_v18, %v400_v17  ;;  %v402_v30 = vld [vmem:[#allocation5 + $0x230] sm:$0xff]  ;;  %v403_v31 = vld [vmem:[#allocation5 + $0x238] sm:$0xff]  ;;  %v3293_v33 = vpack.c.bf16 %v451_v26, %v450_v25 }
  0x9d   : > { %636 = vmatprep.mubr.f32.mxu1 %v477_v51  ;;  %v3291_v28 = vpack.c.bf16 %v433_v21, %v432_v19  ;;  %v434_v32 = vld [vmem:[#allocation5 + $0x330] sm:$0xff]  ;;  %v435_v34 = vld [vmem:[#allocation5 + $0x338] sm:$0xff]  ;;  %v420_v37 = vld [vmem:[#allocation5 + $0x2c0] sm:$0xff] }
  0x9e   : > { %3216 = vmatpush3.bf16.msra.mxu0 %v3215_v42  ;;  %v421_v39 = vld [vmem:[#allocation5 + $0x2c8] sm:$0xff]  ;;  %v452_v40 = vld [vmem:[#allocation5 + $0x3c0] sm:$0xff]  ;;  %v3263_v42 = vpack.c.bf16 %v403_v31, %v402_v30  ;;  %v3295_v44 = vpack.c.bf16 %v435_v34, %v434_v32  ;;  %v423_v54 = vld [vmem:[#allocation5 + $0x2d8] sm:$0xff]  ;;  %v4280_v31 = vsub.s32 6, %v4242_v24 }
  0x9f   : > { %3248 = vmatpush3.bf16.msra.mxu1 %v3247_v45  ;;  %3250 = vmatprep.subr.bf16.mxu0 %v3249_v52  ;;  %v453_v41 = vld [vmem:[#allocation5 + $0x3c8] sm:$0xff]  ;;  %v3265_v45 = vpack.c.bf16 %v421_v39, %v420_v37  ;;  %v404_v47 = vld [vmem:[#allocation5 + $0x240] sm:$0xff]  ;;  %v454_v55 = vld [vmem:[#allocation5 + $0x3d0] sm:$0xff] }
  0xa0   : > { %3282 = vmatprep.subr.bf16.mxu1 %v3281_v53  ;;  %v405_v48 = vld [vmem:[#allocation5 + $0x248] sm:$0xff]  ;;  %v436_v50 = vld [vmem:[#allocation5 + $0x340] sm:$0xff]  ;;  %v3297_v51 = vpack.c.bf16 %v453_v41, %v452_v40  ;;  %v422_v53 = vld [vmem:[#allocation5 + $0x2d0] sm:$0xff]  ;;  %v489_v34 = vrot.slane %v4256_v46, %v4280_v31 }
  0xa1   : > { %567 = vmatmul.mubr.f32.vlgmr.msra.gmra.mrb[0].mxu0 %v465_v57  ;;  %v437_v52 = vld [vmem:[#allocation5 + $0x348] sm:$0xff]  ;;  %v455_v56 = vld [vmem:[#allocation5 + $0x3d8] sm:$0xff]  ;;  %v3267_v57 = vpack.c.bf16 %v405_v48, %v404_v47  ;;  %v3269_v59 = vpack.c.bf16 %v423_v54, %v422_v53  ;;  %v424_v3 = vld [vmem:[#allocation5 + $0x2e0] sm:$0xff] }
  0xa2   : > { %637 = vmatmul.mubr.f32.vlgmr.msra.gmra.mrb[0].mxu1 %v473_v61  ;;  %3252 = vmatpush3.bf16.msra.mxu0 %v3251_v62  ;;  %v3299_v58 = vpack.c.bf16 %v437_v52, %v436_v50  ;;  %v406_v61 = vld [vmem:[#allocation5 + $0x250] sm:$0xff]  ;;  %v407_v62 = vld [vmem:[#allocation5 + $0x258] sm:$0xff]  ;;  %v425_v4 = vld [vmem:[#allocation5 + $0x2e8] sm:$0xff] }
  0xa3   : > { %3284 = vmatpush3.bf16.msra.mxu1 %v3283_v0  ;;  %3254 = vmatprep.subr.bf16.mxu0 %v3253_v1  ;;  %v438_v0 = vld [vmem:[#allocation5 + $0x350] sm:$0xff]  ;;  %v3301_v1 = vpack.c.bf16 %v455_v56, %v454_v55  ;;  %v439_v2 = vld [vmem:[#allocation5 + $0x358] sm:$0xff]  ;;  %v457_v6 = vld [vmem:[#allocation5 + $0x3e8] sm:$0xff]  ;;  %v3271_v7 = vpack.c.bf16 %v407_v62, %v406_v61 }
  0xa4   : > { %3286 = vmatprep.subr.bf16.mxu1 %v3285_v5  ;;  %706 = vmatprep.mubr.f32.mxu0 %v485_v9  ;;  %v456_v5 = vld [vmem:[#allocation5 + $0x3e0] sm:$0xff]  ;;  %v3303_v8 = vpack.c.bf16 %v439_v2, %v438_v0  ;;  %v3273_v9 = vpack.c.bf16 %v425_v4, %v424_v3  ;;  %v409_v11 = vld [vmem:[#allocation5 + $0x268] sm:$0xff]  ;;  %v427_v17 = vld [vmem:[#allocation5 + $0x2f8] sm:$0xff] }
  0xa5   : > { %776 = vmatprep.mubr.f32.mxu1 %v493_v13  ;;  %v408_v10 = vld [vmem:[#allocation5 + $0x260] sm:$0xff]  ;;  %v458_v18 = vld [vmem:[#allocation5 + $0x3f0] sm:$0xff]  ;;  %v459_v19 = vld [vmem:[#allocation5 + $0x3f8] sm:$0xff] }
  0xa6   : > { %3256 = vmatpush3.bf16.msra.mxu0 %v3255_v14  ;;  %v440_v13 = vld [vmem:[#allocation5 + $0x360] sm:$0xff]  ;;  %v3305_v14 = vpack.c.bf16 %v457_v6, %v456_v5  ;;  %v410_v23 = vld [vmem:[#allocation5 + $0x270] sm:$0xff]  ;;  %v411_v25 = vld [vmem:[#allocation5 + $0x278] sm:$0xff]  ;;  %v3309_v26 = vpack.c.bf16 %v459_v19, %v458_v18 }
  0xa7   : > { %3288 = vmatpush3.bf16.msra.mxu1 %v3287_v15  ;;  %3258 = vmatprep.subr.bf16.mxu0 %v3257_v16  ;;  %v441_v15 = vld [vmem:[#allocation5 + $0x368] sm:$0xff]  ;;  %v426_v16 = vld [vmem:[#allocation5 + $0x2f0] sm:$0xff]  ;;  %v3279_v30 = vpack.c.bf16 %v411_v25, %v410_v23  ;;  %v809_v37 = vld [vmem:[#allocation7 + $0x80] sm:$0xff] }
  0xa8   : > { %3290 = vmatprep.subr.bf16.mxu1 %v3289_v20  ;;  %v3275_v20 = vpack.c.bf16 %v409_v11, %v408_v10  ;;  %v3307_v21 = vpack.c.bf16 %v441_v15, %v440_v13  ;;  %v3277_v22 = vpack.c.bf16 %v427_v17, %v426_v16  ;;  %v810_v39 = vld [vmem:[#allocation7 + $0x88] sm:$0xff]  ;;  %v841_v40 = vld [vmem:[#allocation7 + $0x180] sm:$0xff]  ;;  %v811_v52 = vld [vmem:[#allocation7 + $0x90] sm:$0xff] }
  0xa9   : > { %v3313_v41 = vpack.c.bf16 %v810_v39, %v809_v37  ;;  %v825_v50 = vld [vmem:[#allocation7 + $0x100] sm:$0xff]  ;;  %v812_v54 = vld [vmem:[#allocation7 + $0x98] sm:$0xff]  ;;  %v843_v55 = vld [vmem:[#allocation7 + $0x190] sm:$0xff] }
  0xaa   : > { %3260 = vmatpush3.bf16.msra.mxu0 %v3259_v27  ;;  %v442_v27 = vld [vmem:[#allocation5 + $0x370] sm:$0xff]  ;;  %v3317_v56 = vpack.c.bf16 %v812_v54, %v811_v52  ;;  %v828_v0 = vld [vmem:[#allocation7 + $0x118] sm:$0xff]  ;;  %v814_v2 = vld [vmem:[#allocation7 + $0xa8] sm:$0xff] }
  0xab   : > { %3292 = vmatpush3.bf16.msra.mxu1 %v3291_v28  ;;  %3262 = vmatprep.subr.bf16.mxu0 %v3261_v29  ;;  %v443_v28 = vld [vmem:[#allocation5 + $0x378] sm:$0xff]  ;;  %v4277_v29 = vsub.s32 4, %v4242_v24  ;;  %v827_v61 = vld [vmem:[#allocation7 + $0x110] sm:$0xff]  ;;  %v845_v5 = vld [vmem:[#allocation7 + $0x1a0] sm:$0xff] }
  0xac   : > { %3294 = vmatprep.subr.bf16.mxu1 %v3293_v33  ;;  %v3311_v32 = vpack.c.bf16 %v443_v28, %v442_v27  ;;  %v3351_v3 = vpack.c.bf16 %v828_v0, %v827_v61  ;;  %v846_v6 = vld [vmem:[#allocation7 + $0x1a8] sm:$0xff]  ;;  %v829_v10 = vld [vmem:[#allocation7 + $0x120] sm:$0xff]  ;;  %v815_v15 = vld [vmem:[#allocation7 + $0xb0] sm:$0xff] }
  0xad   : > { %v481_v33 = vrot.slane %v4256_v46, %v4277_v29  ;;  %v844_v46 = vld [vmem:[#allocation7 + $0x198] sm:$0xff]  ;;  %v830_v11 = vld [vmem:[#allocation7 + $0x128] sm:$0xff]  ;;  %v847_v17 = vld [vmem:[#allocation7 + $0x1b0] sm:$0xff] }
  0xae   : > { %3264 = vmatpush3.bf16.msra.mxu0 %v3263_v42  ;;  %v842_v42 = vld [vmem:[#allocation7 + $0x188] sm:$0xff]  ;;  %v816_v16 = vld [vmem:[#allocation7 + $0xb8] sm:$0xff]  ;;  %v831_v25 = vld [vmem:[#allocation7 + $0x130] sm:$0xff] }
  0xaf   : > { %3296 = vmatpush3.bf16.msra.mxu1 %v3295_v44  ;;  %3266 = vmatprep.subr.bf16.mxu0 %v3265_v45  ;;  %v793_v44 = vld [vmem:[#allocation7] sm:$0xff]  ;;  %v794_v45 = vld [vmem:[#allocation7 + $0x8] sm:$0xff]  ;;  %v3345_v47 = vpack.c.bf16 %v842_v42, %v841_v40  ;;  %v3325_v18 = vpack.c.bf16 %v816_v16, %v815_v15  ;;  %v848_v19 = vld [vmem:[#allocation7 + $0x1b8] sm:$0xff] }
  0xb0   : > { %3298 = vmatprep.subr.bf16.mxu1 %v3297_v51  ;;  %v3315_v48 = vpack.c.bf16 %v794_v45, %v793_v44  ;;  %v826_v51 = vld [vmem:[#allocation7 + $0x108] sm:$0xff]  ;;  %v817_v28 = vld [vmem:[#allocation7 + $0xc0] sm:$0xff]  ;;  %v852_v52 = vld [vmem:[#allocation7 + $0x1d8] sm:$0xff] }
  0xb1   : > { %v3347_v53 = vpack.c.bf16 %v826_v51, %v825_v50  ;;  %v801_v37 = vld [vmem:[#allocation7 + $0x40] sm:$0xff]  ;;  %v802_v39 = vld [vmem:[#allocation7 + $0x48] sm:$0xff]  ;;  %v851_v50 = vld [vmem:[#allocation7 + $0x1d0] sm:$0xff] }
  0xb2   : > { %3268 = vmatpush3.bf16.msra.mxu0 %v3267_v57  ;;  %v3349_v57 = vpack.c.bf16 %v844_v46, %v843_v55  ;;  %v833_v42 = vld [vmem:[#allocation7 + $0x140] sm:$0xff]  ;;  %v834_v44 = vld [vmem:[#allocation7 + $0x148] sm:$0xff]  ;;  %v804_v54 = vld [vmem:[#allocation7 + $0x58] sm:$0xff]  ;;  %v3365_v55 = vpack.c.bf16 %v852_v52, %v851_v50 }
  0xb3   : > { %3300 = vmatpush3.bf16.msra.mxu1 %v3299_v58  ;;  %3270 = vmatprep.subr.bf16.mxu0 %v3269_v59  ;;  %v795_v58 = vld [vmem:[#allocation7 + $0x10] sm:$0xff]  ;;  %v796_v59 = vld [vmem:[#allocation7 + $0x18] sm:$0xff]  ;;  %v3363_v45 = vpack.c.bf16 %v834_v44, %v833_v42  ;;  %v821_v61 = vld [vmem:[#allocation7 + $0xe0] sm:$0xff] }
  0xb4   : > { %3302 = vmatprep.subr.bf16.mxu1 %v3301_v1  ;;  %v3319_v62 = vpack.c.bf16 %v796_v59, %v795_v58  ;;  %v813_v1 = vld [vmem:[#allocation7 + $0xa0] sm:$0xff]  ;;  %v4030_v58 = vmov 0.0   ;;  %v856_v15 = vld [vmem:[#allocation7 + $0x1f8] sm:$0xff]  ;;  %v807_v16 = vld [vmem:[#allocation7 + $0x70] sm:$0xff] }
  0xb5   : > { %v3321_v4 = vpack.c.bf16 %v814_v2, %v813_v1  ;;  %2587 = vst [vmem:[%s4224_s7 + $0x5] sm:$0x7] %v4030_v58  ;;  %v853_v0 = vld [vmem:[#allocation7 + $0x1e0] sm:$0xff]  ;;  %v854_v2 = vld [vmem:[#allocation7 + $0x1e8] sm:$0xff]  ;;  %v875_v63 = vld [vmem:[#allocation7 + $0x290] sm:$0xff] }
  0xb6   : > { %3272 = vmatpush3.bf16.msra.mxu0 %v3271_v7  ;;  %v797_v7 = vld [vmem:[#allocation7 + $0x20] sm:$0xff] }
  0xb7   : > { %3304 = vmatpush3.bf16.msra.mxu1 %v3303_v8  ;;  %3274 = vmatprep.subr.bf16.mxu0 %v3273_v9  ;;  %v3353_v8 = vpack.c.bf16 %v846_v6, %v845_v5  ;;  %v798_v9 = vld [vmem:[#allocation7 + $0x28] sm:$0xff]  ;;  %v3369_v5 = vpack.c.bf16 %v854_v2, %v853_v0 }
  0xb8   : > { %3306 = vmatprep.subr.bf16.mxu1 %v3305_v14  ;;  %v3323_v13 = vpack.c.bf16 %v798_v9, %v797_v7  ;;  %v3355_v14 = vpack.c.bf16 %v830_v11, %v829_v10  ;;  %v837_v7 = vld [vmem:[#allocation7 + $0x160] sm:$0xff]  ;;  %v823_v10 = vld [vmem:[#allocation7 + $0xf0] sm:$0xff]  ;;  %v824_v11 = vld [vmem:[#allocation7 + $0xf8] sm:$0xff] }
  0xb9   : > { %v858_v2 = vld [vmem:[#allocation7 + $0x208] sm:$0xff] }
  0xba   : > { %3276 = vmatpush3.bf16.msra.mxu0 %v3275_v20  ;;  %v799_v20 = vld [vmem:[#allocation7 + $0x30] sm:$0xff] }
  0xbb   : > { %3308 = vmatpush3.bf16.msra.mxu1 %v3307_v21  ;;  %3278 = vmatprep.subr.bf16.mxu0 %v3277_v22  ;;  %v800_v21 = vld [vmem:[#allocation7 + $0x38] sm:$0xff]  ;;  %v3357_v22 = vpack.c.bf16 %v848_v19, %v847_v17 }
  0xbc   : > { %3310 = vmatprep.subr.bf16.mxu1 %v3309_v26  ;;  %v3327_v23 = vpack.c.bf16 %v800_v21, %v799_v20  ;;  %v832_v26 = vld [vmem:[#allocation7 + $0x138] sm:$0xff]  ;;  %v839_v20 = vld [vmem:[#allocation7 + $0x170] sm:$0xff] }
  0xbd   : > { %v3359_v27 = vpack.c.bf16 %v832_v26, %v831_v25  ;;  %v808_v17 = vld [vmem:[#allocation7 + $0x78] sm:$0xff]  ;;  %v874_v25 = vld [vmem:[#allocation7 + $0x288] sm:$0xff]  ;;  %v905_v26 = vld [vmem:[#allocation7 + $0x380] sm:$0xff] }
  0xbe   : > { %3280 = vmatpush3.bf16.msra.mxu0 %v3279_v30  ;;  %v818_v30 = vld [vmem:[#allocation7 + $0xc8] sm:$0xff]  ;;  %v3343_v19 = vpack.c.bf16 %v808_v17, %v807_v16  ;;  %v840_v21 = vld [vmem:[#allocation7 + $0x178] sm:$0xff]  ;;  %v859_v16 = vld [vmem:[#allocation7 + $0x210] sm:$0xff] }
  0xbf   : > { %3312 = vmatpush3.bf16.msra.mxu1 %v3311_v32  ;;  %3314 = vmatprep.subr.bf16.mxu0 %v3313_v41  ;;  %v849_v32 = vld [vmem:[#allocation7 + $0x1c0] sm:$0xff]  ;;  %v3331_v41 = vpack.c.bf16 %v802_v39, %v801_v37  ;;  %v860_v17 = vld [vmem:[#allocation7 + $0x218] sm:$0xff] }
  0xc0   : > { %3346 = vmatprep.subr.bf16.mxu1 %v3345_v47  ;;  %v819_v47 = vld [vmem:[#allocation7 + $0xd0] sm:$0xff] }
  0xc1   : > { %707 = vmatmul.mubr.f32.vlgmr.msra.gmra.mrb[2].mxu0 %v481_v33  ;;  %v3329_v33 = vpack.c.bf16 %v818_v30, %v817_v28  ;;  %v906_v28 = vld [vmem:[#allocation7 + $0x388] sm:$0xff] }
  0xc2   : > { %777 = vmatmul.mubr.f32.vlgmr.msra.gmra.mrb[2].mxu1 %v489_v34  ;;  %3316 = vmatpush3.bf16.msra.mxu0 %v3315_v48  ;;  %v850_v34 = vld [vmem:[#allocation7 + $0x1c8] sm:$0xff]  ;;  %v820_v48 = vld [vmem:[#allocation7 + $0xd8] sm:$0xff]  ;;  %v3409_v30 = vpack.c.bf16 %v906_v28, %v905_v26 }
  0xc3   : > { %3348 = vmatpush3.bf16.msra.mxu1 %v3347_v53  ;;  %3318 = vmatprep.subr.bf16.mxu0 %v3317_v56  ;;  %v3361_v40 = vpack.c.bf16 %v850_v34, %v849_v32  ;;  %v3333_v51 = vpack.c.bf16 %v820_v48, %v819_v47  ;;  %v803_v53 = vld [vmem:[#allocation7 + $0x50] sm:$0xff]  ;;  %v910_v26 = vld [vmem:[#allocation7 + $0x3a8] sm:$0xff] }
  0xc4   : > { %3350 = vmatprep.subr.bf16.mxu1 %v3349_v57  ;;  %v3335_v46 = vpack.c.bf16 %v804_v54, %v803_v53  ;;  %v835_v56 = vld [vmem:[#allocation7 + $0x150] sm:$0xff]  ;;  %v836_v57 = vld [vmem:[#allocation7 + $0x158] sm:$0xff] }
  0xc5   : > { %v3367_v59 = vpack.c.bf16 %v836_v57, %v835_v56  ;;  %v1251_v32 = vld [vmem:[#allocation2 + $0x5] sm:$0x1] }
  0xc6   : > { %3320 = vmatpush3.bf16.msra.mxu0 %v3319_v62  ;;  %v822_v62 = vld [vmem:[#allocation7 + $0xe8] sm:$0xff] }
  0xc7   : > { %3352 = vmatpush3.bf16.msra.mxu1 %v3351_v3  ;;  %3322 = vmatprep.subr.bf16.mxu0 %v3321_v4  ;;  %v3337_v1 = vpack.c.bf16 %v822_v62, %v821_v61  ;;  %v805_v3 = vld [vmem:[#allocation7 + $0x60] sm:$0xff]  ;;  %v806_v4 = vld [vmem:[#allocation7 + $0x68] sm:$0xff] }
  0xc8   : > { %3354 = vmatprep.subr.bf16.mxu1 %v3353_v8  ;;  %v3339_v6 = vpack.c.bf16 %v806_v4, %v805_v3  ;;  %v838_v8 = vld [vmem:[#allocation7 + $0x168] sm:$0xff]  ;;  %v889_v3 = vld [vmem:[#allocation7 + $0x300] sm:$0xff] }
  0xc9   : > { %v3371_v9 = vpack.c.bf16 %v838_v8, %v837_v7  ;;  %v890_v4 = vld [vmem:[#allocation7 + $0x308] sm:$0xff] }
  0xca   : > { %3324 = vmatpush3.bf16.msra.mxu0 %v3323_v13  ;;  %v855_v13 = vld [vmem:[#allocation7 + $0x1f0] sm:$0xff]  ;;  %v3411_v8 = vpack.c.bf16 %v890_v4, %v889_v3  ;;  %v866_v3 = vld [vmem:[#allocation7 + $0x248] sm:$0xff] }
  0xcb   : > { %3356 = vmatpush3.bf16.msra.mxu1 %v3355_v14  ;;  %3326 = vmatprep.subr.bf16.mxu0 %v3325_v18  ;;  %v3341_v14 = vpack.c.bf16 %v824_v11, %v823_v10  ;;  %v3373_v18 = vpack.c.bf16 %v856_v15, %v855_v13  ;;  %v908_v10 = vld [vmem:[#allocation7 + $0x398] sm:$0xff] }
  0xcc   : > { %3358 = vmatprep.subr.bf16.mxu1 %v3357_v22  ;;  %v3375_v22 = vpack.c.bf16 %v840_v21, %v839_v20  ;;  %v877_v20 = vld [vmem:[#allocation7 + $0x2a0] sm:$0xff] }
  0xce   : > { %3328 = vmatpush3.bf16.msra.mxu0 %v3327_v23  ;;  %v873_v23 = vld [vmem:[#allocation7 + $0x280] sm:$0xff] }
  0xcf   : > { %3360 = vmatpush3.bf16.msra.mxu1 %v3359_v27  ;;  %3330 = vmatprep.subr.bf16.mxu0 %v3329_v33  ;;  %v3377_v27 = vpack.c.bf16 %v874_v25, %v873_v23  ;;  %v1252_v33 = vld [vmem:[#allocation4] sm:$0x1]  ;;  %v878_v23 = vld [vmem:[#allocation7 + $0x2a8] sm:$0xff]  ;;  %v909_v25 = vld [vmem:[#allocation7 + $0x3a0] sm:$0xff] }
  0xd0   : > { %3362 = vmatprep.subr.bf16.mxu1 %v3361_v40  ;;  %v1253_v34 = vmul.f32 0.99, %v1252_v33  ;;  %v861_v33 = vld [vmem:[#allocation7 + $0x220] sm:$0xff] }
  0xd2   : > { %3332 = vmatpush3.bf16.msra.mxu0 %v3331_v41  ;;  %v1254_v37 = vadd.f32 %v1253_v34, %v1251_v32  ;;  %v862_v34 = vld [vmem:[#allocation7 + $0x228] sm:$0xff] }
  0xd3   : > { %3364 = vmatpush3.bf16.msra.mxu1 %v3363_v45  ;;  %3334 = vmatprep.subr.bf16.mxu0 %v3333_v51 }
  0xd4   : > { %3366 = vmatprep.subr.bf16.mxu1 %v3365_v55  ;;  %1256 = vxpose.xlu0.b32.start.end [1/1] (short) (narrow) %v1254_v37, 8  ;;  %1255 = vst [vmem:[#allocation4] sm:$0x1] %v1254_v37  ;;  %v3385_v37 = vpack.c.bf16 %v878_v23, %v877_v20  ;;  %v900_v20 = vld [vmem:[#allocation7 + $0x358] sm:$0xff]  ;;  %v917_v23 = vld [vmem:[#allocation7 + $0x3e0] sm:$0xff] }
  0xd6   : > { %3336 = vmatpush3.bf16.msra.mxu0 %v3335_v46  ;;  %v782_v46 = vld [vmem:[#allocation3 + $0x2] sm:$0x1] }
  0xd7   : > { %3368 = vmatpush3.bf16.msra.mxu1 %v3367_v59  ;;  %3338 = vmatprep.subr.bf16.mxu0 %v3337_v1  ;;  %v857_v1 = vld [vmem:[#allocation7 + $0x200] sm:$0xff] }
  0xd8   : > { %3370 = vmatprep.subr.bf16.mxu1 %v3369_v5  ;;  %v876_v5 = vld [vmem:[#allocation7 + $0x298] sm:$0xff]  ;;  %v3379_v7 = vpack.c.bf16 %v858_v2, %v857_v1  ;;  %v865_v2 = vld [vmem:[#allocation7 + $0x240] sm:$0xff] }
  0xd9   : > { %v3381_v21 = vpack.c.bf16 %v876_v5, %v875_v63  ;;  %v897_v5 = vld [vmem:[#allocation7 + $0x340] sm:$0xff] }
  0xda   : > { %3340 = vmatpush3.bf16.msra.mxu0 %v3339_v6 }
  0xdb   : > { %3372 = vmatpush3.bf16.msra.mxu1 %v3371_v9  ;;  %3342 = vmatprep.subr.bf16.mxu0 %v3341_v14  ;;  %v907_v9 = vld [vmem:[#allocation7 + $0x390] sm:$0xff] }
  0xdc   : > { %3374 = vmatprep.subr.bf16.mxu1 %v3373_v18  ;;  %v891_v18 = vld [vmem:[#allocation7 + $0x310] sm:$0xff] }
  0xde   : > { %3344 = vmatpush3.bf16.msra.mxu0 %v3343_v19  ;;  %v892_v19 = vld [vmem:[#allocation7 + $0x318] sm:$0xff] }
  0xdf   : > { %3376 = vmatpush3.bf16.msra.mxu1 %v3375_v22  ;;  %3378 = vmatprep.subr.bf16.mxu0 %v3377_v27  ;;  %v3413_v22 = vpack.c.bf16 %v908_v10, %v907_v9  ;;  %v3415_v32 = vpack.c.bf16 %v892_v19, %v891_v18  ;;  %v884_v9 = vld [vmem:[#allocation7 + $0x2d8] sm:$0xff]  ;;  %v915_v10 = vld [vmem:[#allocation7 + $0x3d0] sm:$0xff] }
  0xe0   : > { %3410 = vmatprep.subr.bf16.mxu1 %v3409_v30  ;;  %v3383_v30 = vpack.c.bf16 %v860_v17, %v859_v16  ;;  %v868_v16 = vld [vmem:[#allocation7 + $0x258] sm:$0xff]  ;;  %v899_v19 = vld [vmem:[#allocation7 + $0x350] sm:$0xff] }
 0x174   : > { %v2777_v39 = vpop.f32.mrb[0].mxu0 }
 0x175   : > { %v2812_v40 = vpop.f32.mrb[0].mxu1  ;;  %v2778_v41 = vpop.f32.mrb[1].mxu0 }
 0x176   : > { %v2779_v42 = vadd.f32 %v2778_v41, %v2777_v39  ;;  %v2813_v44 = vpop.f32.mrb[1].mxu1  ;;  %v3417_v39 = vpack.c.bf16 %v910_v26, %v909_v25  ;;  %v894_v41 = vld [vmem:[#allocation7 + $0x328] sm:$0xff] }
 0x177   : > { %v2814_v45 = vadd.f32 %v2813_v44, %v2812_v40  ;;  %v893_v40 = vld [vmem:[#allocation7 + $0x320] sm:$0xff]  ;;  %v880_v44 = vld [vmem:[#allocation7 + $0x2b8] sm:$0xff]  ;;  %v918_v25 = vld [vmem:[#allocation7 + $0x3e8] sm:$0xff] }
 0x179   : > { %v639_v47 = vadd.f32 %v2814_v45, %v2779_v42  ;;  %v879_v42 = vld [vmem:[#allocation7 + $0x2b0] sm:$0xff] }
 0x17a   : > { %v911_v45 = vld [vmem:[#allocation7 + $0x3b0] sm:$0xff] }
 0x194   : > { %v2847_v48 = vpop.f32.mrb[2].mxu0 }
 0x195   : > { %v2848_v50 = vpop.f32.mrb[3].mxu0  ;;  %v2882_v51 = vpop.f32.mrb[2].mxu1 }
 0x196   : > { %v2849_v52 = vadd.f32 %v2848_v50, %v2847_v48  ;;  %v2883_v53 = vpop.f32.mrb[3].mxu1  ;;  %v3387_v48 = vpack.c.bf16 %v862_v34, %v861_v33  ;;  %v3419_v50 = vpack.c.bf16 %v894_v41, %v893_v40  ;;  %v3433_v33 = vpack.c.bf16 %v918_v25, %v917_v23  ;;  %v901_v34 = vld [vmem:[#allocation7 + $0x360] sm:$0xff]  ;;  %v888_v40 = vld [vmem:[#allocation7 + $0x2f8] sm:$0xff]  ;;  %v919_v41 = vld [vmem:[#allocation7 + $0x3f0] sm:$0xff] }
 0x197   : > { %v2884_v54 = vadd.f32 %v2883_v53, %v2882_v51  ;;  %v863_v51 = vld [vmem:[#allocation7 + $0x230] sm:$0xff]  ;;  %v3389_v53 = vpack.c.bf16 %v880_v44, %v879_v42  ;;  %v920_v42 = vld [vmem:[#allocation7 + $0x3f8] sm:$0xff]  ;;  %v1384_v23 = vld [vmem:[#allocation9 + $0x80] sm:$0xff] }
 0x198   : > { %v709_v55 = vadd.f32 %v2849_v52, %v639_v47  ;;  %v912_v47 = vld [vmem:[#allocation7 + $0x3b8] sm:$0xff] }
 0x199   : > { %v864_v52 = vld [vmem:[#allocation7 + $0x238] sm:$0xff] }
 0x19a   : > { %v779_v56 = vadd.f32 %v2884_v54, %v709_v55  ;;  %v3421_v54 = vpack.c.bf16 %v912_v47, %v911_v45  ;;  %v895_v55 = vld [vmem:[#allocation7 + $0x330] sm:$0xff] }
 0x19b   : > { %v871_v47 = vld [vmem:[#allocation7 + $0x270] sm:$0xff] }
 0x19c   : > { %v783_v57 = vadd.f32 %v782_v46, %v779_v56  ;;  %v896_v46 = vld [vmem:[#allocation7 + $0x338] sm:$0xff]  ;;  %v881_v56 = vld [vmem:[#allocation7 + $0x2c0] sm:$0xff] }
 0x19d   : > { %v3423_v1 = vpack.c.bf16 %v896_v46, %v895_v55  ;;  %v1371_v55 = vld [vmem:[#allocation9 + $0x18] sm:$0xff] }
 0x19e   : > { %vm784_vm2 = vcmp.gt.f32.partialorder %v783_v57, 0.5 }
 0x19f   : > { %v2732_v61 = vsel %vm784_vm2, 1.0, %v4030_v58 }
 0x1a0   : > { %v787_v62 = vsub.f32 1.0, %v2732_v61  ;;  %792 = vst.msk [vmem:[#allocation2 + $0x2] sm:$0x1] %vm4289_vm1, %v2732_v61  ;;  %2580 = vst [vmem:[%s4224_s7] sm:$0x1] %v2732_v61  ;;  %v913_v61 = vld [vmem:[#allocation7 + $0x3c0] sm:$0xff] }
 0x1a2   : > { %v788_v0 = vmul.f32 %v787_v62, %v783_v57  ;;  %v882_v57 = vld [vmem:[#allocation7 + $0x2c8] sm:$0xff] }
 0x1a3   : > { %v914_v62 = vld [vmem:[#allocation7 + $0x3c8] sm:$0xff]  ;;  %v3393_v4 = vpack.c.bf16 %v882_v57, %v881_v56 }
 0x1a4   : > { %791 = vst.msk [vmem:[#allocation3 + $0x2] sm:$0x1] %vm4289_vm1, %v788_v0  ;;  %v3391_v0 = vpack.c.bf16 %v864_v52, %v863_v51  ;;  %v3425_v63 = vpack.c.bf16 %v914_v62, %v913_v61  ;;  %v872_v51 = vld [vmem:[#allocation7 + $0x278] sm:$0xff]  ;;  %v903_v52 = vld [vmem:[#allocation7 + $0x370] sm:$0xff]  ;;  %v1368_v61 = vld [vmem:[#allocation9] sm:$0xff] }
 0x1a5   : > { %v3407_v46 = vpack.c.bf16 %v872_v51, %v871_v47  ;;  %v1370_v62 = vld [vmem:[#allocation9 + $0x10] sm:$0xff]  ;;  %v1399_v47 = vld [vmem:[#allocation9 + $0xf8] sm:$0xff]  ;;  %v1396_v51 = vld [vmem:[#allocation9 + $0xe0] sm:$0xff] }
 0x1a7   : > { %v4299_v6 = vld [vmem:[#allocation2] sm:$0xff] }
 0x1a8   : > { %v930_v11 = vrot.slane %v4299_v6, %v4245_v35  ;;  %v938_v13 = vrot.slane %v4299_v6, %v4248_v36  ;;  %v926_v14 = vrot.slane %v4299_v6, %v4251_v38  ;;  %v934_v15 = vrot.slane %v4299_v6, %v4254_v43 }
 0x1a9   : > { %v946_v27 = vrot.slane %v4299_v6, %v4259_v49  ;;  %v954_v28 = vrot.slane %v4299_v6, %v4268_v60 }
 0x1aa   : > { %1027 = vmatprep.mubr.f32.mxu0 %v930_v11  ;;  %1097 = vmatprep.mubr.f32.mxu1 %v938_v13  ;;  %v916_v11 = vld [vmem:[#allocation7 + $0x3d8] sm:$0xff]  ;;  %v3395_v13 = vpack.c.bf16 %v866_v3, %v865_v2  ;;  %v3443_v2 = vpack.c.bf16 %v1370_v62, %v1368_v61  ;;  %v942_v3 = vrot.slane %v4299_v6, %v4277_v29  ;;  %v1405_v61 = vld [vmem:[#allocation9 + $0x128] sm:$0xff] }
 0x1ab   : > { %1028 = vmatmul.mubr.f32.vlgmr.msra.gmra.mrb[4].mxu0 %v926_v14  ;;  %1098 = vmatmul.mubr.f32.vlgmr.msra.gmra.mrb[4].mxu1 %v934_v15  ;;  %v867_v15 = vld [vmem:[#allocation7 + $0x250] sm:$0xff]  ;;  %v3429_v18 = vpack.c.bf16 %v916_v11, %v915_v10  ;;  %v1407_v62 = vld [vmem:[#allocation9 + $0x138] sm:$0xff] }
 0x1ac   : > { %3380 = vmatpush3.bf16.msra.mxu0 %v3379_v7  ;;  %3412 = vmatpush3.bf16.msra.mxu1 %v3411_v8  ;;  %v898_v7 = vld [vmem:[#allocation7 + $0x348] sm:$0xff]  ;;  %v883_v8 = vld [vmem:[#allocation7 + $0x2d0] sm:$0xff]  ;;  %v3399_v26 = vpack.c.bf16 %v868_v16, %v867_v15  ;;  %v1383_v16 = vld [vmem:[#allocation9 + $0x78] sm:$0xff] }
 0x1ad   : > { %1167 = vmatprep.mubr.f32.mxu0 %v946_v27  ;;  %1237 = vmatprep.mubr.f32.mxu1 %v954_v28  ;;  %v3427_v14 = vpack.c.bf16 %v898_v7, %v897_v5  ;;  %v3397_v17 = vpack.c.bf16 %v884_v9, %v883_v8  ;;  %v3431_v27 = vpack.c.bf16 %v900_v20, %v899_v19  ;;  %v869_v28 = vld [vmem:[#allocation7 + $0x260] sm:$0xff]  ;;  %v1374_v7 = vld [vmem:[#allocation9 + $0x30] sm:$0xff]  ;;  %v1377_v8 = vld [vmem:[#allocation9 + $0x48] sm:$0xff] }
 0x1ae   : > { %3382 = vmatprep.subr.bf16.mxu0 %v3381_v21  ;;  %3414 = vmatprep.subr.bf16.mxu1 %v3413_v22  ;;  %v885_v21 = vld [vmem:[#allocation7 + $0x2e0] sm:$0xff]  ;;  %v886_v22 = vld [vmem:[#allocation7 + $0x2e8] sm:$0xff]  ;;  %v1379_v9 = vld [vmem:[#allocation9 + $0x58] sm:$0xff] }
 0x1af   : > { %v1372_v5 = vld [vmem:[#allocation9 + $0x20] sm:$0xff]  ;;  %v3449_v11 = vpack.c.bf16 %v1379_v9, %v1377_v8  ;;  %v1382_v19 = vld [vmem:[#allocation9 + $0x70] sm:$0xff] }
 0x1b0   : > { %3384 = vmatpush3.bf16.msra.mxu0 %v3383_v30  ;;  %3416 = vmatpush3.bf16.msra.mxu1 %v3415_v32  ;;  %v870_v30 = vld [vmem:[#allocation7 + $0x268] sm:$0xff]  ;;  %v3401_v32 = vpack.c.bf16 %v886_v22, %v885_v21  ;;  %v3447_v10 = vpack.c.bf16 %v1374_v7, %v1372_v5  ;;  %v1387_v22 = vld [vmem:[#allocation9 + $0x98] sm:$0xff]  ;;  %v1408_v8 = vld [vmem:[#allocation9 + $0x140] sm:$0xff] }
 0x1b1   : > { %3386 = vmatprep.subr.bf16.mxu0 %v3385_v37  ;;  %3418 = vmatprep.subr.bf16.mxu1 %v3417_v39  ;;  %v902_v37 = vld [vmem:[#allocation7 + $0x368] sm:$0xff]  ;;  %v887_v39 = vld [vmem:[#allocation7 + $0x2f0] sm:$0xff]  ;;  %v3403_v44 = vpack.c.bf16 %v870_v30, %v869_v28  ;;  %v1391_v28 = vld [vmem:[#allocation9 + $0xb8] sm:$0xff] }
 0x1b2   : > { %v3435_v45 = vpack.c.bf16 %v902_v37, %v901_v34  ;;  %v1385_v21 = vld [vmem:[#allocation9 + $0x88] sm:$0xff]  ;;  %v1390_v34 = vld [vmem:[#allocation9 + $0xb0] sm:$0xff] }
 0x1b3   : > { %v3457_v25 = vpack.c.bf16 %v1387_v22, %v1385_v21  ;;  %v1393_v37 = vld [vmem:[#allocation9 + $0xc8] sm:$0xff]  ;;  %v1410_v9 = vld [vmem:[#allocation9 + $0x150] sm:$0xff] }
 0x1b4   : > { %3388 = vmatpush3.bf16.msra.mxu0 %v3387_v48  ;;  %3420 = vmatpush3.bf16.msra.mxu1 %v3419_v50  ;;  %v3405_v48 = vpack.c.bf16 %v888_v40, %v887_v39  ;;  %v3437_v50 = vpack.c.bf16 %v920_v42, %v919_v41  ;;  %v1395_v39 = vld [vmem:[#allocation9 + $0xd8] sm:$0xff]  ;;  %v1392_v42 = vld [vmem:[#allocation9 + $0xc0] sm:$0xff]  ;;  %v1418_v21 = vld [vmem:[#allocation9 + $0x190] sm:$0xff] }
 0x1b5   : > { %3390 = vmatprep.subr.bf16.mxu0 %v3389_v53  ;;  %3422 = vmatprep.subr.bf16.mxu1 %v3421_v54  ;;  %v904_v53 = vld [vmem:[#allocation7 + $0x378] sm:$0xff]  ;;  %v1369_v54 = vld [vmem:[#allocation9 + $0x8] sm:$0xff]  ;;  %v3465_v41 = vpack.c.bf16 %v1395_v39, %v1393_v37  ;;  %v1424_v37 = vld [vmem:[#allocation9 + $0x1c0] sm:$0xff] }
 0x1b6   : > { %v3439_v56 = vpack.c.bf16 %v904_v53, %v903_v52  ;;  %v3441_v57 = vpack.c.bf16 %v1371_v55, %v1369_v54  ;;  %v1398_v52 = vld [vmem:[#allocation9 + $0xf0] sm:$0xff]  ;;  %v1401_v53 = vld [vmem:[#allocation9 + $0x108] sm:$0xff]  ;;  %v1403_v54 = vld [vmem:[#allocation9 + $0x118] sm:$0xff] }
 0x1b7   : > { %v3471_v55 = vpack.c.bf16 %v1398_v52, %v1396_v51  ;;  %v1426_v39 = vld [vmem:[#allocation9 + $0x1d0] sm:$0xff] }
 0x1b8   : > { %3392 = vmatpush3.bf16.msra.mxu0 %v3391_v0  ;;  %3424 = vmatpush3.bf16.msra.mxu1 %v3423_v1  ;;  %v1373_v0 = vld [vmem:[#allocation9 + $0x28] sm:$0xff]  ;;  %v1375_v1 = vld [vmem:[#allocation9 + $0x38] sm:$0xff] }
 0x1b9   : > { %3394 = vmatprep.subr.bf16.mxu0 %v3393_v4  ;;  %3426 = vmatprep.subr.bf16.mxu1 %v3425_v63  ;;  %v950_v4 = vrot.slane %v4299_v6, %v4280_v31  ;;  %v3445_v63 = vpack.c.bf16 %v1375_v1, %v1373_v0  ;;  %v1381_v6 = vld [vmem:[#allocation9 + $0x68] sm:$0xff]  ;;  %v3477_v1 = vpack.c.bf16 %v1407_v62, %v1405_v61 }
 0x1bc   : > { %3396 = vmatpush3.bf16.msra.mxu0 %v3395_v13  ;;  %3428 = vmatpush3.bf16.msra.mxu1 %v3427_v14  ;;  %v1376_v13 = vld [vmem:[#allocation9 + $0x40] sm:$0xff]  ;;  %v1378_v14 = vld [vmem:[#allocation9 + $0x50] sm:$0xff] }
 0x1bd   : > { %3398 = vmatprep.subr.bf16.mxu0 %v3397_v17  ;;  %3430 = vmatprep.subr.bf16.mxu1 %v3429_v18  ;;  %v3451_v15 = vpack.c.bf16 %v1378_v14, %v1376_v13  ;;  %v3453_v17 = vpack.c.bf16 %v1383_v16, %v1381_v6  ;;  %v1380_v18 = vld [vmem:[#allocation9 + $0x60] sm:$0xff]  ;;  %v1415_v13 = vld [vmem:[#allocation9 + $0x178] sm:$0xff]  ;;  %v1414_v6 = vld [vmem:[#allocation9 + $0x170] sm:$0xff] }
 0x1be   : > { %v3455_v20 = vpack.c.bf16 %v1382_v19, %v1380_v18  ;;  %v1419_v18 = vld [vmem:[#allocation9 + $0x198] sm:$0xff] }
 0x1c0   : > { %3400 = vmatpush3.bf16.msra.mxu0 %v3399_v26  ;;  %3432 = vmatpush3.bf16.msra.mxu1 %v3431_v27  ;;  %v1386_v26 = vld [vmem:[#allocation9 + $0x90] sm:$0xff]  ;;  %v1389_v27 = vld [vmem:[#allocation9 + $0xa8] sm:$0xff] }
 0x1c1   : > { %3402 = vmatprep.subr.bf16.mxu0 %v3401_v32  ;;  %3434 = vmatprep.subr.bf16.mxu1 %v3433_v33  ;;  %v3459_v30 = vpack.c.bf16 %v1386_v26, %v1384_v23  ;;  %v3461_v32 = vpack.c.bf16 %v1391_v28, %v1389_v27  ;;  %v1388_v33 = vld [vmem:[#allocation9 + $0xa0] sm:$0xff]  ;;  %v1421_v23 = vld [vmem:[#allocation9 + $0x1a8] sm:$0xff]  ;;  %v1422_v28 = vld [vmem:[#allocation9 + $0x1b0] sm:$0xff] }
 0x1c2   : > { %v3463_v40 = vpack.c.bf16 %v1390_v34, %v1388_v33  ;;  %v1420_v27 = vld [vmem:[#allocation9 + $0x1a0] sm:$0xff]  ;;  %v1427_v33 = vld [vmem:[#allocation9 + $0x1d8] sm:$0xff] }
 0x1c4   : > { %3404 = vmatpush3.bf16.msra.mxu0 %v3403_v44  ;;  %3436 = vmatpush3.bf16.msra.mxu1 %v3435_v45  ;;  %v1394_v44 = vld [vmem:[#allocation9 + $0xd0] sm:$0xff]  ;;  %v1397_v45 = vld [vmem:[#allocation9 + $0xe8] sm:$0xff] }
 0x1c5   : > { %3406 = vmatprep.subr.bf16.mxu0 %v3405_v48  ;;  %3438 = vmatprep.subr.bf16.mxu1 %v3437_v50  ;;  %v3467_v48 = vpack.c.bf16 %v1394_v44, %v1392_v42  ;;  %v3469_v50 = vpack.c.bf16 %v1399_v47, %v1397_v45  ;;  %v1431_v42 = vld [vmem:[#allocation9 + $0x1f8] sm:$0xff]  ;;  %v1428_v45 = vld [vmem:[#allocation9 + $0x1e0] sm:$0xff]  ;;  %v1430_v47 = vld [vmem:[#allocation9 + $0x1f0] sm:$0xff] }
 0x1c8   : > { %3408 = vmatpush3.bf16.msra.mxu0 %v3407_v46  ;;  %3440 = vmatpush3.bf16.msra.mxu1 %v3439_v56  ;;  %v3473_v46 = vpack.c.bf16 %v1403_v54, %v1401_v53  ;;  %v1400_v56 = vld [vmem:[#allocation9 + $0x100] sm:$0xff] }
 0x1c9   : > { %3442 = vmatprep.subr.bf16.mxu0 %v3441_v57  ;;  %3172 = vmatprep.subr.mxu1 %v4030_v58  ;;  %v1402_v57 = vld [vmem:[#allocation9 + $0x110] sm:$0xff] }
 0x1ca   : > { %v3475_v0 = vpack.c.bf16 %v1402_v57, %v1400_v56 }
 0x1cb   : > { %1168 = vmatmul.mubr.f32.vlgmr.msra.gmra.mrb[6].mxu0 %v942_v3  ;;  %1238 = vmatmul.mubr.f32.vlgmr.msra.gmra.mrb[6].mxu1 %v950_v4  ;;  %v1406_v3 = vld [vmem:[#allocation9 + $0x130] sm:$0xff]  ;;  %v1409_v4 = vld [vmem:[#allocation9 + $0x148] sm:$0xff] }
 0x1cc   : > { %3444 = vmatpush1.bf16.msra.mxu0 %v3443_v2  ;;  %v1404_v2 = vld [vmem:[#allocation9 + $0x120] sm:$0xff]  ;;  %3174 = vmatprep.mubr.msk.f32.mxu1 %vm4031_vm3, %v4030_v58 }
 0x1cd   : > { %3446 = vmatprep.subr.bf16.mxu0 %v3445_v63  ;;  %v1411_v63 = vld [vmem:[#allocation9 + $0x158] sm:$0xff]  ;;  %v3479_v5 = vpack.c.bf16 %v1406_v3, %v1404_v2 }
 0x1ce   : > { %v3481_v7 = vpack.c.bf16 %v1411_v63, %v1409_v4  ;;  %v1243_v3 = vld [vmem:[#allocation3 + $0x3] sm:$0x1]  ;;  %v1977_v4 = vld [vmem:[#allocation4 + $0x1] sm:$0x1] }
 0x1d0   : > { %3448 = vmatpush1.bf16.msra.mxu0 %v3447_v10  ;;  %v3483_v10 = vpack.c.bf16 %v1410_v9, %v1408_v8  ;;  %v1432_v8 = vld [vmem:[#allocation9 + $0x200] sm:$0xff]  ;;  %v1434_v9 = vld [vmem:[#allocation9 + $0x210] sm:$0xff] }
 0x1d1   : > { %3450 = vmatprep.subr.bf16.mxu0 %v3449_v11  ;;  %v1413_v11 = vld [vmem:[#allocation9 + $0x168] sm:$0xff] }
 0x1d2   : > { %v3485_v14 = vpack.c.bf16 %v1415_v13, %v1413_v11  ;;  %v1978_v11 = vmul.f32 0.99, %v1977_v4  ;;  %v1437_v13 = vld [vmem:[#allocation9 + $0x228] sm:$0xff]  ;;  %v1456_v4 = vld [vmem:[#allocation9 + $0x2c0] sm:$0xff] }
 0x1d4   : > { %3452 = vmatpush1.bf16.msra.mxu0 %v3451_v15  ;;  %v1412_v15 = vld [vmem:[#allocation9 + $0x160] sm:$0xff] }
 0x1d5   : > { %3454 = vmatprep.subr.bf16.mxu0 %v3453_v17  ;;  %v3487_v16 = vpack.c.bf16 %v1414_v6, %v1412_v15  ;;  %v1417_v17 = vld [vmem:[#allocation9 + $0x188] sm:$0xff]  ;;  %v1272_v6 = vpop.trf.xlu0 }
 0x1d6   : > { %v3489_v19 = vpack.c.bf16 %v1419_v18, %v1417_v17 }
 0x1d8   : > { %3456 = vmatpush1.bf16.msra.mxu0 %v3455_v20  ;;  %v1416_v20 = vld [vmem:[#allocation9 + $0x180] sm:$0xff] }
 0x1d9   : > { %3458 = vmatprep.subr.bf16.mxu0 %v3457_v25  ;;  %v3491_v22 = vpack.c.bf16 %v1418_v21, %v1416_v20  ;;  %v1423_v25 = vld [vmem:[#allocation9 + $0x1b8] sm:$0xff]  ;;  %v1438_v20 = vld [vmem:[#allocation9 + $0x230] sm:$0xff] }
 0x1da   : > { %v3493_v26 = vpack.c.bf16 %v1423_v25, %v1421_v23  ;;  %v1441_v23 = vld [vmem:[#allocation9 + $0x248] sm:$0xff]  ;;  %v1443_v25 = vld [vmem:[#allocation9 + $0x258] sm:$0xff] }
 0x1dc   : > { %3460 = vmatpush1.bf16.msra.mxu0 %v3459_v30  ;;  %v3495_v30 = vpack.c.bf16 %v1422_v28, %v1420_v27  ;;  %v3513_v28 = vpack.c.bf16 %v1443_v25, %v1441_v23  ;;  %v1470_v23 = vld [vmem:[#allocation9 + $0x330] sm:$0xff]  ;;  %v1473_v25 = vld [vmem:[#allocation9 + $0x348] sm:$0xff] }
 0x1dd   : > { %3462 = vmatprep.subr.bf16.mxu0 %v3461_v32  ;;  %v1425_v32 = vld [vmem:[#allocation9 + $0x1c8] sm:$0xff] }
 0x1de   : > { %v3497_v34 = vpack.c.bf16 %v1427_v33, %v1425_v32  ;;  %v1442_v32 = vld [vmem:[#allocation9 + $0x250] sm:$0xff]  ;;  %v1445_v33 = vld [vmem:[#allocation9 + $0x268] sm:$0xff] }
 0x1e0   : > { %3464 = vmatpush1.bf16.msra.mxu0 %v3463_v40  ;;  %v3499_v40 = vpack.c.bf16 %v1426_v39, %v1424_v37 }
 0x1e1   : > { %3466 = vmatprep.subr.bf16.mxu0 %v3465_v41  ;;  %v1429_v41 = vld [vmem:[#allocation9 + $0x1e8] sm:$0xff] }
 0x1e2   : > { %v3501_v44 = vpack.c.bf16 %v1431_v42, %v1429_v41  ;;  %v1446_v41 = vld [vmem:[#allocation9 + $0x270] sm:$0xff] }
 0x1e4   : > { %3468 = vmatpush1.bf16.msra.mxu0 %v3467_v48  ;;  %v3503_v48 = vpack.c.bf16 %v1430_v47, %v1428_v45 }
 0x1e5   : > { %3470 = vmatprep.subr.bf16.mxu0 %v3469_v50 }
 0x1e8   : > { %3472 = vmatpush1.bf16.msra.mxu0 %v3471_v55 }
 0x1e9   : > { %3474 = vmatprep.subr.bf16.mxu0 %v3473_v46 }
 0x1ec   : > { %3476 = vmatpush1.bf16.msra.mxu0 %v3475_v0 }
 0x1ed   : > { %3478 = vmatprep.subr.bf16.mxu0 %v3477_v1 }
 0x1f0   : > { %3480 = vmatpush1.bf16.msra.mxu0 %v3479_v5  ;;  %v1433_v5 = vld [vmem:[#allocation9 + $0x208] sm:$0xff] }
 0x1f1   : > { %3482 = vmatprep.subr.bf16.mxu0 %v3481_v7  ;;  %v1435_v7 = vld [vmem:[#allocation9 + $0x218] sm:$0xff] }
 0x1f2   : > { %v3505_v15 = vpack.c.bf16 %v1435_v7, %v1433_v5  ;;  %v1461_v5 = vld [vmem:[#allocation9 + $0x2e8] sm:$0xff]  ;;  %v1463_v7 = vld [vmem:[#allocation9 + $0x2f8] sm:$0xff] }
 0x1f4   : > { %3484 = vmatpush1.bf16.msra.mxu0 %v3483_v10 }
 0x1f5   : > { %3486 = vmatprep.subr.bf16.mxu0 %v3485_v14  ;;  %v1439_v14 = vld [vmem:[#allocation9 + $0x238] sm:$0xff] }
 0x1f6   : > { %v3509_v18 = vpack.c.bf16 %v1439_v14, %v1437_v13  ;;  %v1465_v13 = vld [vmem:[#allocation9 + $0x308] sm:$0xff]  ;;  %v1467_v14 = vld [vmem:[#allocation9 + $0x318] sm:$0xff] }
 0x1f8   : > { %3488 = vmatpush1.bf16.msra.mxu0 %v3487_v16  ;;  %v3507_v16 = vpack.c.bf16 %v1434_v9, %v1432_v8  ;;  %v3533_v9 = vpack.c.bf16 %v1463_v7, %v1461_v5  ;;  %v1492_v7 = vld [vmem:[#allocation9 + $0x3e0] sm:$0xff] }
 0x1f9   : > { %3490 = vmatprep.subr.bf16.mxu0 %v3489_v19  ;;  %v1436_v19 = vld [vmem:[#allocation9 + $0x220] sm:$0xff] }
 0x1fa   : > { %v3511_v27 = vpack.c.bf16 %v1438_v20, %v1436_v19  ;;  %v1471_v19 = vld [vmem:[#allocation9 + $0x338] sm:$0xff] }
 0x1fc   : > { %3492 = vmatpush1.bf16.msra.mxu0 %v3491_v22 }
 0x1fd   : > { %3494 = vmatprep.subr.bf16.mxu0 %v3493_v26 }
 0x200   : > { %3496 = vmatpush1.bf16.msra.mxu0 %v3495_v30  ;;  %v1440_v30 = vld [vmem:[#allocation9 + $0x240] sm:$0xff] }
 0x201   : > { %3498 = vmatprep.subr.bf16.mxu0 %v3497_v34  ;;  %v1447_v34 = vld [vmem:[#allocation9 + $0x278] sm:$0xff]  ;;  %v3515_v37 = vpack.c.bf16 %v1442_v32, %v1440_v30  ;;  %v1472_v30 = vld [vmem:[#allocation9 + $0x340] sm:$0xff]  ;;  %v1474_v32 = vld [vmem:[#allocation9 + $0x350] sm:$0xff] }
 0x202   : > { %v3517_v47 = vpack.c.bf16 %v1447_v34, %v1445_v33  ;;  %v1477_v33 = vld [vmem:[#allocation9 + $0x368] sm:$0xff]  ;;  %v1479_v34 = vld [vmem:[#allocation9 + $0x378] sm:$0xff] }
 0x204   : > { %3500 = vmatpush1.bf16.msra.mxu0 %v3499_v40  ;;  %v1444_v40 = vld [vmem:[#allocation9 + $0x260] sm:$0xff] }
 0x205   : > { %3502 = vmatprep.subr.bf16.mxu0 %v3501_v44 }
 0x208   : > { %3504 = vmatpush1.bf16.msra.mxu0 %v3503_v48  ;;  %v1449_v48 = vld [vmem:[#allocation9 + $0x288] sm:$0xff] }
 0x27e   : > { %v2917_v50 = vpop.f32.mrb[4].mxu0  ;;  %v2952_v51 = vpop.f32.mrb[4].mxu1 }
 0x27f   : > { %v2918_v52 = vpop.f32.mrb[5].mxu0  ;;  %v2953_v53 = vpop.f32.mrb[5].mxu1 }
 0x280   : > { %v2919_v54 = vadd.f32 %v2918_v52, %v2917_v50  ;;  %v2954_v55 = vadd.f32 %v2953_v53, %v2952_v51  ;;  %v1451_v50 = vld [vmem:[#allocation9 + $0x298] sm:$0xff]  ;;  %v3519_v51 = vpack.c.bf16 %v1446_v41, %v1444_v40  ;;  %v1448_v53 = vld [vmem:[#allocation9 + $0x280] sm:$0xff]  ;;  %v3549_v40 = vpack.c.bf16 %v1479_v34, %v1477_v33 }
 0x281   : > { %v3521_v52 = vpack.c.bf16 %v1451_v50, %v1449_v48  ;;  %v1476_v41 = vld [vmem:[#allocation9 + $0x360] sm:$0xff]  ;;  %v1511_v33 = vld [vmem:[#allocation9 + $0x478] sm:$0xff] }
 0x282   : > { %v1100_v46 = vadd.f32 %v2954_v55, %v2919_v54  ;;  %v1450_v54 = vld [vmem:[#allocation9 + $0x290] sm:$0xff]  ;;  %v1453_v55 = vld [vmem:[#allocation9 + $0x2a8] sm:$0xff]  ;;  %v1480_v50 = vld [vmem:[#allocation9 + $0x380] sm:$0xff] }
 0x29e   : > { %v2987_v56 = vpop.f32.mrb[6].mxu0  ;;  %v3022_v57 = vpop.f32.mrb[6].mxu1 }
 0x29f   : > { %v2988_v61 = vpop.f32.mrb[7].mxu0  ;;  %v3023_v62 = vpop.f32.mrb[7].mxu1 }
 0x2a0   : > { %v2989_v0 = vadd.f32 %v2988_v61, %v2987_v56  ;;  %v3024_v1 = vadd.f32 %v3023_v62, %v3022_v57  ;;  %v3523_v56 = vpack.c.bf16 %v1450_v54, %v1448_v53  ;;  %v1452_v61 = vld [vmem:[#allocation9 + $0x2a0] sm:$0xff]  ;;  %v1454_v62 = vld [vmem:[#allocation9 + $0x2b0] sm:$0xff]  ;;  %v1487_v53 = vld [vmem:[#allocation9 + $0x3b8] sm:$0xff] }
 0x2a2   : > { %v1170_v2 = vadd.f32 %v2989_v0, %v1100_v46  ;;  %v1455_v46 = vld [vmem:[#allocation9 + $0x2b8] sm:$0xff]  ;;  %v1457_v0 = vld [vmem:[#allocation9 + $0x2c8] sm:$0xff] }
 0x2a3   : > { %v3525_v57 = vpack.c.bf16 %v1455_v46, %v1453_v55  ;;  %v1484_v46 = vld [vmem:[#allocation9 + $0x3a0] sm:$0xff] }
 0x2a4   : > { %v1240_v63 = vadd.f32 %v3024_v1, %v1170_v2  ;;  %v1459_v1 = vld [vmem:[#allocation9 + $0x2d8] sm:$0xff]  ;;  %v3527_v2 = vpack.c.bf16 %v1454_v62, %v1452_v61 }
 0x2a5   : > { %v1491_v61 = vld [vmem:[#allocation9 + $0x3d8] sm:$0xff] }
 0x2a6   : > { %v1244_v10 = vadd.f32 %v1243_v3, %v1240_v63  ;;  %v3529_v3 = vpack.c.bf16 %v1459_v1, %v1457_v0  ;;  %v1458_v63 = vld [vmem:[#allocation9 + $0x2d0] sm:$0xff]  ;;  %v1488_v1 = vld [vmem:[#allocation9 + $0x3c0] sm:$0xff] }
 0x2a7   : > { %v3531_v8 = vpack.c.bf16 %v1458_v63, %v1456_v4  ;;  %v1495_v4 = vld [vmem:[#allocation9 + $0x3f8] sm:$0xff] }
 0x2a8   : > { %vm1245_vm5 = vcmp.gt.f32.partialorder %v1244_v10, 0.5 }
 0x2a9   : > { %v2733_v17 = vsel %vm1245_vm5, 1.0, %v4030_v58 }
 0x2aa   : > { %v1248_v21 = vsub.f32 1.0, %v2733_v17  ;;  %3173 = vmatpush3.msk.msra.mxu1 %vm1292_vm4, %v2733_v17  ;;  %1367 = vst.msk [vmem:[#allocation2 + $0x3] sm:$0x1] %vm4289_vm1, %v2733_v17  ;;  %2581 = vst [vmem:[%s4224_s7 + $0x1] sm:$0x1] %v2733_v17  ;;  %v1979_v22 = vadd.f32 %v2733_v17, %v1978_v11  ;;  %v1462_v11 = vld [vmem:[#allocation9 + $0x2f0] sm:$0xff] }
 0x2ab   : > { %3175 = vmatmul.mubr.msk.f32.vlgmr.msra.gmra.mrb[8].mxu1 %vm1288_vm6, %v1272_v6  ;;  %3506 = vmatprep.subr.bf16.mxu1 %v3505_v15  ;;  %v3537_v6 = vpack.c.bf16 %v1467_v14, %v1465_v13  ;;  %v1466_v17 = vld [vmem:[#allocation9 + $0x310] sm:$0xff]  ;;  %v1496_v14 = vld [vmem:[#allocation9 + $0x400] sm:$0xff] }
 0x2ac   : > { %v1249_v26 = vmul.f32 %v1248_v21, %v1244_v10  ;;  %1981 = vxpose.xlu0.b32.start.end [1/1] (short) (narrow) %v1979_v22, 32  ;;  %1980 = vst [vmem:[#allocation4 + $0x1] sm:$0x1] %v1979_v22  ;;  %3508 = vmatpush1.bf16.msra.mxu1 %v3507_v16  ;;  %v1460_v10 = vld [vmem:[#allocation9 + $0x2e0] sm:$0xff] }
 0x2ad   : > { %3510 = vmatprep.subr.bf16.mxu1 %v3509_v18  ;;  %v3535_v15 = vpack.c.bf16 %v1462_v11, %v1460_v10  ;;  %v1464_v16 = vld [vmem:[#allocation9 + $0x300] sm:$0xff]  ;;  %v1469_v18 = vld [vmem:[#allocation9 + $0x328] sm:$0xff]  ;;  %v1499_v10 = vld [vmem:[#allocation9 + $0x418] sm:$0xff] }
 0x2ae   : > { %1250 = vst.msk [vmem:[#allocation3 + $0x3] sm:$0x1] %vm4289_vm1, %v1249_v26  ;;  %v3539_v20 = vpack.c.bf16 %v1466_v17, %v1464_v16  ;;  %v3541_v21 = vpack.c.bf16 %v1471_v19, %v1469_v18  ;;  %v1468_v22 = vld [vmem:[#allocation9 + $0x320] sm:$0xff]  ;;  %v1475_v26 = vld [vmem:[#allocation9 + $0x358] sm:$0xff] }
 0x2af   : > { %v1503_v16 = vld [vmem:[#allocation9 + $0x438] sm:$0xff] }
 0x2b0   : > { %3512 = vmatpush1.bf16.msra.mxu1 %v3511_v27  ;;  %v3543_v27 = vpack.c.bf16 %v1470_v23, %v1468_v22  ;;  %v1505_v23 = vld [vmem:[#allocation9 + $0x448] sm:$0xff] }
 0x2b1   : > { %3514 = vmatprep.subr.bf16.mxu1 %v3513_v28  ;;  %v4327_v39 = vld [vmem:[#allocation2] sm:$0xff]  ;;  %v3545_v28 = vpack.c.bf16 %v1475_v26, %v1473_v25  ;;  %v1507_v25 = vld [vmem:[#allocation9 + $0x458] sm:$0xff] }
 0x2b2   : > { %v1633_v42 = vrot.slane %v4327_v39, %v4245_v35  ;;  %v1641_v44 = vrot.slane %v4327_v39, %v4248_v36  ;;  %v1629_v45 = vrot.slane %v4327_v39, %v4251_v38  ;;  %v1637_v18 = vrot.slane %v4327_v39, %v4254_v43 }
 0x2b3   : > { %v1649_v22 = vrot.slane %v4327_v39, %v4259_v49 }
 0x2b4   : > { %1730 = vmatprep.mubr.f32.mxu0 %v1633_v42  ;;  %3516 = vmatpush1.bf16.msra.mxu1 %v3515_v37  ;;  %v3547_v37 = vpack.c.bf16 %v1474_v32, %v1472_v30  ;;  %v1478_v42 = vld [vmem:[#allocation9 + $0x370] sm:$0xff]  ;;  %v1509_v32 = vld [vmem:[#allocation9 + $0x468] sm:$0xff] }
 0x2b5   : > { %1801 = vmatprep.mubr.f32.mxu1 %v1641_v44  ;;  %1731 = vmatmul.mubr.f32.vlgmr.msra.gmra.mrb[8].mxu0 %v1629_v45  ;;  %v1481_v44 = vld [vmem:[#allocation9 + $0x388] sm:$0xff]  ;;  %v1483_v45 = vld [vmem:[#allocation9 + $0x398] sm:$0xff]  ;;  %v1506_v30 = vld [vmem:[#allocation9 + $0x450] sm:$0xff] }
 0x2b6   : > { %3518 = vmatprep.subr.bf16.mxu1 %v3517_v47  ;;  %v3551_v47 = vpack.c.bf16 %v1478_v42, %v1476_v41  ;;  %v3553_v48 = vpack.c.bf16 %v1483_v45, %v1481_v44  ;;  %v1510_v41 = vld [vmem:[#allocation9 + $0x470] sm:$0xff]  ;;  %v1513_v42 = vld [vmem:[#allocation9 + $0x488] sm:$0xff]  ;;  %v1515_v44 = vld [vmem:[#allocation9 + $0x498] sm:$0xff] }
 0x2b8   : > { %3520 = vmatpush1.bf16.msra.mxu1 %v3519_v51  ;;  %v1482_v51 = vld [vmem:[#allocation9 + $0x390] sm:$0xff] }
 0x2b9   : > { %3522 = vmatprep.subr.bf16.mxu1 %v3521_v52  ;;  %v1485_v52 = vld [vmem:[#allocation9 + $0x3a8] sm:$0xff]  ;;  %v3555_v54 = vpack.c.bf16 %v1482_v51, %v1480_v50  ;;  %v1514_v50 = vld [vmem:[#allocation9 + $0x490] sm:$0xff] }
 0x2ba   : > { %v3557_v55 = vpack.c.bf16 %v1487_v53, %v1485_v52  ;;  %v1517_v51 = vld [vmem:[#allocation9 + $0x4a8] sm:$0xff]  ;;  %v1519_v52 = vld [vmem:[#allocation9 + $0x4b8] sm:$0xff] }
 0x2bc   : > { %3524 = vmatpush1.bf16.msra.mxu1 %v3523_v56  ;;  %v1486_v56 = vld [vmem:[#allocation9 + $0x3b0] sm:$0xff] }
 0x2bd   : > { %3526 = vmatprep.subr.bf16.mxu1 %v3525_v57  ;;  %v1489_v57 = vld [vmem:[#allocation9 + $0x3c8] sm:$0xff]  ;;  %v3559_v62 = vpack.c.bf16 %v1486_v56, %v1484_v46  ;;  %v1518_v46 = vld [vmem:[#allocation9 + $0x4b0] sm:$0xff] }
 0x2be   : > { %v3561_v0 = vpack.c.bf16 %v1491_v61, %v1489_v57  ;;  %v1521_v56 = vld [vmem:[#allocation9 + $0x4c8] sm:$0xff]  ;;  %v1523_v57 = vld [vmem:[#allocation9 + $0x4d8] sm:$0xff] }
 0x2c0   : > { %3528 = vmatpush1.bf16.msra.mxu1 %v3527_v2  ;;  %v1490_v2 = vld [vmem:[#allocation9 + $0x3d0] sm:$0xff] }
 0x2c1   : > { %3530 = vmatprep.subr.bf16.mxu1 %v3529_v3  ;;  %v1493_v3 = vld [vmem:[#allocation9 + $0x3e8] sm:$0xff]  ;;  %v3563_v63 = vpack.c.bf16 %v1490_v2, %v1488_v1  ;;  %v1522_v1 = vld [vmem:[#allocation9 + $0x4d0] sm:$0xff] }
 0x2c2   : > { %v3565_v5 = vpack.c.bf16 %v1495_v4, %v1493_v3  ;;  %v1525_v2 = vld [vmem:[#allocation9 + $0x4e8] sm:$0xff]  ;;  %v1527_v3 = vld [vmem:[#allocation9 + $0x4f8] sm:$0xff] }
 0x2c4   : > { %3532 = vmatpush1.bf16.msra.mxu1 %v3531_v8  ;;  %v1494_v8 = vld [vmem:[#allocation9 + $0x3f0] sm:$0xff] }
 0x2c5   : > { %3534 = vmatprep.subr.bf16.mxu1 %v3533_v9  ;;  %v1497_v9 = vld [vmem:[#allocation9 + $0x408] sm:$0xff]  ;;  %v3567_v11 = vpack.c.bf16 %v1494_v8, %v1492_v7  ;;  %v1526_v7 = vld [vmem:[#allocation9 + $0x4f0] sm:$0xff] }
 0x2c6   : > { %v3569_v13 = vpack.c.bf16 %v1499_v10, %v1497_v9  ;;  %v1529_v8 = vld [vmem:[#allocation9 + $0x508] sm:$0xff]  ;;  %v1531_v9 = vld [vmem:[#allocation9 + $0x518] sm:$0xff] }
 0x2c8   : > { %3536 = vmatpush1.bf16.msra.mxu1 %v3535_v15  ;;  %v1498_v15 = vld [vmem:[#allocation9 + $0x410] sm:$0xff] }
 0x2c9   : > { %3538 = vmatprep.subr.bf16.mxu1 %v3537_v6  ;;  %v1501_v6 = vld [vmem:[#allocation9 + $0x428] sm:$0xff]  ;;  %v3571_v17 = vpack.c.bf16 %v1498_v15, %v1496_v14  ;;  %v1530_v14 = vld [vmem:[#allocation9 + $0x510] sm:$0xff] }
 0x2ca   : > { %v3573_v19 = vpack.c.bf16 %v1503_v16, %v1501_v6  ;;  %v1533_v15 = vld [vmem:[#allocation9 + $0x528] sm:$0xff]  ;;  %v1535_v6 = vld [vmem:[#allocation9 + $0x538] sm:$0xff] }
 0x2cc   : > { %3540 = vmatpush1.bf16.msra.mxu1 %v3539_v20  ;;  %v1500_v20 = vld [vmem:[#allocation9 + $0x420] sm:$0xff] }
 0x2cd   : > { %3542 = vmatprep.subr.bf16.mxu1 %v3541_v21  ;;  %v1502_v21 = vld [vmem:[#allocation9 + $0x430] sm:$0xff] }
 0x2ce   : > { %v3575_v26 = vpack.c.bf16 %v1502_v21, %v1500_v20  ;;  %v1537_v20 = vld [vmem:[#allocation9 + $0x548] sm:$0xff]  ;;  %v1539_v21 = vld [vmem:[#allocation9 + $0x558] sm:$0xff] }
 0x2d0   : > { %3544 = vmatpush1.bf16.msra.mxu1 %v3543_v27  ;;  %v3577_v27 = vpack.c.bf16 %v1507_v25, %v1505_v23  ;;  %v3609_v23 = vpack.c.bf16 %v1539_v21, %v1537_v20  ;;  %v1536_v25 = vld [vmem:[#allocation9 + $0x540] sm:$0xff]  ;;  %v1571_v20 = vld [vmem:[#allocation9 + $0x658] sm:$0xff] }
 0x2d1   : > { %3546 = vmatprep.subr.bf16.mxu1 %v3545_v28  ;;  %v1504_v28 = vld [vmem:[#allocation9 + $0x440] sm:$0xff] }
 0x2d2   : > { %v3579_v34 = vpack.c.bf16 %v1506_v30, %v1504_v28  ;;  %v1543_v28 = vld [vmem:[#allocation9 + $0x578] sm:$0xff] }
 0x2d4   : > { %3548 = vmatpush1.bf16.msra.mxu1 %v3547_v37  ;;  %v3581_v37 = vpack.c.bf16 %v1511_v33, %v1509_v32  ;;  %v1540_v33 = vld [vmem:[#allocation9 + $0x560] sm:$0xff] }
 0x2d5   : > { %3550 = vmatprep.subr.bf16.mxu1 %v3549_v40  ;;  %v1508_v40 = vld [vmem:[#allocation9 + $0x460] sm:$0xff] }
 0x2d6   : > { %v3583_v45 = vpack.c.bf16 %v1510_v41, %v1508_v40  ;;  %v1547_v40 = vld [vmem:[#allocation9 + $0x598] sm:$0xff] }
 0x2d8   : > { %3552 = vmatpush1.bf16.msra.mxu1 %v3551_v47  ;;  %v3585_v47 = vpack.c.bf16 %v1515_v44, %v1513_v42  ;;  %v1544_v44 = vld [vmem:[#allocation9 + $0x580] sm:$0xff] }
 0x2d9   : > { %3554 = vmatprep.subr.bf16.mxu1 %v3553_v48  ;;  %v1512_v48 = vld [vmem:[#allocation9 + $0x480] sm:$0xff] }
 0x2da   : > { %v3587_v53 = vpack.c.bf16 %v1514_v50, %v1512_v48  ;;  %v1551_v48 = vld [vmem:[#allocation9 + $0x5b8] sm:$0xff] }
 0x2dc   : > { %3556 = vmatpush1.bf16.msra.mxu1 %v3555_v54  ;;  %v3589_v54 = vpack.c.bf16 %v1519_v52, %v1517_v51  ;;  %v1548_v52 = vld [vmem:[#allocation9 + $0x5a0] sm:$0xff] }
 0x2dd   : > { %3558 = vmatprep.subr.bf16.mxu1 %v3557_v55  ;;  %v1516_v55 = vld [vmem:[#allocation9 + $0x4a0] sm:$0xff] }
 0x2de   : > { %v3591_v61 = vpack.c.bf16 %v1518_v46, %v1516_v55  ;;  %v1555_v55 = vld [vmem:[#allocation9 + $0x5d8] sm:$0xff] }
 0x2e0   : > { %3560 = vmatpush1.bf16.msra.mxu1 %v3559_v62  ;;  %v3593_v62 = vpack.c.bf16 %v1523_v57, %v1521_v56  ;;  %v1552_v57 = vld [vmem:[#allocation9 + $0x5c0] sm:$0xff] }
 0x2e1   : > { %3562 = vmatprep.subr.bf16.mxu1 %v3561_v0  ;;  %v1520_v0 = vld [vmem:[#allocation9 + $0x4c0] sm:$0xff] }
 0x2e2   : > { %v3595_v4 = vpack.c.bf16 %v1522_v1, %v1520_v0  ;;  %v1559_v0 = vld [vmem:[#allocation9 + $0x5f8] sm:$0xff] }
 0x2e4   : > { %3564 = vmatpush1.bf16.msra.mxu1 %v3563_v63  ;;  %v3597_v63 = vpack.c.bf16 %v1527_v3, %v1525_v2  ;;  %v1556_v3 = vld [vmem:[#allocation9 + $0x5e0] sm:$0xff] }
 0x2e5   : > { %3566 = vmatprep.subr.bf16.mxu1 %v3565_v5  ;;  %v1524_v5 = vld [vmem:[#allocation9 + $0x4e0] sm:$0xff] }
 0x2e6   : > { %v3599_v10 = vpack.c.bf16 %v1526_v7, %v1524_v5  ;;  %v1563_v5 = vld [vmem:[#allocation9 + $0x618] sm:$0xff] }
 0x2e8   : > { %3568 = vmatpush1.bf16.msra.mxu1 %v3567_v11  ;;  %v3601_v11 = vpack.c.bf16 %v1531_v9, %v1529_v8  ;;  %v1560_v9 = vld [vmem:[#allocation9 + $0x600] sm:$0xff] }
 0x2e9   : > { %3570 = vmatprep.subr.bf16.mxu1 %v3569_v13  ;;  %v1528_v13 = vld [vmem:[#allocation9 + $0x500] sm:$0xff] }
 0x2ea   : > { %v3603_v16 = vpack.c.bf16 %v1530_v14, %v1528_v13  ;;  %v1567_v13 = vld [vmem:[#allocation9 + $0x638] sm:$0xff] }
 0x2eb   : > { %1802 = vmatmul.mubr.f32.vlgmr.msra.gmra.mrb[10].mxu1 %v1637_v18  ;;  %v1532_v18 = vld [vmem:[#allocation9 + $0x520] sm:$0xff] }
 0x2ec   : > { %3572 = vmatpush1.bf16.msra.mxu1 %v3571_v17  ;;  %1872 = vmatprep.mubr.f32.mxu1 %v1649_v22  ;;  %v3605_v17 = vpack.c.bf16 %v1535_v6, %v1533_v15  ;;  %v1645_v15 = vrot.slane %v4327_v39, %v4277_v29 }
 0x2ed   : > { %3574 = vmatprep.subr.bf16.mxu1 %v3573_v19  ;;  %v1534_v19 = vld [vmem:[#allocation9 + $0x530] sm:$0xff] }
 0x2ee   : > { %v3607_v22 = vpack.c.bf16 %v1534_v19, %v1532_v18  ;;  %v1657_v18 = vrot.slane %v4327_v39, %v4268_v60  ;;  %v1569_v19 = vld [vmem:[#allocation9 + $0x648] sm:$0xff] }
 0x2f0   : > { %3576 = vmatpush1.bf16.msra.mxu1 %v3575_v26  ;;  %v1538_v26 = vld [vmem:[#allocation9 + $0x550] sm:$0xff] }
 0x2f1   : > { %3578 = vmatprep.subr.bf16.mxu1 %v3577_v27  ;;  %v1541_v27 = vld [vmem:[#allocation9 + $0x568] sm:$0xff]  ;;  %v3611_v30 = vpack.c.bf16 %v1538_v26, %v1536_v25  ;;  %v1570_v25 = vld [vmem:[#allocation9 + $0x650] sm:$0xff] }
 0x2f2   : > { %v3613_v32 = vpack.c.bf16 %v1543_v28, %v1541_v27  ;;  %v1573_v26 = vld [vmem:[#allocation9 + $0x668] sm:$0xff]  ;;  %v1575_v27 = vld [vmem:[#allocation9 + $0x678] sm:$0xff] }
 0x2f4   : > { %3580 = vmatpush1.bf16.msra.mxu1 %v3579_v34  ;;  %v1542_v34 = vld [vmem:[#allocation9 + $0x570] sm:$0xff] }
 0x2f5   : > { %3582 = vmatprep.subr.bf16.mxu1 %v3581_v37  ;;  %v1545_v37 = vld [vmem:[#allocation9 + $0x588] sm:$0xff]  ;;  %v3615_v41 = vpack.c.bf16 %v1542_v34, %v1540_v33  ;;  %v1574_v33 = vld [vmem:[#allocation9 + $0x670] sm:$0xff] }
 0x2f6   : > { %v3617_v42 = vpack.c.bf16 %v1547_v40, %v1545_v37  ;;  %v1577_v34 = vld [vmem:[#allocation9 + $0x688] sm:$0xff]  ;;  %v1579_v37 = vld [vmem:[#allocation9 + $0x698] sm:$0xff] }
 0x2f8   : > { %3584 = vmatpush1.bf16.msra.mxu1 %v3583_v45  ;;  %v1546_v45 = vld [vmem:[#allocation9 + $0x590] sm:$0xff] }
 0x2f9   : > { %3586 = vmatprep.subr.bf16.mxu1 %v3585_v47  ;;  %v1549_v47 = vld [vmem:[#allocation9 + $0x5a8] sm:$0xff]  ;;  %v3619_v50 = vpack.c.bf16 %v1546_v45, %v1544_v44  ;;  %v1578_v44 = vld [vmem:[#allocation9 + $0x690] sm:$0xff] }
 0x2fa   : > { %v3621_v51 = vpack.c.bf16 %v1551_v48, %v1549_v47  ;;  %v1581_v45 = vld [vmem:[#allocation9 + $0x6a8] sm:$0xff]  ;;  %v1583_v47 = vld [vmem:[#allocation9 + $0x6b8] sm:$0xff] }
 0x2fc   : > { %3588 = vmatpush1.bf16.msra.mxu1 %v3587_v53  ;;  %v1550_v53 = vld [vmem:[#allocation9 + $0x5b0] sm:$0xff] }
 0x2fd   : > { %3590 = vmatprep.subr.bf16.mxu1 %v3589_v54  ;;  %v1553_v54 = vld [vmem:[#allocation9 + $0x5c8] sm:$0xff]  ;;  %v3623_v46 = vpack.c.bf16 %v1550_v53, %v1548_v52  ;;  %v1582_v52 = vld [vmem:[#allocation9 + $0x6b0] sm:$0xff] }
 0x2fe   : > { %v3625_v56 = vpack.c.bf16 %v1555_v55, %v1553_v54  ;;  %v1585_v53 = vld [vmem:[#allocation9 + $0x6c8] sm:$0xff]  ;;  %v1587_v54 = vld [vmem:[#allocation9 + $0x6d8] sm:$0xff] }
 0x300   : > { %3592 = vmatpush1.bf16.msra.mxu1 %v3591_v61  ;;  %v1554_v61 = vld [vmem:[#allocation9 + $0x5d0] sm:$0xff] }
 0x301   : > { %3594 = vmatprep.subr.bf16.mxu1 %v3593_v62  ;;  %v1557_v62 = vld [vmem:[#allocation9 + $0x5e8] sm:$0xff]  ;;  %v3627_v1 = vpack.c.bf16 %v1554_v61, %v1552_v57  ;;  %v1586_v57 = vld [vmem:[#allocation9 + $0x6d0] sm:$0xff] }
 0x302   : > { %v3629_v2 = vpack.c.bf16 %v1559_v0, %v1557_v62  ;;  %v1589_v61 = vld [vmem:[#allocation9 + $0x6e8] sm:$0xff]  ;;  %v1591_v62 = vld [vmem:[#allocation9 + $0x6f8] sm:$0xff] }
 0x304   : > { %3596 = vmatpush1.bf16.msra.mxu1 %v3595_v4  ;;  %v1558_v4 = vld [vmem:[#allocation9 + $0x5f0] sm:$0xff] }
 0x305   : > { %3598 = vmatprep.subr.bf16.mxu1 %v3597_v63  ;;  %v1561_v63 = vld [vmem:[#allocation9 + $0x608] sm:$0xff]  ;;  %v3631_v7 = vpack.c.bf16 %v1558_v4, %v1556_v3  ;;  %v1590_v3 = vld [vmem:[#allocation9 + $0x6f0] sm:$0xff] }
 0x306   : > { %v3633_v8 = vpack.c.bf16 %v1563_v5, %v1561_v63  ;;  %v1593_v4 = vld [vmem:[#allocation9 + $0x708] sm:$0xff]  ;;  %v1595_v63 = vld [vmem:[#allocation9 + $0x718] sm:$0xff] }
 0x308   : > { %3600 = vmatpush1.bf16.msra.mxu1 %v3599_v10  ;;  %v1562_v10 = vld [vmem:[#allocation9 + $0x610] sm:$0xff] }
 0x309   : > { %3602 = vmatprep.subr.bf16.mxu1 %v3601_v11  ;;  %v1565_v11 = vld [vmem:[#allocation9 + $0x628] sm:$0xff]  ;;  %v3635_v14 = vpack.c.bf16 %v1562_v10, %v1560_v9  ;;  %v1594_v9 = vld [vmem:[#allocation9 + $0x710] sm:$0xff] }
 0x30a   : > { %v3637_v6 = vpack.c.bf16 %v1567_v13, %v1565_v11  ;;  %v1597_v10 = vld [vmem:[#allocation9 + $0x728] sm:$0xff]  ;;  %v1599_v11 = vld [vmem:[#allocation9 + $0x738] sm:$0xff] }
 0x30c   : > { %3604 = vmatpush1.bf16.msra.mxu1 %v3603_v16  ;;  %v1564_v16 = vld [vmem:[#allocation9 + $0x620] sm:$0xff] }
 0x30d   : > { %3606 = vmatprep.subr.bf16.mxu1 %v3605_v17  ;;  %v1566_v17 = vld [vmem:[#allocation9 + $0x630] sm:$0xff] }
 0x30e   : > { %v3639_v21 = vpack.c.bf16 %v1566_v17, %v1564_v16  ;;  %v1601_v16 = vld [vmem:[#allocation9 + $0x748] sm:$0xff]  ;;  %v1603_v17 = vld [vmem:[#allocation9 + $0x758] sm:$0xff] }
 0x310   : > { %3608 = vmatpush1.bf16.msra.mxu1 %v3607_v22  ;;  %v3641_v22 = vpack.c.bf16 %v1571_v20, %v1569_v19  ;;  %v3673_v19 = vpack.c.bf16 %v1603_v17, %v1601_v16  ;;  %v1600_v20 = vld [vmem:[#allocation9 + $0x740] sm:$0xff]  ;;  %v1950_v17 = vld [vmem:[#allocation3 + $0x4] sm:$0x3] }
 0x311   : > { %3610 = vmatprep.subr.bf16.mxu1 %v3609_v23  ;;  %v1568_v23 = vld [vmem:[#allocation9 + $0x640] sm:$0xff] }
 0x312   : > { %v3643_v28 = vpack.c.bf16 %v1570_v25, %v1568_v23  ;;  %v1607_v23 = vld [vmem:[#allocation9 + $0x778] sm:$0xff] }
 0x314   : > { %3612 = vmatpush1.bf16.msra.mxu1 %v3611_v30  ;;  %v3645_v30 = vpack.c.bf16 %v1575_v27, %v1573_v26  ;;  %v1604_v27 = vld [vmem:[#allocation9 + $0x760] sm:$0xff] }
 0x315   : > { %3614 = vmatprep.subr.bf16.mxu1 %v3613_v32  ;;  %v1572_v32 = vld [vmem:[#allocation9 + $0x660] sm:$0xff] }
 0x316   : > { %v3647_v40 = vpack.c.bf16 %v1574_v33, %v1572_v32  ;;  %v1611_v32 = vld [vmem:[#allocation9 + $0x798] sm:$0xff] }
 0x318   : > { %3616 = vmatpush1.bf16.msra.mxu1 %v3615_v41  ;;  %v3649_v41 = vpack.c.bf16 %v1579_v37, %v1577_v34  ;;  %v1608_v37 = vld [vmem:[#allocation9 + $0x780] sm:$0xff] }
 0x319   : > { %3618 = vmatprep.subr.bf16.mxu1 %v3617_v42  ;;  %v1576_v42 = vld [vmem:[#allocation9 + $0x680] sm:$0xff] }
 0x31a   : > { %v3651_v48 = vpack.c.bf16 %v1578_v44, %v1576_v42  ;;  %v1615_v42 = vld [vmem:[#allocation9 + $0x7b8] sm:$0xff] }
 0x31c   : > { %3620 = vmatpush1.bf16.msra.mxu1 %v3619_v50  ;;  %v3653_v50 = vpack.c.bf16 %v1583_v47, %v1581_v45  ;;  %v1612_v47 = vld [vmem:[#allocation9 + $0x7a0] sm:$0xff] }
 0x31d   : > { %3622 = vmatprep.subr.bf16.mxu1 %v3621_v51  ;;  %v1580_v51 = vld [vmem:[#allocation9 + $0x6a0] sm:$0xff] }
 0x31e   : > { %v3655_v55 = vpack.c.bf16 %v1582_v52, %v1580_v51  ;;  %v1619_v51 = vld [vmem:[#allocation9 + $0x7d8] sm:$0xff] }
 0x320   : > { %3624 = vmatpush1.bf16.msra.mxu1 %v3623_v46  ;;  %v3657_v46 = vpack.c.bf16 %v1587_v54, %v1585_v53  ;;  %v1616_v54 = vld [vmem:[#allocation9 + $0x7c0] sm:$0xff] }
 0x321   : > { %3626 = vmatprep.subr.bf16.mxu1 %v3625_v56  ;;  %v1584_v56 = vld [vmem:[#allocation9 + $0x6c0] sm:$0xff] }
 0x322   : > { %v3659_v0 = vpack.c.bf16 %v1586_v57, %v1584_v56  ;;  %v1623_v56 = vld [vmem:[#allocation9 + $0x7f8] sm:$0xff] }
 0x324   : > { %3628 = vmatpush1.bf16.msra.mxu1 %v3627_v1  ;;  %v3661_v1 = vpack.c.bf16 %v1591_v62, %v1589_v61  ;;  %v1620_v62 = vld [vmem:[#allocation9 + $0x7e0] sm:$0xff] }
 0x325   : > { %3630 = vmatprep.subr.bf16.mxu1 %v3629_v2  ;;  %v1588_v2 = vld [vmem:[#allocation9 + $0x6e0] sm:$0xff] }
 0x326   : > { %v3663_v5 = vpack.c.bf16 %v1590_v3, %v1588_v2  ;;  %v1653_v2 = vrot.slane %v4327_v39, %v4280_v31 }
 0x328   : > { %3632 = vmatpush1.bf16.msra.mxu1 %v3631_v7  ;;  %v3665_v7 = vpack.c.bf16 %v1595_v63, %v1593_v4 }
 0x329   : > { %3634 = vmatprep.subr.bf16.mxu1 %v3633_v8  ;;  %v1592_v8 = vld [vmem:[#allocation9 + $0x700] sm:$0xff] }
 0x32a   : > { %v3667_v13 = vpack.c.bf16 %v1594_v9, %v1592_v8  ;;  %v4032_v8 = vmov 1966171168  }
 0x32b   : > { %1873 = vmatmul.mubr.f32.vlgmr.msra.gmra.mrb[10].mxu1 %v1645_v15  ;;  %v1596_v15 = vld [vmem:[#allocation9 + $0x720] sm:$0xff]  ;;  %v1955_v9 = vunpack.c.l.s4 %v4032_v8 }
 0x32c   : > { %3636 = vmatpush1.bf16.msra.mxu1 %v3635_v14  ;;  %1943 = vmatprep.mubr.f32.mxu1 %v1657_v18  ;;  %v3669_v14 = vpack.c.bf16 %v1599_v11, %v1597_v10 }
 0x32d   : > { %3638 = vmatprep.subr.bf16.mxu1 %v3637_v6  ;;  %v1598_v6 = vld [vmem:[#allocation9 + $0x730] sm:$0xff]  ;;  %v1956_v10 = vunpack.c.0.s8 %v1955_v9 }
 0x32e   : > { %v3671_v18 = vpack.c.bf16 %v1598_v6, %v1596_v15  ;;  %v2131_v9 = vld [vmem:[#allocation10 + $0x50] sm:$0xff] }
 0x32f   : > { %v1959_v6 = vsub.s32 %v1956_v10, %v4242_v24  ;;  %v2132_v10 = vld [vmem:[#allocation10 + $0x58] sm:$0xff] }
 0x330   : > { %3640 = vmatpush1.bf16.msra.mxu1 %v3639_v21  ;;  %v1602_v21 = vld [vmem:[#allocation9 + $0x750] sm:$0xff] }
 0x331   : > { %3642 = vmatprep.subr.bf16.mxu1 %v3641_v22  ;;  %v1605_v22 = vld [vmem:[#allocation9 + $0x768] sm:$0xff]  ;;  %v3675_v25 = vpack.c.bf16 %v1602_v21, %v1600_v20  ;;  %v2137_v21 = vld [vmem:[#allocation10 + $0x80] sm:$0xff] }
 0x332   : > { %v3677_v26 = vpack.c.bf16 %v1607_v23, %v1605_v22  ;;  %v2138_v22 = vld [vmem:[#allocation10 + $0x88] sm:$0xff]  ;;  %v2121_v23 = vld [vmem:[#allocation10] sm:$0xff] }
 0x334   : > { %3644 = vmatpush1.bf16.msra.mxu1 %v3643_v28  ;;  %v1606_v28 = vld [vmem:[#allocation9 + $0x770] sm:$0xff] }
 0x335   : > { %3646 = vmatprep.subr.bf16.mxu1 %v3645_v30  ;;  %v1609_v30 = vld [vmem:[#allocation9 + $0x788] sm:$0xff]  ;;  %v3679_v33 = vpack.c.bf16 %v1606_v28, %v1604_v27  ;;  %v2139_v28 = vld [vmem:[#allocation10 + $0x90] sm:$0xff] }
 0x336   : > { %v3681_v34 = vpack.c.bf16 %v1611_v32, %v1609_v30  ;;  %v2140_v30 = vld [vmem:[#allocation10 + $0x98] sm:$0xff] }
 0x338   : > { %3648 = vmatpush1.bf16.msra.mxu1 %v3647_v40  ;;  %v1610_v40 = vld [vmem:[#allocation9 + $0x790] sm:$0xff] }
 0x339   : > { %3650 = vmatprep.subr.bf16.mxu1 %v3649_v41  ;;  %v1613_v41 = vld [vmem:[#allocation9 + $0x7a8] sm:$0xff]  ;;  %v3683_v44 = vpack.c.bf16 %v1610_v40, %v1608_v37 }
 0x33a   : > { %v3685_v45 = vpack.c.bf16 %v1615_v42, %v1613_v41  ;;  %v3701_v41 = vpack.c.bf16 %v2140_v30, %v2139_v28  ;;  %v2123_v42 = vld [vmem:[#allocation10 + $0x10] sm:$0xff]  ;;  %v2154_v28 = vld [vmem:[#allocation10 + $0x108] sm:$0xff] }
 0x33b   : > { %v2171_v30 = vld [vmem:[#allocation10 + $0x190] sm:$0xff] }
 0x33c   : > { %3652 = vmatpush1.bf16.msra.mxu1 %v3651_v48  ;;  %v1614_v48 = vld [vmem:[#allocation9 + $0x7b0] sm:$0xff] }
 0x33d   : > { %3654 = vmatprep.subr.bf16.mxu1 %v3653_v50  ;;  %v1617_v50 = vld [vmem:[#allocation9 + $0x7c8] sm:$0xff]  ;;  %v3687_v52 = vpack.c.bf16 %v1614_v48, %v1612_v47 }
 0x33e   : > { %v3689_v53 = vpack.c.bf16 %v1619_v51, %v1617_v50  ;;  %v2142_v47 = vld [vmem:[#allocation10 + $0xa8] sm:$0xff] }
 0x340   : > { %3656 = vmatpush1.bf16.msra.mxu1 %v3655_v55  ;;  %v1618_v55 = vld [vmem:[#allocation9 + $0x7d0] sm:$0xff] }
 0x341   : > { %3658 = vmatprep.subr.bf16.mxu1 %v3657_v46  ;;  %v1621_v46 = vld [vmem:[#allocation9 + $0x7e8] sm:$0xff]  ;;  %v3691_v57 = vpack.c.bf16 %v1618_v55, %v1616_v54  ;;  %v2143_v55 = vld [vmem:[#allocation10 + $0xb0] sm:$0xff] }
 0x342   : > { %v3693_v61 = vpack.c.bf16 %v1623_v56, %v1621_v46  ;;  %v2144_v46 = vld [vmem:[#allocation10 + $0xb8] sm:$0xff] }
 0x344   : > { %3660 = vmatpush1.bf16.msra.mxu1 %v3659_v0  ;;  %v1622_v0 = vld [vmem:[#allocation9 + $0x7f0] sm:$0xff] }
 0x345   : > { %3662 = vmatprep.subr.bf16.mxu1 %v3661_v1  ;;  %v3695_v1 = vpack.c.bf16 %v1622_v0, %v1620_v62  ;;  %v2128_v62 = vld [vmem:[#allocation10 + $0x38] sm:$0xff]  ;;  %v2145_v0 = vld [vmem:[#allocation10 + $0xc0] sm:$0xff] }
 0x348   : > { %3664 = vmatpush1.bf16.msra.mxu1 %v3663_v5 }
 0x349   : > { %3666 = vmatprep.subr.bf16.mxu1 %v3665_v7  ;;  %v1997_v7 = vpop.trf.xlu0 }
 0x34a   : > { %3179 = vmatprep.mubr.msk.f32.mxu0 %vm1288_vm6, %v1997_v7  ;;  %v2148_v7 = vld [vmem:[#allocation10 + $0xd8] sm:$0xff] }
 0x34c   : > { %3668 = vmatpush1.bf16.msra.mxu1 %v3667_v13 }
 0x34d   : > { %3670 = vmatprep.subr.bf16.mxu1 %v3669_v14 }
 0x350   : > { %3672 = vmatpush1.bf16.msra.mxu1 %v3671_v18  ;;  %v1998_v18 = vpop.trf.xlu0 }
 0x351   : > { %3674 = vmatprep.subr.bf16.mxu1 %v3673_v19 }
 0x354   : > { %3676 = vmatpush1.bf16.msra.mxu1 %v3675_v25  ;;  %v2122_v25 = vld [vmem:[#allocation10 + $0x8] sm:$0xff]  ;;  %v1999_v27 = vpop.trf.xlu0 }
 0x355   : > { %3678 = vmatprep.subr.bf16.mxu1 %v3677_v26  ;;  %v3699_v37 = vpack.c.bf16 %v2122_v25, %v2121_v23  ;;  %v2170_v23 = vld [vmem:[#allocation10 + $0x188] sm:$0xff] }
 0x358   : > { %3680 = vmatpush1.bf16.msra.mxu1 %v3679_v33  ;;  %v2000_v48 = vpop.trf.xlu0 }
 0x359   : > { %3682 = vmatprep.subr.bf16.mxu1 %v3681_v34  ;;  %v3697_v34 = vpack.c.bf16 %v2138_v22, %v2137_v21  ;;  %v2136_v21 = vld [vmem:[#allocation10 + $0x78] sm:$0xff]  ;;  %v2169_v22 = vld [vmem:[#allocation10 + $0x180] sm:$0xff] }
 0x35c   : > { %3684 = vmatpush1.bf16.msra.mxu1 %v3683_v44  ;;  %v2124_v44 = vld [vmem:[#allocation10 + $0x18] sm:$0xff] }
 0x35d   : > { %3686 = vmatprep.subr.bf16.mxu1 %v3685_v45  ;;  %v2141_v45 = vld [vmem:[#allocation10 + $0xa0] sm:$0xff]  ;;  %v3703_v50 = vpack.c.bf16 %v2124_v44, %v2123_v42  ;;  %v2174_v44 = vld [vmem:[#allocation10 + $0x1a8] sm:$0xff] }
 0x35e   : > { %v3705_v51 = vpack.c.bf16 %v2142_v47, %v2141_v45  ;;  %v2173_v42 = vld [vmem:[#allocation10 + $0x1a0] sm:$0xff] }
 0x35f   : > { %v3737_v47 = vpack.c.bf16 %v2174_v44, %v2173_v42  ;;  %v2207_v42 = vld [vmem:[#allocation10 + $0x2b0] sm:$0xff]  ;;  %v2208_v44 = vld [vmem:[#allocation10 + $0x2b8] sm:$0xff] }
 0x360   : > { %3688 = vmatpush1.bf16.msra.mxu1 %v3687_v52  ;;  %v2125_v52 = vld [vmem:[#allocation10 + $0x20] sm:$0xff] }
 0x361   : > { %3690 = vmatprep.subr.bf16.mxu1 %v3689_v53  ;;  %v2126_v53 = vld [vmem:[#allocation10 + $0x28] sm:$0xff] }
 0x362   : > { %v3707_v56 = vpack.c.bf16 %v2126_v53, %v2125_v52  ;;  %v2176_v52 = vld [vmem:[#allocation10 + $0x1b8] sm:$0xff] }
 0x364   : > { %3692 = vmatpush1.bf16.msra.mxu1 %v3691_v57  ;;  %v3709_v57 = vpack.c.bf16 %v2144_v46, %v2143_v55  ;;  %v2159_v55 = vld [vmem:[#allocation10 + $0x130] sm:$0xff]  ;;  %v2160_v46 = vld [vmem:[#allocation10 + $0x138] sm:$0xff] }
 0x365   : > { %3694 = vmatprep.subr.bf16.mxu1 %v3693_v61  ;;  %v2127_v61 = vld [vmem:[#allocation10 + $0x30] sm:$0xff] }
 0x368   : > { %3696 = vmatpush1.bf16.msra.mxu1 %v3695_v1  ;;  %v2146_v1 = vld [vmem:[#allocation10 + $0xc8] sm:$0xff] }
 0x36b   : > { %1944 = vmatmul.mubr.f32.vlgmr.msra.gmra.mrb[10].mxu1 %v1653_v2  ;;  %v3711_v2 = vpack.c.bf16 %v2128_v62, %v2127_v61  ;;  %v2161_v61 = vld [vmem:[#allocation10 + $0x140] sm:$0xff]  ;;  %v2162_v62 = vld [vmem:[#allocation10 + $0x148] sm:$0xff] }
 0x37e   : > { %v1362_v3 = vpop.f32.mrb[8].mxu1 }
 0x37f   : > { %1366 = vst [vmem:[%s4229_s10] sm:$0xff] %v1362_v3  ;;  %v3176_v4 = vpop.f32.mrb[9].mxu1  ;;  %v3713_v3 = vpack.c.bf16 %v2146_v1, %v2145_v0  ;;  %v2179_v0 = vld [vmem:[#allocation10 + $0x1d0] sm:$0xff]  ;;  %v2180_v1 = vld [vmem:[#allocation10 + $0x1d8] sm:$0xff] }
 0x380   : > { %v2129_v4 = vld [vmem:[#allocation10 + $0x40] sm:$0xff] }
 0x388   : > { %v1732_v63 = vpop.f32.mrb[8].mxu0 }
 0x389   : > { %v1734_v5 = vpop.f32.mrb[9].mxu0 }
 0x43e   : > { %v1945_v11 = vpop.f32.mrb[10].mxu1 }
 0x43f   : > { %v3825_v13 = vadd.f32 %v1945_v11, %v1732_v63  ;;  %v1947_v14 = vpop.f32.mrb[11].mxu1  ;;  %v2130_v63 = vld [vmem:[#allocation10 + $0x48] sm:$0xff]  ;;  %v2149_v11 = vld [vmem:[#allocation10 + $0xe0] sm:$0xff] }
 0x440   : > { %v3826_v15 = vadd.f32 %v1947_v14, %v1734_v5  ;;  %v2147_v5 = vld [vmem:[#allocation10 + $0xd0] sm:$0xff]  ;;  %v3715_v8 = vpack.c.bf16 %v2130_v63, %v2129_v4  ;;  %v3719_v14 = vpack.c.bf16 %v2132_v10, %v2131_v9  ;;  %v2164_v63 = vld [vmem:[#allocation10 + $0x158] sm:$0xff]  ;;  %v2165_v9 = vld [vmem:[#allocation10 + $0x160] sm:$0xff] }
 0x441   : > { %v2163_v4 = vld [vmem:[#allocation10 + $0x150] sm:$0xff]  ;;  %v2166_v10 = vld [vmem:[#allocation10 + $0x168] sm:$0xff] }
 0x442   : > { %v1953_v16 = vcombine.low %v3825_v13, %v3826_v15  ;;  %v2150_v13 = vld [vmem:[#allocation10 + $0xe8] sm:$0xff] }
 0x443   : > { %v3721_v15 = vpack.c.bf16 %v2150_v13, %v2149_v11  ;;  %v2183_v11 = vld [vmem:[#allocation10 + $0x1f0] sm:$0xff]  ;;  %v2184_v13 = vld [vmem:[#allocation10 + $0x1f8] sm:$0xff] }
 0x444   : > { %v1960_v39 = vrot.slane %v1953_v16, %v1959_v6  ;;  %v2134_v16 = vld [vmem:[#allocation10 + $0x68] sm:$0xff] }
 0x446   : > { %v1967_v19 = vrot.slane %v1960_v39, %v1959_v6  ;;  %v2133_v6 = vld [vmem:[#allocation10 + $0x60] sm:$0xff]  ;;  %v2151_v39 = vld [vmem:[#allocation10 + $0xf0] sm:$0xff] }
 0x448   : > { %v1969_v20 = vadd.f32 %v1967_v19, %v1950_v17  ;;  %v2152_v17 = vld [vmem:[#allocation10 + $0xf8] sm:$0xff] }
 0x449   : > { %v3725_v19 = vpack.c.bf16 %v2152_v17, %v2151_v39  ;;  %v2201_v39 = vld [vmem:[#allocation10 + $0x280] sm:$0xff]  ;;  %v2202_v17 = vld [vmem:[#allocation10 + $0x288] sm:$0xff] }
 0x44a   : > { %vm1970_vm7 = vcmp.gt.f32.partialorder %v1969_v20, 0.5 }
 0x44b   : > { %v2736_v26 = vsel %vm1970_vm7, 1.0, %v4030_v58 }
 0x44c   : > { %v1973_v32 = vsub.f32 1.0, %v2736_v26  ;;  %1976 = vst.msk [vmem:[#allocation2 + $0x4] sm:$0x3] %vm4234_vm0, %v2736_v26  ;;  %2582 = vst [vmem:[%s4224_s7 + $0x2] sm:$0x1] %v2736_v26  ;;  %v2583_v24 = vrot.slane %v2736_v26, 1  ;;  %v2017_v33 = vrot.slane %v2736_v26, %v4245_v35  ;;  %v3729_v26 = vpack.c.bf16 %v2170_v23, %v2169_v22 }
 0x44d   : > { %v2203_v22 = vld [vmem:[#allocation10 + $0x290] sm:$0xff]  ;;  %v2204_v23 = vld [vmem:[#allocation10 + $0x298] sm:$0xff] }
 0x44e   : > { %v1974_v40 = vmul.f32 %v1973_v32, %v1969_v20  ;;  %2585 = vst [vmem:[%s4224_s7 + $0x3] sm:$0x1] %v2583_v24  ;;  %3177 = vmatprep.subr.msk.mxu0 %vm1292_vm4, %v2017_v33  ;;  %v2135_v20 = vld [vmem:[#allocation10 + $0x70] sm:$0xff]  ;;  %v2172_v32 = vld [vmem:[#allocation10 + $0x198] sm:$0xff] }
 0x44f   : > { %3178 = vmatpush3.msk.msra.mxu0 %vm1292_vm4, %v2017_v33  ;;  %v3727_v25 = vpack.c.bf16 %v2136_v21, %v2135_v20  ;;  %v2185_v20 = vld [vmem:[#allocation10 + $0x200] sm:$0xff]  ;;  %v2186_v21 = vld [vmem:[#allocation10 + $0x208] sm:$0xff] }
 0x450   : > { %1975 = vst.msk [vmem:[#allocation3 + $0x4] sm:$0x3] %vm4234_vm0, %v1974_v40  ;;  %3698 = vmatprep.subr.bf16.mxu0 %v3697_v34  ;;  %3180 = vmatmul.mubr.msk.f32.vlgmr.msra.gmra.mrb[10].mxu0 %vm1288_vm6, %v1998_v18  ;;  %v3723_v18 = vpack.c.bf16 %v2134_v16, %v2133_v6  ;;  %v3733_v34 = vpack.c.bf16 %v2172_v32, %v2171_v30  ;;  %v2156_v40 = vld [vmem:[#allocation10 + $0x118] sm:$0xff]  ;;  %v2167_v6 = vld [vmem:[#allocation10 + $0x170] sm:$0xff] }
 0x451   : > { %3700 = vmatpush3.bf16.msra.mxu0 %v3699_v37  ;;  %3182 = vmatprep.mubr.msk.f32.mxu0 %vm1288_vm6, %v1999_v27  ;;  %v2153_v27 = vld [vmem:[#allocation10 + $0x100] sm:$0xff]  ;;  %v2155_v37 = vld [vmem:[#allocation10 + $0x110] sm:$0xff]  ;;  %v2168_v16 = vld [vmem:[#allocation10 + $0x178] sm:$0xff] }
 0x452   : > { %3702 = vmatprep.subr.bf16.mxu0 %v3701_v41  ;;  %v3731_v24 = vpack.c.bf16 %v2154_v28, %v2153_v27  ;;  %v3735_v45 = vpack.c.bf16 %v2156_v40, %v2155_v37  ;;  %v3765_v27 = vpack.c.bf16 %v2204_v23, %v2203_v22  ;;  %v2187_v28 = vld [vmem:[#allocation10 + $0x210] sm:$0xff]  ;;  %v2188_v30 = vld [vmem:[#allocation10 + $0x218] sm:$0xff]  ;;  %v2189_v40 = vld [vmem:[#allocation10 + $0x220] sm:$0xff] }
 0x453   : > { %v4360_v54 = vld [vmem:[#allocation2] sm:$0xff]  ;;  %v2237_v22 = vld [vmem:[#allocation10 + $0x3a0] sm:$0xff] }
 0x454   : > { %3183 = vmatmul.mubr.msk.f32.gmra.mrb[12].mxu0 %vm1288_vm6, %v2000_v48  ;;  %v2258_v12 = vrot.slane %v4360_v54, %v4245_v35  ;;  %v3717_v35 = vpack.c.bf16 %v2148_v7, %v2147_v5  ;;  %v2254_v33 = vrot.slane %v4360_v54, %v4251_v38  ;;  %v2266_v41 = vrot.slane %v4360_v54, %v4248_v36  ;;  %v2157_v48 = vld [vmem:[#allocation10 + $0x120] sm:$0xff]  ;;  %v2178_v36 = vld [vmem:[#allocation10 + $0x1c8] sm:$0xff] }
 0x455   : > { %3704 = vmatpush3.bf16.msra.mxu0 %v3703_v50  ;;  %v2158_v50 = vld [vmem:[#allocation10 + $0x128] sm:$0xff]  ;;  %v2181_v5 = vld [vmem:[#allocation10 + $0x1e0] sm:$0xff]  ;;  %v2274_v32 = vrot.slane %v4360_v54, %v4259_v49 }
 0x456   : > { %2355 = vmatprep.mubr.f32.mxu0 %v2258_v12  ;;  %3706 = vmatprep.subr.bf16.mxu0 %v3705_v51  ;;  %v2175_v51 = vld [vmem:[#allocation10 + $0x1b0] sm:$0xff]  ;;  %v3739_v38 = vpack.c.bf16 %v2158_v50, %v2157_v48  ;;  %v2177_v12 = vld [vmem:[#allocation10 + $0x1c0] sm:$0xff]  ;;  %v2182_v7 = vld [vmem:[#allocation10 + $0x1e8] sm:$0xff] }
 0x457   : > { %v3741_v53 = vpack.c.bf16 %v2176_v52, %v2175_v51  ;;  %v2192_v48 = vld [vmem:[#allocation10 + $0x238] sm:$0xff]  ;;  %v2209_v50 = vld [vmem:[#allocation10 + $0x2c0] sm:$0xff]  ;;  %v2210_v49 = vld [vmem:[#allocation10 + $0x2c8] sm:$0xff] }
 0x458   : > { %v3777_v52 = vpack.c.bf16 %v2210_v49, %v2209_v50  ;;  %v2238_v23 = vld [vmem:[#allocation10 + $0x3a8] sm:$0xff]  ;;  %v2227_v50 = vld [vmem:[#allocation10 + $0x350] sm:$0xff]  ;;  %v2228_v49 = vld [vmem:[#allocation10 + $0x358] sm:$0xff] }
 0x459   : > { %3708 = vmatpush3.bf16.msra.mxu0 %v3707_v56  ;;  %v3743_v56 = vpack.c.bf16 %v2160_v46, %v2159_v55  ;;  %v2211_v55 = vld [vmem:[#allocation10 + $0x2d0] sm:$0xff]  ;;  %v2212_v46 = vld [vmem:[#allocation10 + $0x2d8] sm:$0xff] }
 0x45a   : > { %3710 = vmatprep.subr.bf16.mxu0 %v3709_v57  ;;  %v3745_v57 = vpack.c.bf16 %v2178_v36, %v2177_v12  ;;  %v3781_v36 = vpack.c.bf16 %v2212_v46, %v2211_v55  ;;  %v2229_v55 = vld [vmem:[#allocation10 + $0x360] sm:$0xff]  ;;  %v2230_v46 = vld [vmem:[#allocation10 + $0x368] sm:$0xff] }
 0x45d   : > { %3712 = vmatpush3.bf16.msra.mxu0 %v3711_v2  ;;  %v3747_v2 = vpack.c.bf16 %v2162_v62, %v2161_v61  ;;  %v2213_v61 = vld [vmem:[#allocation10 + $0x2e0] sm:$0xff]  ;;  %v2214_v62 = vld [vmem:[#allocation10 + $0x2e8] sm:$0xff] }
 0x45e   : > { %3714 = vmatprep.subr.bf16.mxu0 %v3713_v3  ;;  %v3749_v3 = vpack.c.bf16 %v2180_v1, %v2179_v0  ;;  %v3785_v1 = vpack.c.bf16 %v2214_v62, %v2213_v61  ;;  %v2231_v61 = vld [vmem:[#allocation10 + $0x370] sm:$0xff]  ;;  %v2232_v62 = vld [vmem:[#allocation10 + $0x378] sm:$0xff] }
 0x461   : > { %3716 = vmatpush3.bf16.msra.mxu0 %v3715_v8  ;;  %v3751_v8 = vpack.c.bf16 %v2164_v63, %v2163_v4  ;;  %v2215_v4 = vld [vmem:[#allocation10 + $0x2f0] sm:$0xff]  ;;  %v2216_v63 = vld [vmem:[#allocation10 + $0x2f8] sm:$0xff] }
 0x462   : > { %3718 = vmatprep.subr.bf16.mxu0 %v3717_v35  ;;  %v3753_v35 = vpack.c.bf16 %v2182_v7, %v2181_v5  ;;  %v3789_v7 = vpack.c.bf16 %v2216_v63, %v2215_v4 }
 0x465   : > { %3720 = vmatpush3.bf16.msra.mxu0 %v3719_v14  ;;  %v3755_v14 = vpack.c.bf16 %v2166_v10, %v2165_v9  ;;  %v2233_v9 = vld [vmem:[#allocation10 + $0x380] sm:$0xff]  ;;  %v2234_v10 = vld [vmem:[#allocation10 + $0x388] sm:$0xff] }
 0x466   : > { %3722 = vmatprep.subr.bf16.mxu0 %v3721_v15  ;;  %v3757_v15 = vpack.c.bf16 %v2184_v13, %v2183_v11  ;;  %v3793_v13 = vpack.c.bf16 %v2234_v10, %v2233_v9 }
 0x469   : > { %3724 = vmatpush3.bf16.msra.mxu0 %v3723_v18  ;;  %v3759_v18 = vpack.c.bf16 %v2168_v16, %v2167_v6  ;;  %v2235_v6 = vld [vmem:[#allocation10 + $0x390] sm:$0xff]  ;;  %v2236_v16 = vld [vmem:[#allocation10 + $0x398] sm:$0xff] }
 0x46a   : > { %3726 = vmatprep.subr.bf16.mxu0 %v3725_v19  ;;  %v3761_v19 = vpack.c.bf16 %v2202_v17, %v2201_v39  ;;  %v2270_v17 = vrot.slane %v4360_v54, %v4277_v29 }
 0x46d   : > { %3728 = vmatpush3.bf16.msra.mxu0 %v3727_v25  ;;  %v3763_v25 = vpack.c.bf16 %v2186_v21, %v2185_v20  ;;  %v2220_v20 = vld [vmem:[#allocation10 + $0x318] sm:$0xff]  ;;  %v2282_v21 = vrot.slane %v4360_v54, %v4268_v60  ;;  %v2242_v60 = vld [vmem:[#allocation10 + $0x3c8] sm:$0xff] }
 0x46e   : > { %3730 = vmatprep.subr.bf16.mxu0 %v3729_v26  ;;  %v2262_v26 = vrot.slane %v4360_v54, %v4254_v43 }
 0x470   : > { %2356 = vmatmul.mubr.f32.vlgmr.msra.gmra.mrb[14].mxu0 %v2254_v33  ;;  %v2206_v33 = vld [vmem:[#allocation10 + $0x2a8] sm:$0xff] }
 0x471   : > { %3732 = vmatpush3.bf16.msra.mxu0 %v3731_v24  ;;  %2425 = vmatprep.mubr.f32.mxu0 %v2266_v41  ;;  %v2205_v24 = vld [vmem:[#allocation10 + $0x2a0] sm:$0xff]  ;;  %v2190_v41 = vld [vmem:[#allocation10 + $0x228] sm:$0xff] }
 0x472   : > { %3734 = vmatprep.subr.bf16.mxu0 %v3733_v34  ;;  %v3767_v34 = vpack.c.bf16 %v2188_v30, %v2187_v28  ;;  %v3769_v37 = vpack.c.bf16 %v2206_v33, %v2205_v24  ;;  %v3771_v43 = vpack.c.bf16 %v2190_v41, %v2189_v40  ;;  %v2222_v28 = vld [vmem:[#allocation10 + $0x328] sm:$0xff]  ;;  %v2239_v30 = vld [vmem:[#allocation10 + $0x3b0] sm:$0xff] }
 0x473   : > { %v2223_v33 = vld [vmem:[#allocation10 + $0x330] sm:$0xff] }
 0x475   : > { %3736 = vmatpush3.bf16.msra.mxu0 %v3735_v45  ;;  %v3773_v45 = vpack.c.bf16 %v2208_v44, %v2207_v42  ;;  %v2225_v42 = vld [vmem:[#allocation10 + $0x340] sm:$0xff]  ;;  %v2226_v44 = vld [vmem:[#allocation10 + $0x348] sm:$0xff] }
 0x476   : > { %3738 = vmatprep.subr.bf16.mxu0 %v3737_v47  ;;  %v2191_v47 = vld [vmem:[#allocation10 + $0x230] sm:$0xff] }
 0x477   : > { %v3775_v51 = vpack.c.bf16 %v2192_v48, %v2191_v47  ;;  %v3811_v47 = vpack.c.bf16 %v2226_v44, %v2225_v42 }
 0x479   : > { %3740 = vmatpush3.bf16.msra.mxu0 %v3739_v38  ;;  %v2193_v38 = vld [vmem:[#allocation10 + $0x240] sm:$0xff] }
 0x47a   : > { %3742 = vmatprep.subr.bf16.mxu0 %v3741_v53  ;;  %v2194_v53 = vld [vmem:[#allocation10 + $0x248] sm:$0xff] }
 0x47b   : > { %v3779_v12 = vpack.c.bf16 %v2194_v53, %v2193_v38  ;;  %v3815_v38 = vpack.c.bf16 %v2228_v49, %v2227_v50 }
 0x47d   : > { %3744 = vmatpush3.bf16.msra.mxu0 %v3743_v56  ;;  %v2195_v56 = vld [vmem:[#allocation10 + $0x250] sm:$0xff] }
 0x47e   : > { %3746 = vmatprep.subr.bf16.mxu0 %v3745_v57  ;;  %v2196_v57 = vld [vmem:[#allocation10 + $0x258] sm:$0xff] }
 0x47f   : > { %v3783_v0 = vpack.c.bf16 %v2196_v57, %v2195_v56  ;;  %v3819_v56 = vpack.c.bf16 %v2230_v46, %v2229_v55 }
 0x481   : > { %3748 = vmatpush3.bf16.msra.mxu0 %v3747_v2  ;;  %v2197_v2 = vld [vmem:[#allocation10 + $0x260] sm:$0xff] }
 0x482   : > { %3750 = vmatprep.subr.bf16.mxu0 %v3749_v3  ;;  %v2198_v3 = vld [vmem:[#allocation10 + $0x268] sm:$0xff] }
 0x483   : > { %v3787_v5 = vpack.c.bf16 %v2198_v3, %v2197_v2 }
 0x485   : > { %3752 = vmatpush3.bf16.msra.mxu0 %v3751_v8  ;;  %v2199_v8 = vld [vmem:[#allocation10 + $0x270] sm:$0xff] }
 0x486   : > { %3754 = vmatprep.subr.bf16.mxu0 %v3753_v35  ;;  %v2200_v35 = vld [vmem:[#allocation10 + $0x278] sm:$0xff] }
 0x487   : > { %v3791_v11 = vpack.c.bf16 %v2200_v35, %v2199_v8 }
 0x489   : > { %3756 = vmatpush3.bf16.msra.mxu0 %v3755_v14  ;;  %v2217_v14 = vld [vmem:[#allocation10 + $0x300] sm:$0xff] }
 0x48a   : > { %3758 = vmatprep.subr.bf16.mxu0 %v3757_v15  ;;  %v2218_v15 = vld [vmem:[#allocation10 + $0x308] sm:$0xff] }
 0x48b   : > { %v3795_v39 = vpack.c.bf16 %v2218_v15, %v2217_v14 }
 0x48d   : > { %3760 = vmatpush3.bf16.msra.mxu0 %v3759_v18  ;;  %v3797_v18 = vpack.c.bf16 %v2236_v16, %v2235_v6 }
 0x48e   : > { %3762 = vmatprep.subr.bf16.mxu0 %v3761_v19  ;;  %v2219_v19 = vld [vmem:[#allocation10 + $0x310] sm:$0xff] }
 0x490   : > { %2426 = vmatmul.mubr.f32.vlgmr.msra.gmra.mrb[16].mxu0 %v2262_v26  ;;  %v3801_v26 = vpack.c.bf16 %v2238_v23, %v2237_v22 }
 0x491   : > { %3764 = vmatpush3.bf16.msra.mxu0 %v3763_v25  ;;  %2495 = vmatprep.mubr.f32.mxu0 %v2274_v32  ;;  %v3799_v25 = vpack.c.bf16 %v2220_v20, %v2219_v19  ;;  %v2240_v32 = vld [vmem:[#allocation10 + $0x3b8] sm:$0xff] }
 0x492   : > { %3766 = vmatprep.subr.bf16.mxu0 %v3765_v27  ;;  %v2221_v27 = vld [vmem:[#allocation10 + $0x320] sm:$0xff]  ;;  %v3805_v24 = vpack.c.bf16 %v2240_v32, %v2239_v30 }
 0x493   : > { %v3803_v29 = vpack.c.bf16 %v2222_v28, %v2221_v27 }
 0x495   : > { %3768 = vmatpush3.bf16.msra.mxu0 %v3767_v34  ;;  %v2224_v34 = vld [vmem:[#allocation10 + $0x338] sm:$0xff] }
 0x496   : > { %3770 = vmatprep.subr.bf16.mxu0 %v3769_v37  ;;  %v2241_v37 = vld [vmem:[#allocation10 + $0x3c0] sm:$0xff]  ;;  %v3807_v40 = vpack.c.bf16 %v2224_v34, %v2223_v33 }
 0x497   : > { %v3809_v41 = vpack.c.bf16 %v2242_v60, %v2241_v37 }
 0x499   : > { %3772 = vmatpush3.bf16.msra.mxu0 %v3771_v43  ;;  %v2243_v43 = vld [vmem:[#allocation10 + $0x3d0] sm:$0xff] }
 0x49a   : > { %3774 = vmatprep.subr.bf16.mxu0 %v3773_v45  ;;  %v2244_v45 = vld [vmem:[#allocation10 + $0x3d8] sm:$0xff] }
 0x49b   : > { %v3813_v48 = vpack.c.bf16 %v2244_v45, %v2243_v43 }
 0x49d   : > { %3776 = vmatpush3.bf16.msra.mxu0 %v3775_v51  ;;  %v2245_v51 = vld [vmem:[#allocation10 + $0x3e0] sm:$0xff] }
 0x49e   : > { %3778 = vmatprep.subr.bf16.mxu0 %v3777_v52  ;;  %v2246_v52 = vld [vmem:[#allocation10 + $0x3e8] sm:$0xff] }
 0x49f   : > { %v3817_v53 = vpack.c.bf16 %v2246_v52, %v2245_v51 }
 0x4a1   : > { %3780 = vmatpush3.bf16.msra.mxu0 %v3779_v12  ;;  %v2247_v12 = vld [vmem:[#allocation10 + $0x3f0] sm:$0xff] }
 0x4a2   : > { %3782 = vmatprep.subr.bf16.mxu0 %v3781_v36  ;;  %v2248_v36 = vld [vmem:[#allocation10 + $0x3f8] sm:$0xff] }
 0x4a3   : > { %v3821_v57 = vpack.c.bf16 %v2248_v36, %v2247_v12 }
 0x4a5   : > { %3784 = vmatpush3.bf16.msra.mxu0 %v3783_v0  ;;  %v3823_v0 = vpack.c.bf16 %v2232_v62, %v2231_v61 }
 0x4a6   : > { %3786 = vmatprep.subr.bf16.mxu0 %v3785_v1  ;;  %v2278_v1 = vrot.slane %v4360_v54, %v4280_v31 }
 0x4a9   : > { %3788 = vmatpush3.bf16.msra.mxu0 %v3787_v5 }
 0x4aa   : > { %3790 = vmatprep.subr.bf16.mxu0 %v3789_v7 }
 0x4ad   : > { %3792 = vmatpush3.bf16.msra.mxu0 %v3791_v11 }
 0x4ae   : > { %3794 = vmatprep.subr.bf16.mxu0 %v3793_v13 }
 0x4b0   : > { %2496 = vmatmul.mubr.f32.vlgmr.msra.gmra.mrb[18].mxu0 %v2270_v17 }
 0x4b1   : > { %3796 = vmatpush3.bf16.msra.mxu0 %v3795_v39  ;;  %2565 = vmatprep.mubr.f32.mxu0 %v2282_v21  ;;  %v2571_v39 = vld [vmem:[#allocation3 + $0x6] sm:$0x1] }
 0x4b2   : > { %3798 = vmatprep.subr.bf16.mxu0 %v3797_v18 }
 0x4b5   : > { %3800 = vmatpush3.bf16.msra.mxu0 %v3799_v25 }
 0x4b6   : > { %3802 = vmatprep.subr.bf16.mxu0 %v3801_v26 }
 0x4b9   : > { %3804 = vmatpush3.bf16.msra.mxu0 %v3803_v29 }
 0x4ba   : > { %3806 = vmatprep.subr.bf16.mxu0 %v3805_v24 }
 0x4bd   : > { %3808 = vmatpush3.bf16.msra.mxu0 %v3807_v40 }
 0x4be   : > { %3810 = vmatprep.subr.bf16.mxu0 %v3809_v41 }
 0x4c1   : > { %3812 = vmatpush3.bf16.msra.mxu0 %v3811_v47 }
 0x4c2   : > { %3814 = vmatprep.subr.bf16.mxu0 %v3813_v48 }
 0x4c5   : > { %3816 = vmatpush3.bf16.msra.mxu0 %v3815_v38 }
 0x4c6   : > { %3818 = vmatprep.subr.bf16.mxu0 %v3817_v53 }
 0x4c9   : > { %3820 = vmatpush3.bf16.msra.mxu0 %v3819_v56 }
 0x4ca   : > { %3822 = vmatprep.subr.bf16.mxu0 %v3821_v57 }
 0x4cd   : > { %3824 = vmatpush3.bf16.msra.mxu0 %v3823_v0 }
 0x4d0   : > { %2566 = vmatmul.mubr.f32.vlgmr.msra.gmra.mrb[20].mxu0 %v2278_v1 }
 0x523   : > { %v3181_v2 = vpop.f32.mrb[10].mxu0 }
 0x524   : > { %2118 = vst [vmem:[%s4229_s10 + $0x10] sm:$0xff] %v3181_v2  ;;  %v2098_v3 = vpop.f32.mrb[11].mxu0 }
 0x525   : > { %2117 = vst [vmem:[%s4229_s10 + $0x8] sm:$0xff] %v2098_v3 }
 0x527   : > { %v3184_v4 = vpop.f32.mrb[12].mxu0 }
 0x528   : > { %2120 = vst [vmem:[%s4229_s10 + $0x20] sm:$0xff] %v3184_v4  ;;  %v2108_v63 = vpop.f32.mrb[13].mxu0 }
 0x529   : > { %2119 = vst [vmem:[%s4229_s10 + $0x18] sm:$0xff] %v2108_v63 }
 0x543   : > { %v3064_v5 = vpop.f32.mrb[14].mxu0 }
 0x544   : > { %v3065_v7 = vpop.f32.mrb[15].mxu0 }
 0x545   : > { %v3066_v8 = vadd.f32 %v3065_v7, %v3064_v5 }
 0x563   : > { %v3099_v35 = vpop.f32.mrb[16].mxu0 }
 0x564   : > { %v3100_v9 = vpop.f32.mrb[17].mxu0 }
 0x565   : > { %v3101_v10 = vadd.f32 %v3100_v9, %v3099_v35 }
 0x567   : > { %v2428_v11 = vadd.f32 %v3101_v10, %v3066_v8 }
 0x583   : > { %v3134_v13 = vpop.f32.mrb[18].mxu0 }
 0x584   : > { %v3135_v14 = vpop.f32.mrb[19].mxu0 }
 0x585   : > { %v3136_v31 = vadd.f32 %v3135_v14, %v3134_v13 }
 0x587   : > { %v2498_v54 = vadd.f32 %v3136_v31, %v2428_v11 }
 0x5a3   : > { %v3169_v15 = vpop.f32.mrb[20].mxu0 }
 0x5a4   : > { %v3170_v6 = vpop.f32.mrb[21].mxu0 }
 0x5a5   : > { %v3171_v16 = vadd.f32 %v3170_v6, %v3169_v15 }
 0x5a7   : > { %v2568_v17 = vadd.f32 %v3171_v16, %v2498_v54 }
 0x5a9   : > { %v2572_v18 = vadd.f32 %v2571_v39, %v2568_v17 }
 0x5ab   : > { %vm2573_vm8 = vcmp.gt.f32.partialorder %v2572_v18, 0.5 }
 0x5ac   : > { %v2742_v19 = vsel %vm2573_vm8, 1.0, %v4030_v58 }
 0x5ad   : > { %v2576_v20 = vsub.f32 1.0, %v2742_v19  ;;  %2579 = vst.msk [vmem:[#allocation2 + $0x6] sm:$0x1] %vm4289_vm1, %v2742_v19  ;;  %2586 = vst [vmem:[%s4224_s7 + $0x4] sm:$0x1] %v2742_v19 }
 0x5af   : > { %v2577_v21 = vmul.f32 %v2576_v20, %v2572_v18 }
 0x5b1   : > { %2578 = vst.msk [vmem:[#allocation3 + $0x6] sm:$0x1] %vm4289_vm1, %v2577_v21 }
 0x5b2 PF: > { %s20_s21 = sadd.s32 1, %s4019_s21  }
 0x5b3   : > { %p17_p9 = scmp.ge.s32.totalorder %s20_s21, 8  }
 0x5b5   :  { %19 = sbr.rel (!%p17_p9) target bundleno = 3 (0x3), region = 103 }
 0x5bc   :  { %2623 = vsyncpa [#allocation6], 1 }
 0x5bd   :  { %2625 = vsyncpa [#allocation6 + $0x1], 1 }
 0x5be   :  { %2626 = vsyncpa [#allocation8], 1 }
 0x5bf   :  { %2627 = vsyncpa [#allocation11], 1 }

</bundles_post_ra>
